<compile_context>
chip_gen: v6e
topology: v6e:2x2x1
jax: 0.10.0
libtpu: 0.0.40
codegen_flags: <defaults>
</compile_context>

<pallas_src>
import jax
import jax.numpy as jnp
from jax.experimental import pallas as pl
from jax.experimental.pallas import tpu as pltpu


NUM_BUCKETS = 1024     # hardcoded in the torch module
TILE_B = 256           # default output rows per grid step (multiple of 8)
K_CHUNK = 128          # bucket-axis slab width processed per inner step
MAX_TILE_D = 2048      # cap on the D tile so the resident table slab <= 8 MiB


def _fnv1a_hash(s: str) -> int:
    """Deterministic stand-in for Python's salted hash()."""
    h = 0xCBF29CE484222325
    for b in s.encode("utf-8"):
        h ^= b
        h = (h * 0x100000001B3) & 0xFFFFFFFFFFFFFFFF
    return h


def _round_up(x: int, m: int) -> int:
    return ((x + m - 1) // m) * m


def _pick_tile_d(dim_padded: int) -> int:
    """Largest D tile <= MAX_TILE_D that is a multiple of 128 and divides D."""
    if dim_padded <= MAX_TILE_D:
        return dim_padded
    for cand in range(MAX_TILE_D, 127, -128):
        if dim_padded % cand == 0:
            return cand
    return 128  # 128 always divides dim_padded (it is padded to 128)


def _device_vmem_cap_bytes() -> int:
    """Physical VMEM per TensorCore; conservative fallback if query fails."""
    try:
        info = pltpu.get_tpu_info()
        cap = getattr(info, "vmem_capacity_bytes", None)
        if cap:
            return int(cap)
    except Exception:  # noqa: BLE001 - hardware query is best-effort only
        pass
    return 64 << 20  # v7x has the smallest physical VMEM of v5e/v6e/v7x


def _gather_kernel(ids_ref, table_ref, out_ref):
    # ids_ref:   (TILE_B, 1) int32 bucket ids for this output tile (VMEM).
    # table_ref: (NUM_BUCKETS, TILE_D) f32 table slab, resident across the
    #            inner (batch) grid axis.
    # out_ref:   (TILE_B, TILE_D) f32 output tile, written exactly once.
    ids = ids_ref[...]                                        # (TILE_B, 1)
    tile_b = ids.shape[0]
    num_buckets = table_ref.shape[0]
    tile_d = out_ref.shape[1]

    # One lane-iota vreg set reused for every bucket slab.
    lane = jax.lax.broadcasted_iota(jnp.int32, (tile_b, K_CHUNK), 1)

    acc = jnp.zeros((tile_b, tile_d), jnp.float32)
    # K-chunked one-hot: each slab is only (TILE_B, 128) f32 (32 vregs at
    # TILE_B=256), so it stays in registers instead of spilling to VMEM.
    for c in range(num_buckets // K_CHUNK):
        start = c * K_CHUNK
        one_hot = (lane == (ids - start)).astype(jnp.float32)  # (TILE_B, 128)
        slab = table_ref[start:start + K_CHUNK, :]              # (128, TILE_D)
        # Exactly one 1.0 per one-hot row; HIGHEST precision keeps the f32
        # gather bit-exact through the MXU.
        acc = acc + jnp.dot(
            one_hot, slab,
            precision=jax.lax.Precision.HIGHEST,
            preferred_element_type=jnp.float32)
    out_ref[...] = acc.astype(out_ref.dtype)


def hash_tokenizer_encode(table: jax.Array, bucket_ids: jax.Array,
                          *, tile_b: int | None = None,
                          tile_d: int | None = None) -> jax.Array:
    """Gather rows `bucket_ids` from `table` using a Pallas TPU kernel.

    Args:
      table: [NUM_BUCKETS, D] float32 embedding table.
      bucket_ids: [B] int32 bucket indices (already hashed % NUM_BUCKETS).

    Returns:
      [B, D] float32 — equivalent to torch.stack([table[i] for i in ids]).
    """
    (batch,) = bucket_ids.shape
    num_buckets, dim = table.shape

    # Pad D to 128 lanes so output stores are unmasked full-vreg vst.
    dim_padded = _round_up(dim, 128)
    if dim_padded != dim:
        table = jnp.pad(table, ((0, 0), (0, dim_padded - dim)))

    if tile_b is None:
        tile_b = min(TILE_B, _round_up(max(batch, 1), 8))
    if tile_d is None:
        tile_d = _pick_tile_d(dim_padded)

    # Pad the batch to a multiple of the output tile height; padded rows use
    # bucket 0 (valid) and are sliced off before returning.
    padded_b = _round_up(batch, tile_b)
    ids2d = jnp.zeros((padded_b, 1), dtype=jnp.int32)
    ids2d = ids2d.at[:batch, 0].set(bucket_ids.astype(jnp.int32))

    n_d = dim_padded // tile_d
    n_b = padded_b // tile_b
    grid = (n_d, n_b)  # D outer so the table slab stays resident over batch.

    table_bytes = num_buckets * dim_padded * 4
    out_bytes = padded_b * dim_padded * 4

    grid_spec = pltpu.PrefetchScalarGridSpec(
        num_scalar_prefetch=0,
        grid=grid,
        in_specs=[
            # Per-batch-tile bucket ids.
            pl.BlockSpec((tile_b, 1), lambda d, i: (i, 0)),
            # Table D-slab: constant across the inner batch axis -> resident.
            pl.BlockSpec((num_buckets, tile_d), lambda d, i: (0, d)),
        ],
        out_specs=pl.BlockSpec((tile_b, tile_d), lambda d, i: (i, d)),
    )

    # Generation-aware VMEM budgeting (includes the one-hot slab + acc).
    vmem_needed = (
        2 * num_buckets * tile_d * 4        # table slab (double-buffered)
        + 2 * tile_b * tile_d * 4           # output tile double buffer
        + 2 * tile_b * 4                    # ids tiles
        + tile_b * K_CHUNK * 4              # one-hot slab
        + tile_b * tile_d * 4               # f32 accumulator (if spilled)
        + (2 << 20)                         # compiler scratch slack
    )
    cp_kwargs = dict(dimension_semantics=("arbitrary", "parallel"))
    # 14 MiB is below the smallest scoped-VMEM default (v5e: 16 MiB); only
    # raise the limit when we actually need more, and never above the
    # physical VMEM of the device (v7x: 64 MiB) minus headroom.
    if vmem_needed > (14 << 20):
        cap = _device_vmem_cap_bytes()
        limit = min(vmem_needed, cap - (12 << 20))
        cp_kwargs["vmem_limit_bytes"] = int(max(limit, 16 << 20))

    out = pl.pallas_call(
        _gather_kernel,
        out_shape=jax.ShapeDtypeStruct((padded_b, dim_padded), jnp.float32),
        grid_spec=grid_spec,
        compiler_params=pltpu.CompilerParams(**cp_kwargs),
        cost_estimate=pl.CostEstimate(
            flops=2 * padded_b * num_buckets * dim_padded,
            transcendentals=0,
            bytes_accessed=table_bytes + out_bytes + padded_b * 4,
        ),
    )(ids2d, table)

    return out[:batch, :dim]


class HashTokenizerEncoder:
    """JAX/Pallas port of the torch `_HashTokenizerEncoder` stub."""

    def __init__(self, embedding_dim: int = 128, seed: int = 0):
        self.embedding_dim = embedding_dim
        self._num_buckets = NUM_BUCKETS
        # torch.rand(num_buckets, embedding_dim) equivalent: uniform [0, 1).
        key = jax.random.PRNGKey(seed)
        self._random_matrix = jax.random.uniform(
            key, (self._num_buckets, self.embedding_dim), dtype=jnp.float32
        )

    def forward(self, batch):
        if isinstance(batch, (jnp.ndarray, jax.Array)):
            raise ValueError("Stub tokenizer encoder does not support arrays.")
        # TODO(synk): Python's hash() is salted per-process and has no TPU
        # equivalent; a deterministic FNV-1a hash is used for bucket selection.
        ids = jnp.asarray(
            [_fnv1a_hash(x) % self._num_buckets for x in batch], dtype=jnp.int32
        )
        return hash_tokenizer_encode(self._random_matrix, ids)


if __name__ == "__main__":
    # --- Test 1: module-consistent small shapes (batch of 8 strings, D=128).
    embedding_dim = 128
    encoder = HashTokenizerEncoder(embedding_dim=embedding_dim, seed=0)

    batch = [
        "alpha", "bravo", "charlie", "delta",
        "echo", "foxtrot", "golf", "hotel",
    ]
    out = encoder.forward(batch)
    out = jax.block_until_ready(out)

    ids_ref = jnp.asarray(
        [_fnv1a_hash(x) % NUM_BUCKETS for x in batch], dtype=jnp.int32
    )
    ref = jnp.take(encoder._random_matrix, ids_ref, axis=0)

    assert out.shape == (len(batch), embedding_dim), out.shape
    assert out.dtype == jnp.float32, out.dtype
    assert jnp.allclose(out, ref, rtol=0.0, atol=1e-6), (
        "Pallas gather mismatch vs reference (test 1)")

    # --- Test 2: torch-default D=768, multi-tile batch (exercises padding,
    # batch tiling and the lane-dense output path).
    key = jax.random.PRNGKey(0)
    k_tab, k_ids = jax.random.split(key)
    table2 = jax.random.uniform(k_tab, (NUM_BUCKETS, 768), dtype=jnp.float32)
    ids2 = jax.random.randint(k_ids, (300,), 0, NUM_BUCKETS, dtype=jnp.int32)
    out2 = jax.block_until_ready(hash_tokenizer_encode(table2, ids2))
    ref2 = jnp.take(table2, ids2, axis=0)
    assert out2.shape == (300, 768), out2.shape
    assert jnp.allclose(out2, ref2, rtol=0.0, atol=1e-6), (
        "Pallas gather mismatch vs reference (test 2)")

    print("KERNEL_OK")
</pallas_src>

<mosaic_0001>
module attributes {stable_mosaic.version = 11 : i64} {
  func.func @_gather_kernel(%arg0: i32, %arg1: i32, %arg2: memref<8x1xi32, #tpu.memory_space<vmem>>, %arg3: memref<1024x128xf32, #tpu.memory_space<vmem>>, %arg4: memref<8x128xf32, #tpu.memory_space<vmem>>) attributes {dimension_semantics = [#tpu.dimension_semantics<arbitrary>, #tpu.dimension_semantics<parallel>], iteration_bounds = array<i64: 1, 1>, scalar_prefetch = 0 : i64, scratch_operands = 0 : i64, tpu.core_type = #tpu.core_type<tc>, window_params = [{transform_indices = @transform_0, window_bounds = array<i64: 8, 1>}, {transform_indices = @transform_1, window_bounds = array<i64: 1024, 128>}, {transform_indices = @transform_2, window_bounds = array<i64: 8, 128>}]} {
    %c0 = arith.constant 0 : index
    %c0_0 = arith.constant 0 : index
    %0 = vector.load %arg2[%c0, %c0_0] : memref<8x1xi32, #tpu.memory_space<vmem>>, vector<8x1xi32>
    %1 = tpu.iota {dimensions = array<i32: 1>} : vector<8x128xi32>
    %cst = arith.constant 0.000000e+00 : f32
    %2 = vector.broadcast %cst : f32 to vector<8x128xf32>
    %c0_i32 = arith.constant 0 : i32
    %3 = vector.broadcast %c0_i32 : i32 to vector<8x1xi32>
    %4 = arith.subi %0, %3 : vector<8x1xi32>
    %5 = vector.broadcast %4 : vector<8x1xi32> to vector<8x128xi32>
    %6 = arith.cmpi eq, %1, %5 : vector<8x128xi32>
    %7 = arith.extui %6 : vector<8x128xi1> to vector<8x128xi32>
    %8 = arith.sitofp %7 : vector<8x128xi32> to vector<8x128xf32>
    %c0_1 = arith.constant 0 : index
    %c0_2 = arith.constant 0 : index
    %9 = vector.load %arg3[%c0_1, %c0_2] : memref<1024x128xf32, #tpu.memory_space<vmem>>, vector<128x128xf32>
    %cst_3 = arith.constant dense<0.000000e+00> : vector<8x128xf32>
    %10 = tpu.matmul %8, %9, %cst_3 {dimension_numbers = #tpu.dot_dimension_numbers<[1], [0], [0], [1], [0, 0, 1, 1], [], []>, precision = #tpu.contract_precision<fp32>} : vector<8x128xf32>, vector<128x128xf32>, vector<8x128xf32> -> vector<8x128xf32>
    %11 = arith.addf %2, %10 : vector<8x128xf32>
    %c128_i32 = arith.constant 128 : i32
    %12 = vector.broadcast %c128_i32 : i32 to vector<8x1xi32>
    %13 = arith.subi %0, %12 : vector<8x1xi32>
    %14 = vector.broadcast %13 : vector<8x1xi32> to vector<8x128xi32>
    %15 = arith.cmpi eq, %1, %14 : vector<8x128xi32>
    %16 = arith.extui %15 : vector<8x128xi1> to vector<8x128xi32>
    %17 = arith.sitofp %16 : vector<8x128xi32> to vector<8x128xf32>
    %c128 = arith.constant 128 : index
    %c0_4 = arith.constant 0 : index
    %18 = vector.load %arg3[%c128, %c0_4] : memref<1024x128xf32, #tpu.memory_space<vmem>>, vector<128x128xf32>
    %cst_5 = arith.constant dense<0.000000e+00> : vector<8x128xf32>
    %19 = tpu.matmul %17, %18, %cst_5 {dimension_numbers = #tpu.dot_dimension_numbers<[1], [0], [0], [1], [0, 0, 1, 1], [], []>, precision = #tpu.contract_precision<fp32>} : vector<8x128xf32>, vector<128x128xf32>, vector<8x128xf32> -> vector<8x128xf32>
    %20 = arith.addf %11, %19 : vector<8x128xf32>
    %c256_i32 = arith.constant 256 : i32
    %21 = vector.broadcast %c256_i32 : i32 to vector<8x1xi32>
    %22 = arith.subi %0, %21 : vector<8x1xi32>
    %23 = vector.broadcast %22 : vector<8x1xi32> to vector<8x128xi32>
    %24 = arith.cmpi eq, %1, %23 : vector<8x128xi32>
    %25 = arith.extui %24 : vector<8x128xi1> to vector<8x128xi32>
    %26 = arith.sitofp %25 : vector<8x128xi32> to vector<8x128xf32>
    %c256 = arith.constant 256 : index
    %c0_6 = arith.constant 0 : index
    %27 = vector.load %arg3[%c256, %c0_6] : memref<1024x128xf32, #tpu.memory_space<vmem>>, vector<128x128xf32>
    %cst_7 = arith.constant dense<0.000000e+00> : vector<8x128xf32>
    %28 = tpu.matmul %26, %27, %cst_7 {dimension_numbers = #tpu.dot_dimension_numbers<[1], [0], [0], [1], [0, 0, 1, 1], [], []>, precision = #tpu.contract_precision<fp32>} : vector<8x128xf32>, vector<128x128xf32>, vector<8x128xf32> -> vector<8x128xf32>
    %29 = arith.addf %20, %28 : vector<8x128xf32>
    %c384_i32 = arith.constant 384 : i32
    %30 = vector.broadcast %c384_i32 : i32 to vector<8x1xi32>
    %31 = arith.subi %0, %30 : vector<8x1xi32>
    %32 = vector.broadcast %31 : vector<8x1xi32> to vector<8x128xi32>
    %33 = arith.cmpi eq, %1, %32 : vector<8x128xi32>
    %34 = arith.extui %33 : vector<8x128xi1> to vector<8x128xi32>
    %35 = arith.sitofp %34 : vector<8x128xi32> to vector<8x128xf32>
    %c384 = arith.constant 384 : index
    %c0_8 = arith.constant 0 : index
    %36 = vector.load %arg3[%c384, %c0_8] : memref<1024x128xf32, #tpu.memory_space<vmem>>, vector<128x128xf32>
    %cst_9 = arith.constant dense<0.000000e+00> : vector<8x128xf32>
    %37 = tpu.matmul %35, %36, %cst_9 {dimension_numbers = #tpu.dot_dimension_numbers<[1], [0], [0], [1], [0, 0, 1, 1], [], []>, precision = #tpu.contract_precision<fp32>} : vector<8x128xf32>, vector<128x128xf32>, vector<8x128xf32> -> vector<8x128xf32>
    %38 = arith.addf %29, %37 : vector<8x128xf32>
    %c512_i32 = arith.constant 512 : i32
    %39 = vector.broadcast %c512_i32 : i32 to vector<8x1xi32>
    %40 = arith.subi %0, %39 : vector<8x1xi32>
    %41 = vector.broadcast %40 : vector<8x1xi32> to vector<8x128xi32>
    %42 = arith.cmpi eq, %1, %41 : vector<8x128xi32>
    %43 = arith.extui %42 : vector<8x128xi1> to vector<8x128xi32>
    %44 = arith.sitofp %43 : vector<8x128xi32> to vector<8x128xf32>
    %c512 = arith.constant 512 : index
    %c0_10 = arith.constant 0 : index
    %45 = vector.load %arg3[%c512, %c0_10] : memref<1024x128xf32, #tpu.memory_space<vmem>>, vector<128x128xf32>
    %cst_11 = arith.constant dense<0.000000e+00> : vector<8x128xf32>
    %46 = tpu.matmul %44, %45, %cst_11 {dimension_numbers = #tpu.dot_dimension_numbers<[1], [0], [0], [1], [0, 0, 1, 1], [], []>, precision = #tpu.contract_precision<fp32>} : vector<8x128xf32>, vector<128x128xf32>, vector<8x128xf32> -> vector<8x128xf32>
    %47 = arith.addf %38, %46 : vector<8x128xf32>
    %c640_i32 = arith.constant 640 : i32
    %48 = vector.broadcast %c640_i32 : i32 to vector<8x1xi32>
    %49 = arith.subi %0, %48 : vector<8x1xi32>
    %50 = vector.broadcast %49 : vector<8x1xi32> to vector<8x128xi32>
    %51 = arith.cmpi eq, %1, %50 : vector<8x128xi32>
    %52 = arith.extui %51 : vector<8x128xi1> to vector<8x128xi32>
    %53 = arith.sitofp %52 : vector<8x128xi32> to vector<8x128xf32>
    %c640 = arith.constant 640 : index
    %c0_12 = arith.constant 0 : index
    %54 = vector.load %arg3[%c640, %c0_12] : memref<1024x128xf32, #tpu.memory_space<vmem>>, vector<128x128xf32>
    %cst_13 = arith.constant dense<0.000000e+00> : vector<8x128xf32>
    %55 = tpu.matmul %53, %54, %cst_13 {dimension_numbers = #tpu.dot_dimension_numbers<[1], [0], [0], [1], [0, 0, 1, 1], [], []>, precision = #tpu.contract_precision<fp32>} : vector<8x128xf32>, vector<128x128xf32>, vector<8x128xf32> -> vector<8x128xf32>
    %56 = arith.addf %47, %55 : vector<8x128xf32>
    %c768_i32 = arith.constant 768 : i32
    %57 = vector.broadcast %c768_i32 : i32 to vector<8x1xi32>
    %58 = arith.subi %0, %57 : vector<8x1xi32>
    %59 = vector.broadcast %58 : vector<8x1xi32> to vector<8x128xi32>
    %60 = arith.cmpi eq, %1, %59 : vector<8x128xi32>
    %61 = arith.extui %60 : vector<8x128xi1> to vector<8x128xi32>
    %62 = arith.sitofp %61 : vector<8x128xi32> to vector<8x128xf32>
    %c768 = arith.constant 768 : index
    %c0_14 = arith.constant 0 : index
    %63 = vector.load %arg3[%c768, %c0_14] : memref<1024x128xf32, #tpu.memory_space<vmem>>, vector<128x128xf32>
    %cst_15 = arith.constant dense<0.000000e+00> : vector<8x128xf32>
    %64 = tpu.matmul %62, %63, %cst_15 {dimension_numbers = #tpu.dot_dimension_numbers<[1], [0], [0], [1], [0, 0, 1, 1], [], []>, precision = #tpu.contract_precision<fp32>} : vector<8x128xf32>, vector<128x128xf32>, vector<8x128xf32> -> vector<8x128xf32>
    %65 = arith.addf %56, %64 : vector<8x128xf32>
    %c896_i32 = arith.constant 896 : i32
    %66 = vector.broadcast %c896_i32 : i32 to vector<8x1xi32>
    %67 = arith.subi %0, %66 : vector<8x1xi32>
    %68 = vector.broadcast %67 : vector<8x1xi32> to vector<8x128xi32>
    %69 = arith.cmpi eq, %1, %68 : vector<8x128xi32>
    %70 = arith.extui %69 : vector<8x128xi1> to vector<8x128xi32>
    %71 = arith.sitofp %70 : vector<8x128xi32> to vector<8x128xf32>
    %c896 = arith.constant 896 : index
    %c0_16 = arith.constant 0 : index
    %72 = vector.load %arg3[%c896, %c0_16] : memref<1024x128xf32, #tpu.memory_space<vmem>>, vector<128x128xf32>
    %cst_17 = arith.constant dense<0.000000e+00> : vector<8x128xf32>
    %73 = tpu.matmul %71, %72, %cst_17 {dimension_numbers = #tpu.dot_dimension_numbers<[1], [0], [0], [1], [0, 0, 1, 1], [], []>, precision = #tpu.contract_precision<fp32>} : vector<8x128xf32>, vector<128x128xf32>, vector<8x128xf32> -> vector<8x128xf32>
    %74 = arith.addf %65, %73 : vector<8x128xf32>
    %c0_18 = arith.constant 0 : index
    %c0_19 = arith.constant 0 : index
    %75 = vector.load %arg4[%c0_18, %c0_19] : memref<8x128xf32, #tpu.memory_space<vmem>>, vector<8x128xf32>
    tpu.vector_store %arg4[%c0_18, %c0_19], %74 {strides = array<i32>} : memref<8x128xf32, #tpu.memory_space<vmem>>, vector<8x128xf32>,
    return
  }
  func.func @transform_0(%arg0: i32, %arg1: i32) -> (i32, i32) {
    %c0_i32 = arith.constant 0 : i32
    %c0_i32_0 = arith.constant 0 : i32
    return %arg1, %c0_i32 : i32, i32
  }
  func.func @transform_1(%arg0: i32, %arg1: i32) -> (i32, i32) {
    %c0_i32 = arith.constant 0 : i32
    %c0_i32_0 = arith.constant 0 : i32
    return %c0_i32, %arg0 : i32, i32
  }
  func.func @transform_2(%arg0: i32, %arg1: i32) -> (i32, i32) {
    %c0_i32 = arith.constant 0 : i32
    return %arg1, %arg0 : i32, i32
  }
}

</mosaic_0001>

<bundles_post_ra>
// kernel: tpu_custom_call.1
= control target key start
LH: loop header
LB: loop body
LE: loop exit
PB: predicated region body
PF: predicated region fallthrough
CT: control target
= control target key end

     0   :  { %7 = vsyncpa [#allocation3], 0  ;;  %s11061_s0 = inlined_call_operand.vmem [shape: s32[8,1], index: 0, kind: input, shape index: {}]   ;;  %s11062_s1 = inlined_call_operand.hbm [shape: f32[1024,128], index: 1, kind: input, shape index: {}]   ;;  %s11063_s2 = inlined_call_operand.hbm [shape: f32[8,128], index: 2, kind: output, shape index: {}]  }
   0x1   :  { %8 = vsyncpa [#allocation4], 0  ;;  %s7951_s9 = smov [#allocation2]  }
   0x2   :  { %s16_s10 = sshll.u32 %s7951_s9, 4  ;;  %s17_s10 = int_to_ptr.vmem [resolvable:$true] %s16_s10 }
   0x3   :  { %s7915_s11 = scalar_lea.vmem %s17_s10, 16384  ;;  %p7920_p1 = scmp.lt.s32.totalorder %s17_s10, %s17_s10 }
   0x4   :  { %p7916_p0 = scmp.ne.s32.totalorder %s17_s10, %s7915_s11  ;;  %p7921_p2 = scmp.lt.s32.totalorder %s7915_s11, %s7915_s11 }
   0x6   :  { %p7922_p3 = por %p7921_p2, %p7920_p1 }
   0x8   :  { %p7923_p4 = pnand %p7922_p3, %p7916_p0 }
   0xa   :  { %7926 = shalt.err (!%p7923_p4)
}
   0xb   :  { %s7952_s12 = smov 128   ;;  %s7953_s13 = smov 8  }
   0xc   :  { %22 = dma.hbm_to_vmem [thread:$0]  %s11062_s1, 16384, %s17_s10, [#allocation3], %s7952_s12, %s7952_s12, %s7953_s13  }
   0xd   :  { %7947 = dma.done.wait [#allocation3], 16384  }
   0xe   :  { %7948 = vsyncadd [#allocation3], 4294950912  ;;  %v7954_v0 = vmov 0   ;;  %v7955_v1 = vmov 0.0   ;;  %vm7956_vm0 = vmmov 0   ;;  %v7986_v2 = vld [vmem:[%s11061_s0] sm:$0xff] }
   0xf   :  { %7905 = vset.pattern.permute.xlu0 %v7954_v0  ;;  %6252 = vmatprep.subr.mxu1 %v7955_v1  ;;  %v73_v3 = vld [vmem:[#allocation2 + $0xf8] sm:$0xff]  ;;  %v72_v4 = vld [vmem:[#allocation2 + $0xf0] sm:$0xff]  ;;  %v5363_v5 = vadd.s32 4294967168, %v7986_v2  ;;  %v71_v7 = vld [vmem:[#allocation2 + $0xe8] sm:$0xff]  ;;  %v5381_v31 = vadd.s32 4294966784, %v7986_v2  ;;  %v5391_v46 = vadd.s32 4294966528, %v7986_v2 }
  0x10   :  { %6217 = vmatprep.subr.mxu0 %v7955_v1  ;;  %7906 = vset.pattern.permute.xlu1 %v7954_v0  ;;  %v7989_v6 = vand.u32 4294901760, %v73_v3  ;;  %v70_v8 = vld [vmem:[#allocation2 + $0xe0] sm:$0xff]  ;;  %v7991_v9 = vand.u32 4294901760, %v72_v4  ;;  %v7993_v10 = vand.u32 4294901760, %v71_v7  ;;  %v69_v12 = vld [vmem:[#allocation2 + $0xd8] sm:$0xff]  ;;  %v68_v13 = vld [vmem:[#allocation2 + $0xd0] sm:$0xff] }
  0x11   :  { %6284 = vmatprep.mubr.msk.f32.mxu1 %vm7956_vm0, %v7955_v1  ;;  %6249 = vmatprep.mubr.msk.f32.mxu0 %vm7956_vm0, %v7955_v1  ;;  %v7995_v11 = vand.u32 4294901760, %v70_v8  ;;  %v67_v14 = vld [vmem:[#allocation2 + $0xc8] sm:$0xff]  ;;  %v8000_v16 = vand.u32 4294901760, %v69_v12  ;;  %v8003_v17 = vand.u32 4294901760, %v68_v13  ;;  %v66_v19 = vld [vmem:[#allocation2 + $0xc0] sm:$0xff]  ;;  %v65_v37 = vld [vmem:[#allocation2 + $0xb8] sm:$0xff] }
  0x12   :  { %53 = vperm.xlu0 %7905, %v5363_v5   ;;  %v7998_v15 = vsub.f32 %v73_v3, %v7989_v6  ;;  %6218 = vmatpush3.msra.mxu0 %v7989_v6  ;;  %v8005_v18 = vand.u32 4294901760, %v67_v14  ;;  %v8008_v20 = vsub.f32 %v72_v4, %v7991_v9  ;;  %v8011_v21 = vsub.f32 %v71_v7, %v7993_v10  ;;  %v64_v41 = vld [vmem:[#allocation2 + $0xb0] sm:$0xff]  ;;  %v63_v42 = vld [vmem:[#allocation2 + $0xa8] sm:$0xff]  ;;  %v62_v45 = vld [vmem:[#allocation2 + $0xa0] sm:$0xff]  ;;  %s7958_s0 = smov [#allocation5]  }
  0x13   :  { %v8014_v22 = vsub.f32 %v70_v8, %v7995_v11  ;;  %6219 = vmatprep.subr.mxu0 %v7955_v1  ;;  %v8017_v23 = vand.u32 4294901760, %v66_v19  ;;  %v8021_v25 = vsub.f32 %v69_v12, %v8000_v16  ;;  %v8024_v26 = vsub.f32 %v68_v13, %v8003_v17  ;;  %v61_v53 = vld [vmem:[#allocation2 + $0x98] sm:$0xff]  ;;  %v60_v60 = vld [vmem:[#allocation2 + $0x90] sm:$0xff]  ;;  %v59_v4 = vld [vmem:[#allocation2 + $0x88] sm:$0xff]  ;;  %s5353_s1 = sshll.u32 %s7958_s0, 4  ;;  %s5354_s1 = int_to_ptr.vmem [resolvable:$true] %s5353_s1 }
  0x14   :  { %v168_v24 = vand.u32 4294901760, %v7998_v15  ;;  %6220 = vmatpush3.msra.mxu0 %v7991_v9  ;;  %v175_v27 = vand.u32 4294901760, %v8008_v20  ;;  %v182_v28 = vand.u32 4294901760, %v8011_v21  ;;  %v8032_v30 = vsub.f32 %v67_v14, %v8005_v18  ;;  %v58_v14 = vld [vmem:[#allocation2 + $0x80] sm:$0xff]  ;;  %s7927_s18 = scalar_lea.vmem %s5354_s1, 128  ;;  %p7932_p6 = scmp.lt.s32.totalorder %s5354_s1, %s5354_s1 }
  0x15   :  { %v189_v29 = vand.u32 4294901760, %v8014_v22  ;;  %6221 = vmatprep.subr.mxu0 %v7955_v1  ;;  %v196_v33 = vand.u32 4294901760, %v8021_v25  ;;  %v8049_v36 = vsub.f32 %v66_v19, %v8017_v23  ;;  %v203_v40 = vand.u32 4294901760, %v8024_v26  ;;  %p7928_p5 = scmp.ne.s32.totalorder %s5354_s1, %s7927_s18  ;;  %p7933_p7 = scmp.lt.s32.totalorder %s7927_s18, %s7927_s18 }
  0x16   :  { %30 = vperm.xlu0 %7905, %v7986_v2   ;;  %v169_v32 = vsub.f32 %v7998_v15, %v168_v24  ;;  %6222 = vmatpush3.msra.mxu0 %v7993_v10  ;;  %v176_v34 = vsub.f32 %v8008_v20, %v175_v27  ;;  %v183_v35 = vsub.f32 %v8011_v21, %v182_v28  ;;  %v210_v44 = vand.u32 4294901760, %v8032_v30 }
  0x17   :  { %6223 = vmatprep.subr.mxu0 %v7955_v1  ;;  %v190_v39 = vsub.f32 %v8014_v22, %v189_v29  ;;  %v197_v48 = vsub.f32 %v8021_v25, %v196_v33  ;;  %v8062_v49 = vand.u32 4294901760, %v65_v37  ;;  %v217_v50 = vand.u32 4294901760, %v8049_v36  ;;  %p7934_p8 = por %p7933_p7, %p7932_p6 }
  0x18   :  { %v170_v38 = vand.u32 4294901760, %v169_v32  ;;  %6224 = vmatpush3.msra.mxu0 %v7995_v11  ;;  %v177_v43 = vand.u32 4294901760, %v176_v34  ;;  %v184_v47 = vand.u32 4294901760, %v183_v35  ;;  %v8067_v51 = vand.u32 4294901760, %v64_v41 }
  0x19   :  { %6225 = vmatprep.subr.mxu0 %v7955_v1  ;;  %v8069_v52 = vand.u32 4294901760, %v63_v42  ;;  %v191_v54 = vand.u32 4294901760, %v190_v39  ;;  %v204_v55 = vsub.f32 %v8024_v26, %v203_v40  ;;  %v8075_v56 = vsub.f32 %v65_v37, %v8062_v49  ;;  %p7935_p9 = pnand %p7934_p8, %p7928_p5 }
  0x1a   :  { %2688 = vperm.xlu0 %7905, %v5381_v31   ;;  %6253 = vmatpush3.msra.mxu1 %v170_v38  ;;  %v8078_v57 = vand.u32 4294901760, %v62_v45  ;;  %v211_v58 = vsub.f32 %v8032_v30, %v210_v44  ;;  %v8085_v59 = vsub.f32 %v64_v41, %v8067_v51  ;;  %v198_v61 = vand.u32 4294901760, %v197_v48 }
  0x1b   :  { %6254 = vmatprep.subr.mxu1 %v7955_v1  ;;  %6226 = vmatpush3.msra.mxu0 %v8000_v16  ;;  %v224_v62 = vand.u32 4294901760, %v8075_v56  ;;  %v8090_v63 = vsub.f32 %v63_v42, %v8069_v52  ;;  %v8092_v0 = vand.u32 4294901760, %v61_v53  ;;  %v218_v3 = vsub.f32 %v8049_v36, %v217_v50 }
  0x1c   :  { %6255 = vmatpush3.msra.mxu1 %v177_v43  ;;  %6227 = vmatprep.subr.mxu0 %v7955_v1  ;;  %v205_v5 = vand.u32 4294901760, %v204_v55  ;;  %v231_v7 = vand.u32 4294901760, %v8085_v59  ;;  %v8102_v8 = vsub.f32 %v62_v45, %v8078_v57  ;;  %v8104_v12 = vand.u32 4294901760, %v60_v60 }
  0x1d   :  { %6256 = vmatprep.subr.mxu1 %v7955_v1  ;;  %6228 = vmatpush3.msra.mxu0 %v8003_v17  ;;  %v212_v13 = vand.u32 4294901760, %v211_v58  ;;  %v225_v19 = vsub.f32 %v8075_v56, %v224_v62  ;;  %v238_v31 = vand.u32 4294901760, %v8090_v63  ;;  %v8114_v32 = vsub.f32 %v61_v53, %v8092_v0 }
  0x1e   :  { %4018 = vperm.xlu0 %7905, %v5391_v46   ;;  %6257 = vmatpush3.msra.mxu1 %v184_v47  ;;  %v8116_v34 = vand.u32 4294901760, %v59_v4  ;;  %v219_v35 = vand.u32 4294901760, %v218_v3  ;;  %v232_v37 = vsub.f32 %v8085_v59, %v231_v7  ;;  %v245_v38 = vand.u32 4294901760, %v8102_v8 }
  0x1f   :  { %6258 = vmatprep.subr.mxu1 %v7955_v1  ;;  %6229 = vmatprep.subr.mxu0 %v7955_v1  ;;  %v8126_v39 = vsub.f32 %v60_v60, %v8104_v12  ;;  %v8128_v41 = vand.u32 4294901760, %v58_v14  ;;  %v226_v42 = vand.u32 4294901760, %v225_v19  ;;  %v239_v43 = vsub.f32 %v8090_v63, %v238_v31 }
  0x20   :  { %6259 = vmatpush3.msra.mxu1 %v191_v54  ;;  %6230 = vmatpush3.msra.mxu0 %v8005_v18  ;;  %v252_v45 = vand.u32 4294901760, %v8114_v32  ;;  %v8138_v46 = vsub.f32 %v59_v4, %v8116_v34  ;;  %v233_v47 = vand.u32 4294901760, %v232_v37  ;;  %v246_v48 = vsub.f32 %v8102_v8, %v245_v38 }
  0x21   :  { %6260 = vmatprep.subr.mxu1 %v7955_v1  ;;  %6231 = vmatprep.subr.mxu0 %v7955_v1  ;;  %v259_v53 = vand.u32 4294901760, %v8126_v39  ;;  %v8148_v54 = vsub.f32 %v58_v14, %v8128_v41  ;;  %v240_v55 = vand.u32 4294901760, %v239_v43  ;;  %v5376_v43 = vadd.s32 4294966912, %v7986_v2 }
  0x22   :  { %6261 = vmatpush3.msra.mxu1 %v198_v61  ;;  %6232 = vmatpush3.msra.mxu0 %v8017_v23  ;;  %v253_v58 = vsub.f32 %v8114_v32, %v252_v45  ;;  %v266_v60 = vand.u32 4294901760, %v8138_v46  ;;  %v247_v61 = vand.u32 4294901760, %v246_v48  ;;  %v5396_v48 = vadd.s32 4294966400, %v7986_v2 }
  0x23   :  { %6262 = vmatprep.subr.mxu1 %v7955_v1  ;;  %6233 = vmatprep.subr.mxu0 %v7955_v1  ;;  %v260_v3 = vsub.f32 %v8126_v39, %v259_v53  ;;  %v273_v4 = vand.u32 4294901760, %v8148_v54 }
  0x24   :  { %6263 = vmatpush3.msra.mxu1 %v205_v5  ;;  %6234 = vmatpush3.msra.mxu0 %v8062_v49  ;;  %v254_v5 = vand.u32 4294901760, %v253_v58 }
  0x25   :  { %6264 = vmatprep.subr.mxu1 %v7955_v1  ;;  %6235 = vmatprep.subr.mxu0 %v7955_v1  ;;  %v261_v14 = vand.u32 4294901760, %v260_v3  ;;  %v274_v19 = vsub.f32 %v8148_v54, %v273_v4 }
  0x26   :  { %6265 = vmatpush3.msra.mxu1 %v212_v13  ;;  %6236 = vmatpush3.msra.mxu0 %v8067_v51  ;;  %v267_v13 = vsub.f32 %v8138_v46, %v266_v60 }
  0x27   :  { %6266 = vmatprep.subr.mxu1 %v7955_v1  ;;  %6237 = vmatprep.subr.mxu0 %v7955_v1  ;;  %v275_v37 = vand.u32 4294901760, %v274_v19 }
  0x28   :  { %6267 = vmatpush3.msra.mxu1 %v219_v35  ;;  %6238 = vmatpush3.msra.mxu0 %v8069_v52  ;;  %v268_v35 = vand.u32 4294901760, %v267_v13 }
  0x29   :  { %6268 = vmatprep.subr.mxu1 %v7955_v1  ;;  %6239 = vmatprep.subr.mxu0 %v7955_v1 }
  0x2a   :  { %6269 = vmatpush3.msra.mxu1 %v226_v42  ;;  %6240 = vmatpush3.msra.mxu0 %v8078_v57  ;;  %v5371_v42 = vadd.s32 4294967040, %v7986_v2 }
  0x2b   :  { %6270 = vmatprep.subr.mxu1 %v7955_v1  ;;  %6241 = vmatprep.subr.mxu0 %v7955_v1 }
  0x2c   :  { %6271 = vmatpush3.msra.mxu1 %v233_v47  ;;  %6242 = vmatpush3.msra.mxu0 %v8092_v0  ;;  %v5386_v47 = vadd.s32 4294966656, %v7986_v2 }
  0x2d   :  { %6272 = vmatprep.subr.mxu1 %v7955_v1  ;;  %6243 = vmatprep.subr.mxu0 %v7955_v1 }
  0x2e   :  { %6273 = vmatpush3.msra.mxu1 %v240_v55  ;;  %6244 = vmatpush3.msra.mxu0 %v8104_v12  ;;  %v27_v55 = vlaneseq }
  0x2f   :  { %6274 = vmatprep.subr.mxu1 %v7955_v1  ;;  %6245 = vmatprep.subr.mxu0 %v7955_v1 }
  0x30   :  { %6275 = vmatpush3.msra.mxu1 %v247_v61  ;;  %6246 = vmatpush3.msra.mxu0 %v8116_v34  ;;  %v8188_v58 = vand.u32 127, %v27_v55 }
  0x31   :  { %6276 = vmatprep.subr.mxu1 %v7955_v1  ;;  %6247 = vmatprep.subr.mxu0 %v7955_v1 }
  0x32   :  { %6277 = vmatpush3.msra.mxu1 %v254_v5  ;;  %6248 = vmatpush3.msra.mxu0 %v8128_v41  ;;  %v7957_v5 = vmov 1.0  }
  0x33   :  { %6278 = vmatprep.subr.mxu1 %v7955_v1  ;;  %6287 = vmatprep.subr.mxu0 %v7955_v1 }
  0x34   :  { %6279 = vmatpush3.msra.mxu1 %v261_v14  ;;  %1358 = vperm.xlu1 %7906, %v5371_v42  }
  0x35   :  { %6280 = vmatprep.subr.mxu1 %v7955_v1 }
  0x36   :  { %6281 = vmatpush3.msra.mxu1 %v268_v35  ;;  %v40_v35 = vld [vmem:[#allocation2 + $0x28] sm:$0xff] }
  0x37   :  { %6282 = vmatprep.subr.mxu1 %v7955_v1  ;;  %v8422_v55 = vand.u32 4294901760, %v40_v35 }
  0x38   :  { %6283 = vmatpush3.msra.mxu1 %v275_v37  ;;  %2023 = vperm.xlu1 %7906, %v5376_v43   ;;  %v39_v43 = vld [vmem:[#allocation2 + $0x20] sm:$0xff] }
  0x39   :  { %6322 = vmatprep.subr.mxu1 %v7955_v1 }
  0x3c   :  { %3353 = vperm.xlu1 %7906, %v5386_v47  }
  0x40   :  { %4683 = vperm.xlu1 %7906, %v5396_v48  }
  0x8d   :  { %v8190_v61 = vpop.permute.xlu0 %53 }
  0x8e   :  { %vm55_vm1 = vcmp.eq.s32.totalorder %v8188_v58, %v8190_v61 }
  0x8f   :  { %v5364_v3 = vsel %vm55_vm1, 1.0, %v7955_v1  ;;  %6285 = vmatmul.mubr.msk.f32.vlgmr.msra.gmra.mxu1 %vm55_vm1, %v7957_v5 }
  0x90   :  { %v8202_v2 = vsub.f32 %v5364_v3, %v5364_v3  ;;  %6323 = vmatpush3.msra.mxu1 %v7989_v6  ;;  %6354 = vmatprep.mubr.msk.f32.mxu1 %vm7956_vm0, %v7955_v1  ;;  %v38_v3 = vld [vmem:[#allocation2 + $0x18] sm:$0xff] }
  0x91   :  { %6324 = vmatprep.subr.mxu1 %v7955_v1 }
  0x92   :  { %6325 = vmatpush3.msra.mxu1 %v7991_v9  ;;  %v157_v13 = vand.u32 4294901760, %v8202_v2 }
  0x93   :  { %6326 = vmatprep.subr.mxu1 %v7955_v1 }
  0x94   :  { %6327 = vmatpush3.msra.mxu1 %v7993_v10  ;;  %v158_v14 = vsub.f32 %v8202_v2, %v157_v13 }
  0x95   :  { %6328 = vmatprep.subr.mxu1 %v7955_v1 }
  0x96   :  { %6329 = vmatpush3.msra.mxu1 %v7995_v11  ;;  %v159_v19 = vand.u32 4294901760, %v158_v14  ;;  %v8435_v14 = vand.u32 4294901760, %v39_v43 }
  0x97   :  { %6330 = vmatprep.subr.mxu1 %v7955_v1 }
  0x98   :  { %6331 = vmatpush3.msra.mxu1 %v8000_v16  ;;  %6250 = vmatmul.mubr.f32.vlgmr.msra.gmra.mxu0 %v159_v19 }
  0x99   :  { %6288 = vmatpush3.msra.mxu0 %v7998_v15  ;;  %6332 = vmatprep.subr.mxu1 %v7955_v1 }
  0x9a   :  { %6289 = vmatprep.subr.mxu0 %v7955_v1  ;;  %6333 = vmatpush3.msra.mxu1 %v8003_v17 }
  0x9b   :  { %6290 = vmatpush3.msra.mxu0 %v8008_v20  ;;  %6334 = vmatprep.subr.mxu1 %v7955_v1 }
  0x9c   :  { %6291 = vmatprep.subr.mxu0 %v7955_v1  ;;  %6335 = vmatpush3.msra.mxu1 %v8005_v18 }
  0x9d   :  { %6292 = vmatpush3.msra.mxu0 %v8011_v21  ;;  %6336 = vmatprep.subr.mxu1 %v7955_v1 }
  0x9e   :  { %6293 = vmatprep.subr.mxu0 %v7955_v1  ;;  %6337 = vmatpush3.msra.mxu1 %v8017_v23 }
  0x9f   :  { %6294 = vmatpush3.msra.mxu0 %v8014_v22  ;;  %6338 = vmatprep.subr.mxu1 %v7955_v1  ;;  %v46_v22 = vld [vmem:[#allocation2 + $0x58] sm:$0xff] }
  0xa0   :  { %6295 = vmatprep.subr.mxu0 %v7955_v1  ;;  %6339 = vmatpush3.msra.mxu1 %v8062_v49 }
  0xa1   :  { %6296 = vmatpush3.msra.mxu0 %v8021_v25  ;;  %6340 = vmatprep.subr.mxu1 %v7955_v1  ;;  %v45_v25 = vld [vmem:[#allocation2 + $0x50] sm:$0xff] }
  0xa2   :  { %6297 = vmatprep.subr.mxu0 %v7955_v1  ;;  %6341 = vmatpush3.msra.mxu1 %v8067_v51 }
  0xa3   :  { %6298 = vmatpush3.msra.mxu0 %v8024_v26  ;;  %6342 = vmatprep.subr.mxu1 %v7955_v1  ;;  %v8339_v26 = vand.u32 4294901760, %v46_v22 }
  0xa4   :  { %6299 = vmatprep.subr.mxu0 %v7955_v1  ;;  %6343 = vmatpush3.msra.mxu1 %v8069_v52 }
  0xa5   :  { %6300 = vmatpush3.msra.mxu0 %v8032_v30  ;;  %6344 = vmatprep.subr.mxu1 %v7955_v1  ;;  %v8350_v30 = vand.u32 4294901760, %v45_v25 }
  0xa6   :  { %6301 = vmatprep.subr.mxu0 %v7955_v1  ;;  %6345 = vmatpush3.msra.mxu1 %v8078_v57 }
  0xa7   :  { %6302 = vmatpush3.msra.mxu0 %v8049_v36  ;;  %6346 = vmatprep.subr.mxu1 %v7955_v1 }
  0xa8   :  { %6303 = vmatprep.subr.mxu0 %v7955_v1  ;;  %6347 = vmatpush3.msra.mxu1 %v8092_v0 }
  0xa9   :  { %6304 = vmatpush3.msra.mxu0 %v8075_v56  ;;  %6348 = vmatprep.subr.mxu1 %v7955_v1  ;;  %v42_v56 = vld [vmem:[#allocation2 + $0x38] sm:$0xff] }
  0xaa   :  { %6305 = vmatprep.subr.mxu0 %v7955_v1  ;;  %6349 = vmatpush3.msra.mxu1 %v8104_v12 }
  0xab   :  { %6306 = vmatpush3.msra.mxu0 %v8085_v59  ;;  %6350 = vmatprep.subr.mxu1 %v7955_v1 }
  0xac   :  { %6307 = vmatprep.subr.mxu0 %v7955_v1  ;;  %6351 = vmatpush3.msra.mxu1 %v8116_v34 }
  0xad   :  { %6308 = vmatpush3.msra.mxu0 %v8090_v63  ;;  %6352 = vmatprep.subr.mxu1 %v7955_v1 }
  0xae   :  { %6309 = vmatprep.subr.mxu0 %v7955_v1  ;;  %6353 = vmatpush3.msra.mxu1 %v8128_v41 }
  0xaf   :  { %6310 = vmatpush3.msra.mxu0 %v8102_v8  ;;  %6355 = vmatmul.mubr.f32.vlgmr.msra.gmra.mxu1 %v157_v13 }
  0xb0   :  { %6392 = vmatprep.subr.mxu1 %v7955_v1  ;;  %6311 = vmatprep.subr.mxu0 %v7955_v1 }
  0xb1   :  { %6393 = vmatpush3.msra.mxu1 %v7989_v6  ;;  %6312 = vmatpush3.msra.mxu0 %v8114_v32  ;;  %v50_v6 = vld [vmem:[#allocation2 + $0x78] sm:$0xff] }
  0xb2   :  { %6394 = vmatprep.subr.mxu1 %v7955_v1  ;;  %6313 = vmatprep.subr.mxu0 %v7955_v1 }
  0xb3   :  { %6395 = vmatpush3.msra.mxu1 %v7991_v9  ;;  %6314 = vmatpush3.msra.mxu0 %v8126_v39  ;;  %v49_v9 = vld [vmem:[#allocation2 + $0x70] sm:$0xff] }
  0xb4   :  { %6396 = vmatprep.subr.mxu1 %v7955_v1  ;;  %6315 = vmatprep.subr.mxu0 %v7955_v1  ;;  %v8305_v15 = vand.u32 4294901760, %v49_v9 }
  0xb5   :  { %6397 = vmatpush3.msra.mxu1 %v7993_v10  ;;  %6316 = vmatpush3.msra.mxu0 %v8138_v46  ;;  %v8298_v10 = vand.u32 4294901760, %v50_v6 }
  0xb6   :  { %6398 = vmatprep.subr.mxu1 %v7955_v1  ;;  %6317 = vmatprep.subr.mxu0 %v7955_v1  ;;  %v8323_v20 = vsub.f32 %v49_v9, %v8305_v15  ;;  %v8446_v9 = vsub.f32 %v40_v35, %v8422_v55 }
  0xb7   :  { %6399 = vmatpush3.msra.mxu1 %v7995_v11  ;;  %6318 = vmatpush3.msra.mxu0 %v8148_v54  ;;  %v48_v11 = vld [vmem:[#allocation2 + $0x68] sm:$0xff] }
  0xb8   :  { %6319 = vmatprep.mubr.msk.f32.mxu0 %vm7956_vm0, %v7955_v1  ;;  %6400 = vmatprep.subr.mxu1 %v7955_v1 }
  0xb9   :  { %6320 = vmatmul.mubr.f32.vlgmr.msra.gmra.mxu0 %v8202_v2  ;;  %6357 = vmatprep.subr.mxu0 %v7955_v1 }
  0xba   :  { %6401 = vmatpush3.msra.mxu1 %v8000_v16  ;;  %6358 = vmatpush3.msra.mxu0 %v168_v24  ;;  %v47_v16 = vld [vmem:[#allocation2 + $0x60] sm:$0xff] }
  0xbb   :  { %6402 = vmatprep.subr.mxu1 %v7955_v1  ;;  %6359 = vmatprep.subr.mxu0 %v7955_v1  ;;  %v8325_v21 = vand.u32 4294901760, %v47_v16 }
  0xbc   :  { %6403 = vmatpush3.msra.mxu1 %v8003_v17  ;;  %6360 = vmatpush3.msra.mxu0 %v175_v27  ;;  %v8313_v17 = vsub.f32 %v50_v6, %v8298_v10  ;;  %v44_v27 = vld [vmem:[#allocation2 + $0x48] sm:$0xff] }
  0xbd   :  { %6404 = vmatprep.subr.mxu1 %v7955_v1  ;;  %6361 = vmatprep.subr.mxu0 %v7955_v1 }
  0xbe   :  { %6405 = vmatpush3.msra.mxu1 %v8005_v18  ;;  %6362 = vmatpush3.msra.mxu0 %v182_v28  ;;  %v8315_v18 = vand.u32 4294901760, %v48_v11  ;;  %v816_v28 = vand.u32 4294901760, %v8323_v20 }
  0xbf   :  { %6406 = vmatprep.subr.mxu1 %v7955_v1  ;;  %6363 = vmatprep.subr.mxu0 %v7955_v1 }
  0xc0   :  { %6407 = vmatpush3.msra.mxu1 %v8017_v23  ;;  %6364 = vmatpush3.msra.mxu0 %v189_v29  ;;  %v809_v23 = vand.u32 4294901760, %v8313_v17  ;;  %v8334_v24 = vsub.f32 %v48_v11, %v8315_v18  ;;  %v8345_v29 = vsub.f32 %v47_v16, %v8325_v21  ;;  %v8448_v11 = vand.u32 4294901760, %v38_v3 }
  0xc1   :  { %6408 = vmatprep.subr.mxu1 %v7955_v1  ;;  %6365 = vmatprep.subr.mxu0 %v7955_v1 }
  0xc2   :  { %6409 = vmatpush3.msra.mxu1 %v8062_v49  ;;  %6366 = vmatpush3.msra.mxu0 %v196_v33  ;;  %v43_v33 = vld [vmem:[#allocation2 + $0x40] sm:$0xff]  ;;  %v810_v36 = vsub.f32 %v8313_v17, %v809_v23  ;;  %v8364_v49 = vsub.f32 %v46_v22, %v8339_v26 }
  0xc3   :  { %6410 = vmatprep.subr.mxu1 %v7955_v1  ;;  %6367 = vmatprep.subr.mxu0 %v7955_v1 }
  0xc4   :  { %6411 = vmatpush3.msra.mxu1 %v8067_v51  ;;  %6368 = vmatpush3.msra.mxu0 %v203_v40  ;;  %v823_v40 = vand.u32 4294901760, %v8334_v24  ;;  %v830_v51 = vand.u32 4294901760, %v8345_v29  ;;  %v811_v59 = vand.u32 4294901760, %v810_v36  ;;  %v837_v63 = vand.u32 4294901760, %v8364_v49 }
  0xc5   :  { %6412 = vmatprep.subr.mxu1 %v7955_v1  ;;  %6369 = vmatprep.subr.mxu0 %v7955_v1  ;;  %v879_v36 = vand.u32 4294901760, %v8446_v9 }
  0xc6   :  { %6413 = vmatpush3.msra.mxu1 %v8069_v52  ;;  %6370 = vmatpush3.msra.mxu0 %v210_v44  ;;  %v8358_v44 = vand.u32 4294901760, %v44_v27  ;;  %v8372_v52 = vand.u32 4294901760, %v43_v33  ;;  %v838_v47 = vsub.f32 %v8364_v49, %v837_v63 }
  0xc7   :  { %6414 = vmatprep.subr.mxu1 %v7955_v1  ;;  %6371 = vmatprep.subr.mxu0 %v7955_v1  ;;  %v880_v35 = vsub.f32 %v8446_v9, %v879_v36 }
  0xc8   :  { %6415 = vmatpush3.msra.mxu1 %v8078_v57  ;;  %6372 = vmatpush3.msra.mxu0 %v217_v50  ;;  %v817_v50 = vsub.f32 %v8323_v20, %v816_v28  ;;  %v8378_v57 = vsub.f32 %v45_v25, %v8350_v30  ;;  %v839_v19 = vand.u32 4294901760, %v838_v47  ;;  %v8460_v25 = vsub.f32 %v39_v43, %v8435_v14 }
  0xc9   :  { %6416 = vmatprep.subr.mxu1 %v7955_v1  ;;  %6373 = vmatprep.subr.mxu0 %v7955_v1 }
  0xca   :  { %6417 = vmatpush3.msra.mxu1 %v8092_v0  ;;  %6374 = vmatpush3.msra.mxu0 %v224_v62  ;;  %v824_v62 = vsub.f32 %v8334_v24, %v823_v40  ;;  %v8386_v0 = vsub.f32 %v44_v27, %v8358_v44  ;;  %v844_v8 = vand.u32 4294901760, %v8378_v57 }
  0xcb   :  { %6418 = vmatprep.subr.mxu1 %v7955_v1  ;;  %6375 = vmatprep.subr.mxu0 %v7955_v1 }
  0xcc   :  { %6419 = vmatpush3.msra.mxu1 %v8104_v12  ;;  %6376 = vmatpush3.msra.mxu0 %v231_v7  ;;  %v41_v7 = vld [vmem:[#allocation2 + $0x30] sm:$0xff]  ;;  %v8392_v12 = vand.u32 4294901760, %v42_v56  ;;  %v825_v37 = vand.u32 4294901760, %v824_v62  ;;  %v851_v42 = vand.u32 4294901760, %v8386_v0  ;;  %v845_v2 = vsub.f32 %v8378_v57, %v844_v8 }
  0xcd   :  { %6420 = vmatprep.subr.mxu1 %v7955_v1  ;;  %6377 = vmatprep.subr.mxu0 %v7955_v1  ;;  %v886_v62 = vand.u32 4294901760, %v8460_v25 }
  0xce   :  { %6421 = vmatpush3.msra.mxu1 %v8116_v34  ;;  %6378 = vmatpush3.msra.mxu0 %v238_v31  ;;  %v818_v31 = vand.u32 4294901760, %v817_v50  ;;  %v831_v34 = vsub.f32 %v8345_v29, %v830_v51  ;;  %v8420_v48 = vsub.f32 %v42_v56, %v8392_v12  ;;  %v852_v39 = vsub.f32 %v8386_v0, %v851_v42 }
  0xcf   :  { %6422 = vmatprep.subr.mxu1 %v7955_v1  ;;  %6379 = vmatprep.subr.mxu0 %v7955_v1  ;;  %v846_v16 = vand.u32 4294901760, %v845_v2  ;;  %v8475_v50 = vsub.f32 %v38_v3, %v8448_v11 }
  0xd0   :  { %6423 = vmatpush3.msra.mxu1 %v8128_v41  ;;  %6424 = vmatprep.mubr.msk.f32.mxu1 %vm7956_vm0, %v7955_v1  ;;  %v8404_v41 = vsub.f32 %v43_v33, %v8372_v52  ;;  %v832_v32 = vand.u32 4294901760, %v831_v34  ;;  %v865_v6 = vand.u32 4294901760, %v8420_v48  ;;  %v853_v54 = vand.u32 4294901760, %v852_v39 }
  0xd1   :  { %6380 = vmatpush3.msra.mxu0 %v245_v38  ;;  %6425 = vmatmul.mubr.msk.f32.vlgmr.msra.gmra.mxu1 %vm55_vm1, %v7957_v5  ;;  %v8409_v38 = vand.u32 4294901760, %v41_v7  ;;  %v881_v39 = vand.u32 4294901760, %v880_v35 }
  0xd2   :  { %6462 = vmatprep.subr.mxu1 %v7955_v1  ;;  %6381 = vmatprep.subr.mxu0 %v7955_v1  ;;  %v866_v33 = vsub.f32 %v8420_v48, %v865_v6 }
  0xd3   :  { %6463 = vmatpush3.msra.mxu1 %v811_v59  ;;  %6382 = vmatpush3.msra.mxu0 %v252_v45  ;;  %v858_v45 = vand.u32 4294901760, %v8404_v41  ;;  %v8433_v13 = vsub.f32 %v41_v7, %v8409_v38 }
  0xd4   :  { %6464 = vmatprep.subr.mxu1 %v7955_v1  ;;  %6383 = vmatprep.subr.mxu0 %v7955_v1  ;;  %v867_v34 = vand.u32 4294901760, %v866_v33 }
  0xd5   :  { %6465 = vmatpush3.msra.mxu1 %v818_v31  ;;  %6384 = vmatpush3.msra.mxu0 %v259_v53  ;;  %v37_v53 = vld [vmem:[#allocation2 + $0x10] sm:$0xff]  ;;  %v859_v46 = vsub.f32 %v8404_v41, %v858_v45  ;;  %v872_v22 = vand.u32 4294901760, %v8433_v13 }
  0xd6   :  { %6466 = vmatprep.subr.mxu1 %v7955_v1  ;;  %6385 = vmatprep.subr.mxu0 %v7955_v1  ;;  %v8462_v27 = vand.u32 4294901760, %v37_v53 }
  0xd7   :  { %6467 = vmatpush3.msra.mxu1 %v825_v37  ;;  %6386 = vmatpush3.msra.mxu0 %v266_v60  ;;  %v36_v60 = vld [vmem:[#allocation2 + $0x8] sm:$0xff]  ;;  %v860_v61 = vand.u32 4294901760, %v859_v46  ;;  %v873_v59 = vsub.f32 %v8433_v13, %v872_v22  ;;  %v893_v37 = vand.u32 4294901760, %v8475_v50  ;;  %v8520_v46 = vpop.permute.xlu0 %30 }
  0xd8   :  { %6468 = vmatprep.subr.mxu1 %v7955_v1  ;;  %6387 = vmatprep.subr.mxu0 %v7955_v1  ;;  %v8477_v56 = vand.u32 4294901760, %v36_v60  ;;  %v8487_v7 = vsub.f32 %v37_v53, %v8462_v27  ;;  %vm32_vm2 = vcmp.eq.s32.totalorder %v8188_v58, %v8520_v46 }
  0xd9   :  { %6469 = vmatpush3.msra.mxu1 %v832_v32  ;;  %6388 = vmatpush3.msra.mxu0 %v273_v4  ;;  %v35_v4 = vld [vmem:[#allocation2] sm:$0xff]  ;;  %v874_v47 = vand.u32 4294901760, %v873_v59  ;;  %v887_v32 = vsub.f32 %v8460_v25, %v886_v62  ;;  %v894_v53 = vsub.f32 %v8475_v50, %v893_v37 }
  0xda   :  { %6389 = vmatprep.mubr.msk.f32.mxu0 %vm7956_vm0, %v7955_v1  ;;  %6470 = vmatprep.subr.mxu1 %v7955_v1  ;;  %v8489_v31 = vand.u32 4294901760, %v35_v4  ;;  %v8499_v43 = vsub.f32 %v36_v60, %v8477_v56  ;;  %v900_v3 = vand.u32 4294901760, %v8487_v7 }
  0xdb   :  { %6390 = vmatmul.mubr.msk.f32.vlgmr.msra.gmra.mxu0 %vm55_vm1, %v7957_v5  ;;  %6427 = vmatprep.subr.mxu0 %v7955_v1  ;;  %v888_v60 = vand.u32 4294901760, %v887_v32 }
  0xdc   :  { %6471 = vmatpush3.msra.mxu1 %v839_v19  ;;  %6428 = vmatpush3.msra.mxu0 %v8298_v10  ;;  %v8509_v2 = vsub.f32 %v35_v4, %v8489_v31  ;;  %v907_v19 = vand.u32 4294901760, %v8499_v43  ;;  %v895_v4 = vand.u32 4294901760, %v894_v53 }
  0xdd   :  { %6472 = vmatprep.subr.mxu1 %v7955_v1  ;;  %6429 = vmatprep.subr.mxu0 %v7955_v1 }
  0xde   :  { %6473 = vmatpush3.msra.mxu1 %v846_v16  ;;  %6430 = vmatpush3.msra.mxu0 %v8305_v15  ;;  %v901_v16 = vsub.f32 %v8487_v7, %v900_v3  ;;  %v908_v33 = vsub.f32 %v8499_v43, %v907_v19 }
  0xdf   :  { %6474 = vmatprep.subr.mxu1 %v7955_v1  ;;  %6431 = vmatprep.subr.mxu0 %v7955_v1 }
  0xe0   :  { %6475 = vmatpush3.msra.mxu1 %v853_v54  ;;  %6432 = vmatpush3.msra.mxu0 %v8315_v18  ;;  %v914_v54 = vand.u32 4294901760, %v8509_v2  ;;  %v909_v35 = vand.u32 4294901760, %v908_v33 }
  0xe1   :  { %6476 = vmatprep.subr.mxu1 %v7955_v1  ;;  %6433 = vmatprep.subr.mxu0 %v7955_v1 }
  0xe2   :  { %6477 = vmatpush3.msra.mxu1 %v860_v61  ;;  %6434 = vmatpush3.msra.mxu0 %v8325_v21  ;;  %v902_v61 = vand.u32 4294901760, %v901_v16  ;;  %v915_v59 = vsub.f32 %v8509_v2, %v914_v54  ;;  %v1368_v16 = vld [vmem:[#allocation2 + $0x128] sm:$0xff] }
  0xe3   :  { %6478 = vmatprep.subr.mxu1 %v7955_v1  ;;  %6435 = vmatprep.subr.mxu0 %v7955_v1 }
  0xe4   :  { %6479 = vmatpush3.msra.mxu1 %v867_v34  ;;  %6436 = vmatpush3.msra.mxu0 %v8339_v26  ;;  %v5362_v34 = vsel %vm32_vm2, 1.0, %v7955_v1 }
  0xe5   :  { %6480 = vmatprep.subr.mxu1 %v7955_v1  ;;  %6437 = vmatprep.subr.mxu0 %v7955_v1  ;;  %v8551_v32 = vsub.f32 %v5362_v34, %v5362_v34 }
  0xe6   :  { %6481 = vmatpush3.msra.mxu1 %v874_v47  ;;  %6438 = vmatpush3.msra.mxu0 %v8350_v30  ;;  %v916_v47 = vand.u32 4294901760, %v915_v59 }
  0xe7   :  { %6482 = vmatprep.subr.mxu1 %v7955_v1  ;;  %6439 = vmatprep.subr.mxu0 %v7955_v1 }
  0xe8   :  { %6483 = vmatpush3.msra.mxu1 %v881_v39  ;;  %6440 = vmatpush3.msra.mxu0 %v8358_v44  ;;  %v798_v39 = vand.u32 4294901760, %v8551_v32 }
  0xe9   :  { %6484 = vmatprep.subr.mxu1 %v7955_v1  ;;  %6441 = vmatprep.subr.mxu0 %v7955_v1 }
  0xea   :  { %6485 = vmatpush3.msra.mxu1 %v888_v60  ;;  %6442 = vmatpush3.msra.mxu0 %v8372_v52  ;;  %v799_v53 = vsub.f32 %v8551_v32, %v798_v39 }
  0xeb   :  { %6486 = vmatprep.subr.mxu1 %v7955_v1  ;;  %6443 = vmatprep.subr.mxu0 %v7955_v1 }
  0xec   :  { %6487 = vmatpush3.msra.mxu1 %v895_v4  ;;  %6444 = vmatpush3.msra.mxu0 %v8392_v12  ;;  %v800_v60 = vand.u32 4294901760, %v799_v53 }
  0xed   :  { %6488 = vmatprep.subr.mxu1 %v7955_v1  ;;  %6445 = vmatprep.subr.mxu0 %v7955_v1 }
  0xee   :  { %6489 = vmatpush3.msra.mxu1 %v902_v61  ;;  %6446 = vmatpush3.msra.mxu0 %v8409_v38  ;;  %v1367_v61 = vld [vmem:[#allocation2 + $0x120] sm:$0xff] }
  0xef   :  { %6490 = vmatprep.subr.mxu1 %v7955_v1  ;;  %6447 = vmatprep.subr.mxu0 %v7955_v1  ;;  %v8812_v53 = vand.u32 4294901760, %v1367_v61 }
  0xf0   :  { %6491 = vmatpush3.msra.mxu1 %v909_v35  ;;  %6448 = vmatpush3.msra.mxu0 %v8422_v55  ;;  %v8799_v35 = vand.u32 4294901760, %v1368_v16 }
  0xf1   :  { %6492 = vmatprep.subr.mxu1 %v7955_v1  ;;  %6449 = vmatprep.subr.mxu0 %v7955_v1 }
  0xf2   :  { %6493 = vmatpush3.msra.mxu1 %v916_v47  ;;  %6494 = vmatprep.mubr.msk.f32.mxu1 %vm7956_vm0, %v7955_v1  ;;  %v1366_v47 = vld [vmem:[#allocation2 + $0x118] sm:$0xff] }
  0xf3   :  { %6450 = vmatpush3.msra.mxu0 %v8435_v14  ;;  %6495 = vmatmul.mubr.msk.f32.vlgmr.msra.gmra.mxu1 %vm32_vm2, %v7957_v5 }
  0xf4   :  { %6532 = vmatprep.subr.mxu1 %v7955_v1  ;;  %6451 = vmatprep.subr.mxu0 %v7955_v1 }
  0xf5   :  { %6533 = vmatpush3.msra.mxu1 %v8298_v10  ;;  %6452 = vmatpush3.msra.mxu0 %v8448_v11 }
  0xf6   :  { %6534 = vmatprep.subr.mxu1 %v7955_v1  ;;  %6453 = vmatprep.subr.mxu0 %v7955_v1 }
  0xf7   :  { %6535 = vmatpush3.msra.mxu1 %v8305_v15  ;;  %6454 = vmatpush3.msra.mxu0 %v8462_v27 }
  0xf8   :  { %6536 = vmatprep.subr.mxu1 %v7955_v1  ;;  %6455 = vmatprep.subr.mxu0 %v7955_v1 }
  0xf9   :  { %6537 = vmatpush3.msra.mxu1 %v8315_v18  ;;  %6456 = vmatpush3.msra.mxu0 %v8477_v56 }
  0xfa   :  { %6538 = vmatprep.subr.mxu1 %v7955_v1  ;;  %6457 = vmatprep.subr.mxu0 %v7955_v1 }
  0xfb   :  { %6539 = vmatpush3.msra.mxu1 %v8325_v21  ;;  %6458 = vmatpush3.msra.mxu0 %v8489_v31 }
  0xfc   :  { %6459 = vmatprep.mubr.msk.f32.mxu0 %vm7956_vm0, %v7955_v1  ;;  %6540 = vmatprep.subr.mxu1 %v7955_v1 }
  0xfd   :  { %6460 = vmatmul.mubr.f32.vlgmr.msra.gmra.mxu0 %v800_v60  ;;  %6497 = vmatprep.subr.mxu0 %v7955_v1 }
  0xfe   :  { %6541 = vmatpush3.msra.mxu1 %v8339_v26  ;;  %6498 = vmatpush3.msra.mxu0 %v8313_v17 }
  0xff   :  { %6542 = vmatprep.subr.mxu1 %v7955_v1  ;;  %6499 = vmatprep.subr.mxu0 %v7955_v1 }
 0x100   :  { %6543 = vmatpush3.msra.mxu1 %v8350_v30  ;;  %6500 = vmatpush3.msra.mxu0 %v8323_v20 }
 0x101   :  { %6544 = vmatprep.subr.mxu1 %v7955_v1  ;;  %6501 = vmatprep.subr.mxu0 %v7955_v1 }
 0x102   :  { %6545 = vmatpush3.msra.mxu1 %v8358_v44  ;;  %6502 = vmatpush3.msra.mxu0 %v8334_v24 }
 0x103   :  { %6546 = vmatprep.subr.mxu1 %v7955_v1  ;;  %6503 = vmatprep.subr.mxu0 %v7955_v1 }
 0x104   :  { %6547 = vmatpush3.msra.mxu1 %v8372_v52  ;;  %6504 = vmatpush3.msra.mxu0 %v8345_v29  ;;  %v1374_v29 = vld [vmem:[#allocation2 + $0x158] sm:$0xff] }
 0x105   :  { %6548 = vmatprep.subr.mxu1 %v7955_v1  ;;  %6505 = vmatprep.subr.mxu0 %v7955_v1 }
 0x106   :  { %6549 = vmatpush3.msra.mxu1 %v8392_v12  ;;  %6506 = vmatpush3.msra.mxu0 %v8364_v49  ;;  %v8716_v49 = vand.u32 4294901760, %v1374_v29 }
 0x107   :  { %6550 = vmatprep.subr.mxu1 %v7955_v1  ;;  %6507 = vmatprep.subr.mxu0 %v7955_v1 }
 0x108   :  { %6551 = vmatpush3.msra.mxu1 %v8409_v38  ;;  %6508 = vmatpush3.msra.mxu0 %v8378_v57 }
 0x109   :  { %6552 = vmatprep.subr.mxu1 %v7955_v1  ;;  %6509 = vmatprep.subr.mxu0 %v7955_v1 }
 0x10a   :  { %6553 = vmatpush3.msra.mxu1 %v8422_v55  ;;  %6510 = vmatpush3.msra.mxu0 %v8386_v0 }
 0x10b   :  { %6554 = vmatprep.subr.mxu1 %v7955_v1  ;;  %6511 = vmatprep.subr.mxu0 %v7955_v1 }
 0x10c   :  { %6555 = vmatpush3.msra.mxu1 %v8435_v14  ;;  %6512 = vmatpush3.msra.mxu0 %v8404_v41 }
 0x10d   :  { %6556 = vmatprep.subr.mxu1 %v7955_v1  ;;  %6513 = vmatprep.subr.mxu0 %v7955_v1 }
 0x10e   :  { %6557 = vmatpush3.msra.mxu1 %v8448_v11  ;;  %6514 = vmatpush3.msra.mxu0 %v8420_v48 }
 0x10f   :  { %6558 = vmatprep.subr.mxu1 %v7955_v1  ;;  %6515 = vmatprep.subr.mxu0 %v7955_v1 }
 0x110   :  { %6559 = vmatpush3.msra.mxu1 %v8462_v27  ;;  %6516 = vmatpush3.msra.mxu0 %v8433_v13 }
 0x111   :  { %6560 = vmatprep.subr.mxu1 %v7955_v1  ;;  %6517 = vmatprep.subr.mxu0 %v7955_v1 }
 0x112   :  { %6561 = vmatpush3.msra.mxu1 %v8477_v56  ;;  %6518 = vmatpush3.msra.mxu0 %v8446_v9 }
 0x113   :  { %6562 = vmatprep.subr.mxu1 %v7955_v1  ;;  %6519 = vmatprep.subr.mxu0 %v7955_v1 }
 0x114   :  { %6563 = vmatpush3.msra.mxu1 %v8489_v31  ;;  %6564 = vmatprep.mubr.msk.f32.mxu1 %vm7956_vm0, %v7955_v1 }
 0x115   :  { %6520 = vmatpush3.msra.mxu0 %v8460_v25  ;;  %6565 = vmatmul.mubr.f32.vlgmr.msra.gmra.mxu1 %v798_v39 }
 0x116   :  { %6602 = vmatprep.subr.mxu1 %v7955_v1  ;;  %6521 = vmatprep.subr.mxu0 %v7955_v1 }
 0x117   :  { %6603 = vmatpush3.msra.mxu1 %v8298_v10  ;;  %6522 = vmatpush3.msra.mxu0 %v8475_v50  ;;  %v1378_v10 = vld [vmem:[#allocation2 + $0x178] sm:$0xff] }
 0x118   :  { %6604 = vmatprep.subr.mxu1 %v7955_v1  ;;  %6523 = vmatprep.subr.mxu0 %v7955_v1  ;;  %v8675_v17 = vand.u32 4294901760, %v1378_v10 }
 0x119   :  { %6605 = vmatpush3.msra.mxu1 %v8305_v15  ;;  %6524 = vmatpush3.msra.mxu0 %v8487_v7  ;;  %v1377_v15 = vld [vmem:[#allocation2 + $0x170] sm:$0xff] }
 0x11a   :  { %6606 = vmatprep.subr.mxu1 %v7955_v1  ;;  %6525 = vmatprep.subr.mxu0 %v7955_v1  ;;  %v8682_v20 = vand.u32 4294901760, %v1377_v15 }
 0x11b   :  { %6607 = vmatpush3.msra.mxu1 %v8315_v18  ;;  %6526 = vmatpush3.msra.mxu0 %v8499_v43  ;;  %v1376_v18 = vld [vmem:[#allocation2 + $0x168] sm:$0xff] }
 0x11c   :  { %6608 = vmatprep.subr.mxu1 %v7955_v1  ;;  %6527 = vmatprep.subr.mxu0 %v7955_v1  ;;  %v8692_v24 = vand.u32 4294901760, %v1376_v18 }
 0x11d   :  { %6609 = vmatpush3.msra.mxu1 %v8325_v21  ;;  %6528 = vmatpush3.msra.mxu0 %v8509_v2  ;;  %v1375_v21 = vld [vmem:[#allocation2 + $0x160] sm:$0xff] }
 0x11e   :  { %6529 = vmatprep.mubr.msk.f32.mxu0 %vm7956_vm0, %v7955_v1  ;;  %6610 = vmatprep.subr.mxu1 %v7955_v1 }
 0x11f   :  { %6530 = vmatmul.mubr.f32.vlgmr.msra.gmra.mxu0 %v8551_v32  ;;  %6567 = vmatprep.subr.mxu0 %v7955_v1 }
 0x120   :  { %6611 = vmatpush3.msra.mxu1 %v8339_v26  ;;  %6568 = vmatpush3.msra.mxu0 %v809_v23  ;;  %v8690_v23 = vsub.f32 %v1378_v10, %v8675_v17  ;;  %v8700_v26 = vsub.f32 %v1377_v15, %v8682_v20  ;;  %v8823_v15 = vsub.f32 %v1368_v16, %v8799_v35 }
 0x121   :  { %6612 = vmatprep.subr.mxu1 %v7955_v1  ;;  %6569 = vmatprep.subr.mxu0 %v7955_v1 }
 0x122   :  { %6613 = vmatpush3.msra.mxu1 %v8350_v30  ;;  %6570 = vmatpush3.msra.mxu0 %v816_v28  ;;  %v8702_v28 = vand.u32 4294901760, %v1375_v21  ;;  %v1473_v30 = vand.u32 4294901760, %v8690_v23 }
 0x123   :  { %6614 = vmatprep.subr.mxu1 %v7955_v1  ;;  %6571 = vmatprep.subr.mxu0 %v7955_v1 }
 0x124   :  { %6615 = vmatpush3.msra.mxu1 %v8358_v44  ;;  %6572 = vmatpush3.msra.mxu0 %v823_v40  ;;  %v8711_v40 = vsub.f32 %v1376_v18, %v8692_v24  ;;  %v1373_v44 = vld [vmem:[#allocation2 + $0x150] sm:$0xff]  ;;  %v8722_v57 = vsub.f32 %v1375_v21, %v8702_v28  ;;  %v8825_v18 = vand.u32 4294901760, %v1366_v47 }
 0x125   :  { %6616 = vmatprep.subr.mxu1 %v7955_v1  ;;  %6573 = vmatprep.subr.mxu0 %v7955_v1  ;;  %v8727_v0 = vand.u32 4294901760, %v1373_v44 }
 0x126   :  { %6617 = vmatpush3.msra.mxu1 %v8372_v52  ;;  %6574 = vmatpush3.msra.mxu0 %v830_v51  ;;  %v1372_v51 = vld [vmem:[#allocation2 + $0x148] sm:$0xff]  ;;  %v1480_v52 = vand.u32 4294901760, %v8700_v26  ;;  %v1487_v41 = vand.u32 4294901760, %v8711_v40  ;;  %v1494_v48 = vand.u32 4294901760, %v8722_v57 }
 0x127   :  { %6618 = vmatprep.subr.mxu1 %v7955_v1  ;;  %6575 = vmatprep.subr.mxu0 %v7955_v1  ;;  %v8755_v13 = vsub.f32 %v1373_v44, %v8727_v0  ;;  %v8837_v44 = vsub.f32 %v1367_v61, %v8812_v53 }
 0x128   :  { %6619 = vmatpush3.msra.mxu1 %v8392_v12  ;;  %6576 = vmatpush3.msra.mxu0 %v837_v63  ;;  %v1371_v63 = vld [vmem:[#allocation2 + $0x140] sm:$0xff]  ;;  %v1474_v12 = vsub.f32 %v8690_v23, %v1473_v30 }
 0x129   :  { %6620 = vmatprep.subr.mxu1 %v7955_v1  ;;  %6577 = vmatprep.subr.mxu0 %v7955_v1  ;;  %v1508_v25 = vand.u32 4294901760, %v8755_v13 }
 0x12a   :  { %6621 = vmatpush3.msra.mxu1 %v8409_v38  ;;  %6578 = vmatpush3.msra.mxu0 %v844_v8  ;;  %v8735_v8 = vand.u32 4294901760, %v1372_v51  ;;  %v8741_v38 = vsub.f32 %v1374_v29, %v8716_v49 }
 0x12b   :  { %6622 = vmatprep.subr.mxu1 %v7955_v1  ;;  %6579 = vmatprep.subr.mxu0 %v7955_v1  ;;  %v1509_v32 = vsub.f32 %v8755_v13, %v1508_v25 }
 0x12c   :  { %6623 = vmatpush3.msra.mxu1 %v8422_v55  ;;  %6580 = vmatpush3.msra.mxu0 %v851_v42  ;;  %v1481_v42 = vsub.f32 %v8700_v26, %v1480_v52  ;;  %v8749_v55 = vand.u32 4294901760, %v1371_v63  ;;  %v1501_v9 = vand.u32 4294901760, %v8741_v38 }
 0x12d   :  { %6624 = vmatprep.subr.mxu1 %v7955_v1  ;;  %6581 = vmatprep.subr.mxu0 %v7955_v1  ;;  %v1510_v21 = vand.u32 4294901760, %v1509_v32 }
 0x12e   :  { %6625 = vmatpush3.msra.mxu1 %v8435_v14  ;;  %6582 = vmatpush3.msra.mxu0 %v858_v45  ;;  %v1370_v45 = vld [vmem:[#allocation2 + $0x138] sm:$0xff]  ;;  %v1475_v14 = vand.u32 4294901760, %v1474_v12  ;;  %v1502_v59 = vsub.f32 %v8741_v38, %v1501_v9  ;;  %v1543_v12 = vand.u32 4294901760, %v8823_v15 }
 0x12f   :  { %6626 = vmatprep.subr.mxu1 %v7955_v1  ;;  %6583 = vmatprep.subr.mxu0 %v7955_v1 }
 0x130   :  { %6627 = vmatpush3.msra.mxu1 %v8448_v11  ;;  %6584 = vmatpush3.msra.mxu0 %v865_v6  ;;  %v1488_v6 = vsub.f32 %v8711_v40, %v1487_v41  ;;  %v8763_v11 = vsub.f32 %v1372_v51, %v8735_v8  ;;  %v1503_v60 = vand.u32 4294901760, %v1502_v59  ;;  %v1544_v16 = vsub.f32 %v8823_v15, %v1543_v12 }
 0x131   :  { %6628 = vmatprep.subr.mxu1 %v7955_v1  ;;  %6585 = vmatprep.subr.mxu0 %v7955_v1 }
 0x132   :  { %6629 = vmatpush3.msra.mxu1 %v8462_v27  ;;  %6586 = vmatpush3.msra.mxu0 %v872_v22  ;;  %v1369_v22 = vld [vmem:[#allocation2 + $0x130] sm:$0xff]  ;;  %v8769_v27 = vand.u32 4294901760, %v1370_v45  ;;  %v1489_v4 = vand.u32 4294901760, %v1488_v6  ;;  %v1515_v33 = vand.u32 4294901760, %v8763_v11  ;;  %v1550_v6 = vand.u32 4294901760, %v8837_v44 }
 0x133   :  { %6630 = vmatprep.subr.mxu1 %v7955_v1  ;;  %6587 = vmatprep.subr.mxu0 %v7955_v1 }
 0x134   :  { %6631 = vmatpush3.msra.mxu1 %v8477_v56  ;;  %6588 = vmatpush3.msra.mxu0 %v879_v36  ;;  %v1482_v36 = vand.u32 4294901760, %v1481_v42  ;;  %v1495_v56 = vsub.f32 %v8722_v57, %v1494_v48  ;;  %v8797_v34 = vsub.f32 %v1370_v45, %v8769_v27  ;;  %v1516_v7 = vsub.f32 %v8763_v11, %v1515_v33 }
 0x135   :  { %6632 = vmatprep.subr.mxu1 %v7955_v1  ;;  %6589 = vmatprep.subr.mxu0 %v7955_v1  ;;  %v8852_v42 = vsub.f32 %v1366_v47, %v8825_v18 }
 0x136   :  { %6633 = vmatpush3.msra.mxu1 %v8489_v31  ;;  %6634 = vmatprep.mubr.msk.f32.mxu1 %vm7956_vm0, %v7955_v1  ;;  %v8781_v31 = vsub.f32 %v1371_v63, %v8749_v55  ;;  %v1496_v50 = vand.u32 4294901760, %v1495_v56  ;;  %v1529_v10 = vand.u32 4294901760, %v8797_v34  ;;  %v1517_v2 = vand.u32 4294901760, %v1516_v7 }
 0x137   :  { %6590 = vmatpush3.msra.mxu0 %v886_v62  ;;  %6635 = vmatmul.mubr.msk.f32.vlgmr.msra.gmra.mxu1 %vm32_vm2, %v7957_v5  ;;  %v8786_v62 = vand.u32 4294901760, %v1369_v22  ;;  %v1545_v7 = vand.u32 4294901760, %v1544_v16 }
 0x138   :  { %6672 = vmatprep.subr.mxu1 %v7955_v1  ;;  %6591 = vmatprep.subr.mxu0 %v7955_v1  ;;  %v1530_v63 = vsub.f32 %v8797_v34, %v1529_v10 }
 0x139   :  { %6673 = vmatpush3.msra.mxu1 %v1475_v14  ;;  %6592 = vmatpush3.msra.mxu0 %v893_v37  ;;  %v1522_v37 = vand.u32 4294901760, %v8781_v31  ;;  %v8810_v39 = vsub.f32 %v1369_v22, %v8786_v62 }
 0x13a   :  { %6674 = vmatprep.subr.mxu1 %v7955_v1  ;;  %6593 = vmatprep.subr.mxu0 %v7955_v1  ;;  %v1531_v56 = vand.u32 4294901760, %v1530_v63 }
 0x13b   :  { %6675 = vmatpush3.msra.mxu1 %v1482_v36  ;;  %6594 = vmatpush3.msra.mxu0 %v900_v3  ;;  %v1365_v3 = vld [vmem:[#allocation2 + $0x110] sm:$0xff]  ;;  %v1523_v43 = vsub.f32 %v8781_v31, %v1522_v37  ;;  %v1536_v29 = vand.u32 4294901760, %v8810_v39 }
 0x13c   :  { %6676 = vmatprep.subr.mxu1 %v7955_v1  ;;  %6595 = vmatprep.subr.mxu0 %v7955_v1  ;;  %v8839_v51 = vand.u32 4294901760, %v1365_v3 }
 0x13d   :  { %6677 = vmatpush3.msra.mxu1 %v1489_v4  ;;  %6596 = vmatpush3.msra.mxu0 %v907_v19  ;;  %v1364_v19 = vld [vmem:[#allocation2 + $0x108] sm:$0xff]  ;;  %v1524_v46 = vand.u32 4294901760, %v1523_v43  ;;  %v1537_v14 = vsub.f32 %v8810_v39, %v1536_v29  ;;  %v1557_v4 = vand.u32 4294901760, %v8852_v42  ;;  %v8897_v43 = vpop.permute.xlu1 %1358 }
 0x13e   :  { %6678 = vmatprep.subr.mxu1 %v7955_v1  ;;  %6597 = vmatprep.subr.mxu0 %v7955_v1  ;;  %v8854_v45 = vand.u32 4294901760, %v1364_v19  ;;  %v8864_v22 = vsub.f32 %v1365_v3, %v8839_v51  ;;  %vm1360_vm3 = vcmp.eq.s32.totalorder %v8188_v58, %v8897_v43 }
 0x13f   :  { %6679 = vmatpush3.msra.mxu1 %v1496_v50  ;;  %6598 = vmatpush3.msra.mxu0 %v914_v54  ;;  %v1363_v54 = vld [vmem:[#allocation2 + $0x100] sm:$0xff]  ;;  %v1538_v59 = vand.u32 4294901760, %v1537_v14  ;;  %v1551_v50 = vsub.f32 %v8837_v44, %v1550_v6  ;;  %v1558_v3 = vsub.f32 %v8852_v42, %v1557_v4  ;;  %v5372_v14 = vsel %vm1360_vm3, 1.0, %v7955_v1 }
 0x140   :  { %6599 = vmatprep.mubr.msk.f32.mxu0 %vm7956_vm0, %v7955_v1  ;;  %6680 = vmatprep.subr.mxu1 %v7955_v1  ;;  %v8866_v36 = vand.u32 4294901760, %v1363_v54  ;;  %v8876_v61 = vsub.f32 %v1364_v19, %v8854_v45  ;;  %v1564_v47 = vand.u32 4294901760, %v8864_v22 }
 0x141   :  { %6600 = vmatmul.mubr.msk.f32.vlgmr.msra.gmra.mxu0 %vm32_vm2, %v7957_v5  ;;  %6637 = vmatprep.subr.mxu0 %v7955_v1  ;;  %v1552_v19 = vand.u32 4294901760, %v1551_v50 }
 0x142   :  { %6681 = vmatpush3.msra.mxu1 %v1503_v60  ;;  %6638 = vmatpush3.msra.mxu0 %v8675_v17  ;;  %v8886_v32 = vsub.f32 %v1363_v54, %v8866_v36  ;;  %v1571_v60 = vand.u32 4294901760, %v8876_v61  ;;  %v1559_v54 = vand.u32 4294901760, %v1558_v3 }
 0x143   :  { %6682 = vmatprep.subr.mxu1 %v7955_v1  ;;  %6639 = vmatprep.subr.mxu0 %v7955_v1 }
 0x144   :  { %6683 = vmatpush3.msra.mxu1 %v1510_v21  ;;  %6640 = vmatpush3.msra.mxu0 %v8682_v20  ;;  %v1565_v21 = vsub.f32 %v8864_v22, %v1564_v47  ;;  %v1572_v63 = vsub.f32 %v8876_v61, %v1571_v60 }
 0x145   :  { %6684 = vmatprep.subr.mxu1 %v7955_v1  ;;  %6641 = vmatprep.subr.mxu0 %v7955_v1 }
 0x146   :  { %6685 = vmatpush3.msra.mxu1 %v1517_v2  ;;  %6642 = vmatpush3.msra.mxu0 %v8692_v24  ;;  %v1578_v2 = vand.u32 4294901760, %v8886_v32  ;;  %v1573_v50 = vand.u32 4294901760, %v1572_v63 }
 0x147   :  { %6686 = vmatprep.subr.mxu1 %v7955_v1  ;;  %6643 = vmatprep.subr.mxu0 %v7955_v1 }
 0x148   :  { %6687 = vmatpush3.msra.mxu1 %v1524_v46  ;;  %6644 = vmatpush3.msra.mxu0 %v8702_v28  ;;  %v1579_v16 = vsub.f32 %v8886_v32, %v1578_v2 }
 0x149   :  { %6688 = vmatprep.subr.mxu1 %v7955_v1  ;;  %6645 = vmatprep.subr.mxu0 %v7955_v1 }
 0x14a   :  { %6689 = vmatpush3.msra.mxu1 %v1531_v56  ;;  %6646 = vmatpush3.msra.mxu0 %v8716_v49  ;;  %v1566_v56 = vand.u32 4294901760, %v1565_v21  ;;  %v1580_v3 = vand.u32 4294901760, %v1579_v16 }
 0x14b   :  { %6690 = vmatprep.subr.mxu1 %v7955_v1  ;;  %6647 = vmatprep.subr.mxu0 %v7955_v1 }
 0x14c   :  { %6691 = vmatpush3.msra.mxu1 %v1538_v59  ;;  %6648 = vmatpush3.msra.mxu0 %v8727_v0 }
 0x14d   :  { %6692 = vmatprep.subr.mxu1 %v7955_v1  ;;  %6649 = vmatprep.subr.mxu0 %v7955_v1 }
 0x14e   :  { %6693 = vmatpush3.msra.mxu1 %v1545_v7  ;;  %6650 = vmatpush3.msra.mxu0 %v8735_v8  ;;  %v8925_v7 = vsub.f32 %v5372_v14, %v5372_v14 }
 0x14f   :  { %6694 = vmatprep.subr.mxu1 %v7955_v1  ;;  %6651 = vmatprep.subr.mxu0 %v7955_v1  ;;  %v312_v46 = vpop.f32.mrf.mxu1 }
 0x150   :  { %6695 = vmatpush3.msra.mxu1 %v1552_v19  ;;  %6652 = vmatpush3.msra.mxu0 %v8749_v55  ;;  %v1462_v19 = vand.u32 4294901760, %v8925_v7 }
 0x151   :  { %6696 = vmatprep.subr.mxu1 %v7955_v1  ;;  %6653 = vmatprep.subr.mxu0 %v7955_v1  ;;  %v6286_v59 = vpop.f32.mrf.mxu1 }
 0x152   :  { %6697 = vmatpush3.msra.mxu1 %v1559_v54  ;;  %6654 = vmatpush3.msra.mxu0 %v8769_v27  ;;  %v1463_v14 = vsub.f32 %v8925_v7, %v1462_v19 }
 0x153   :  { %6698 = vmatprep.subr.mxu1 %v7955_v1  ;;  %6655 = vmatprep.subr.mxu0 %v7955_v1 }
 0x154   :  { %6699 = vmatpush3.msra.mxu1 %v1566_v56  ;;  %6656 = vmatpush3.msra.mxu0 %v8786_v62 }
 0x155   :  { %6700 = vmatprep.subr.mxu1 %v7955_v1  ;;  %6657 = vmatprep.subr.mxu0 %v7955_v1 }
 0x156   :  { %6701 = vmatpush3.msra.mxu1 %v1573_v50  ;;  %6658 = vmatpush3.msra.mxu0 %v8799_v35 }
 0x157   :  { %6702 = vmatprep.subr.mxu1 %v7955_v1  ;;  %6659 = vmatprep.subr.mxu0 %v7955_v1 }
 0x158   :  { %6703 = vmatpush3.msra.mxu1 %v1580_v3  ;;  %6704 = vmatprep.mubr.msk.f32.mxu1 %vm7956_vm0, %v7955_v1  ;;  %v161_v21 = vpop.f32.mrf.mxu0 }
 0x159   :  { %6660 = vmatpush3.msra.mxu0 %v8812_v53  ;;  %6705 = vmatmul.mubr.msk.f32.vlgmr.msra.gmra.mxu1 %vm1360_vm3, %v7957_v5  ;;  %v8943_v54 = vadd.f32 %v312_v46, %v161_v21  ;;  %v1464_v46 = vand.u32 4294901760, %v1463_v14 }
 0x15a   :  { %6742 = vmatprep.subr.mxu1 %v7955_v1  ;;  %6661 = vmatprep.subr.mxu0 %v7955_v1  ;;  %v6251_v63 = vpop.f32.mrf.mxu0 }
 0x15b   :  { %6743 = vmatpush3.msra.mxu1 %v8675_v17  ;;  %6662 = vmatpush3.msra.mxu0 %v8825_v18 }
 0x15c   :  { %6744 = vmatprep.subr.mxu1 %v7955_v1  ;;  %6663 = vmatprep.subr.mxu0 %v7955_v1 }
 0x15d   :  { %6745 = vmatpush3.msra.mxu1 %v8682_v20  ;;  %6664 = vmatpush3.msra.mxu0 %v8839_v51 }
 0x15e   :  { %6746 = vmatprep.subr.mxu1 %v7955_v1  ;;  %6665 = vmatprep.subr.mxu0 %v7955_v1 }
 0x15f   :  { %6747 = vmatpush3.msra.mxu1 %v8692_v24  ;;  %6666 = vmatpush3.msra.mxu0 %v8854_v45 }
 0x160   :  { %6748 = vmatprep.subr.mxu1 %v7955_v1  ;;  %6667 = vmatprep.subr.mxu0 %v7955_v1 }
 0x161   :  { %6749 = vmatpush3.msra.mxu1 %v8702_v28  ;;  %6668 = vmatpush3.msra.mxu0 %v8866_v36 }
 0x162   :  { %6669 = vmatprep.mubr.msk.f32.mxu0 %vm7956_vm0, %v7955_v1  ;;  %6750 = vmatprep.subr.mxu1 %v7955_v1 }
 0x163   :  { %6670 = vmatmul.mubr.f32.vlgmr.msra.gmra.mxu0 %v1464_v46  ;;  %6707 = vmatprep.subr.mxu0 %v7955_v1  ;;  %v2033_v46 = vld [vmem:[#allocation2 + $0x1a8] sm:$0xff] }
 0x164   :  { %6751 = vmatpush3.msra.mxu1 %v8716_v49  ;;  %6708 = vmatpush3.msra.mxu0 %v8690_v23 }
 0x165   :  { %6752 = vmatprep.subr.mxu1 %v7955_v1  ;;  %6709 = vmatprep.subr.mxu0 %v7955_v1 }
 0x166   :  { %6753 = vmatpush3.msra.mxu1 %v8727_v0  ;;  %6710 = vmatpush3.msra.mxu0 %v8700_v26 }
 0x167   :  { %6754 = vmatprep.subr.mxu1 %v7955_v1  ;;  %6711 = vmatprep.subr.mxu0 %v7955_v1 }
 0x168   :  { %6755 = vmatpush3.msra.mxu1 %v8735_v8  ;;  %6712 = vmatpush3.msra.mxu0 %v8711_v40 }
 0x169   :  { %6756 = vmatprep.subr.mxu1 %v7955_v1  ;;  %6713 = vmatprep.subr.mxu0 %v7955_v1 }
 0x16a   :  { %6757 = vmatpush3.msra.mxu1 %v8749_v55  ;;  %6714 = vmatpush3.msra.mxu0 %v8722_v57 }
 0x16b   :  { %6758 = vmatprep.subr.mxu1 %v7955_v1  ;;  %6715 = vmatprep.subr.mxu0 %v7955_v1 }
 0x16c   :  { %6759 = vmatpush3.msra.mxu1 %v8769_v27  ;;  %6716 = vmatpush3.msra.mxu0 %v8741_v38 }
 0x16d   :  { %6760 = vmatprep.subr.mxu1 %v7955_v1  ;;  %6717 = vmatprep.subr.mxu0 %v7955_v1 }
 0x16e   :  { %6761 = vmatpush3.msra.mxu1 %v8786_v62  ;;  %6718 = vmatpush3.msra.mxu0 %v8755_v13  ;;  %v2037_v13 = vld [vmem:[#allocation2 + $0x1c8] sm:$0xff] }
 0x16f   :  { %6762 = vmatprep.subr.mxu1 %v7955_v1  ;;  %6719 = vmatprep.subr.mxu0 %v7955_v1  ;;  %v505_v56 = vpop.f32.mrf.mxu1 }
 0x170   :  { %6763 = vmatpush3.msra.mxu1 %v8799_v35  ;;  %6720 = vmatpush3.msra.mxu0 %v8763_v11 }
 0x171   :  { %6764 = vmatprep.subr.mxu1 %v7955_v1  ;;  %6721 = vmatprep.subr.mxu0 %v7955_v1  ;;  %v6356_v16 = vpop.f32.mrf.mxu1 }
 0x172   :  { %6765 = vmatpush3.msra.mxu1 %v8812_v53  ;;  %6722 = vmatpush3.msra.mxu0 %v8781_v31  ;;  %v2036_v31 = vld [vmem:[#allocation2 + $0x1c0] sm:$0xff] }
 0x173   :  { %6766 = vmatprep.subr.mxu1 %v7955_v1  ;;  %6723 = vmatprep.subr.mxu0 %v7955_v1 }
 0x174   :  { %6767 = vmatpush3.msra.mxu1 %v8825_v18  ;;  %6724 = vmatpush3.msra.mxu0 %v8797_v34 }
 0x175   :  { %6768 = vmatprep.subr.mxu1 %v7955_v1  ;;  %6725 = vmatprep.subr.mxu0 %v7955_v1 }
 0x176   :  { %6769 = vmatpush3.msra.mxu1 %v8839_v51  ;;  %6726 = vmatpush3.msra.mxu0 %v8810_v39 }
 0x177   :  { %6770 = vmatprep.subr.mxu1 %v7955_v1  ;;  %6727 = vmatprep.subr.mxu0 %v7955_v1 }
 0x178   :  { %6771 = vmatpush3.msra.mxu1 %v8854_v45  ;;  %6728 = vmatpush3.msra.mxu0 %v8823_v15 }
 0x179   :  { %6772 = vmatprep.subr.mxu1 %v7955_v1  ;;  %6729 = vmatprep.subr.mxu0 %v7955_v1  ;;  %v416_v59 = vpop.f32.mrf.mxu0 }
 0x17a   :  { %6773 = vmatpush3.msra.mxu1 %v8866_v36  ;;  %6774 = vmatprep.mubr.msk.f32.mxu1 %vm7956_vm0, %v7955_v1  ;;  %v417_v50 = vadd.f32 %v416_v59, %v8943_v54 }
 0x17b   :  { %6730 = vmatpush3.msra.mxu0 %v8837_v44  ;;  %6775 = vmatmul.mubr.f32.vlgmr.msra.gmra.mxu1 %v1462_v19  ;;  %v6321_v3 = vpop.f32.mrf.mxu0 }
 0x17c   :  { %6812 = vmatprep.subr.mxu1 %v7955_v1  ;;  %6731 = vmatprep.subr.mxu0 %v7955_v1  ;;  %v9021_v21 = vadd.f32 %v505_v56, %v417_v50  ;;  %v2032_v50 = vld [vmem:[#allocation2 + $0x1a0] sm:$0xff] }
 0x17d   :  { %6813 = vmatpush3.msra.mxu1 %v8675_v17  ;;  %6732 = vmatpush3.msra.mxu0 %v8852_v42  ;;  %v2043_v17 = vld [vmem:[#allocation2 + $0x1f8] sm:$0xff] }
 0x17e   :  { %6814 = vmatprep.subr.mxu1 %v7955_v1  ;;  %6733 = vmatprep.subr.mxu0 %v7955_v1  ;;  %v9057_v23 = vand.u32 4294901760, %v2043_v17 }
 0x17f   :  { %6815 = vmatpush3.msra.mxu1 %v8682_v20  ;;  %6734 = vmatpush3.msra.mxu0 %v8864_v22  ;;  %v2042_v20 = vld [vmem:[#allocation2 + $0x1f0] sm:$0xff] }
 0x180   :  { %6816 = vmatprep.subr.mxu1 %v7955_v1  ;;  %6735 = vmatprep.subr.mxu0 %v7955_v1  ;;  %v9064_v26 = vand.u32 4294901760, %v2042_v20 }
 0x181   :  { %6817 = vmatpush3.msra.mxu1 %v8692_v24  ;;  %6736 = vmatpush3.msra.mxu0 %v8876_v61  ;;  %v2041_v24 = vld [vmem:[#allocation2 + $0x1e8] sm:$0xff] }
 0x182   :  { %6818 = vmatprep.subr.mxu1 %v7955_v1  ;;  %6737 = vmatprep.subr.mxu0 %v7955_v1  ;;  %v9074_v40 = vand.u32 4294901760, %v2041_v24 }
 0x183   :  { %6819 = vmatpush3.msra.mxu1 %v8702_v28  ;;  %6738 = vmatpush3.msra.mxu0 %v8886_v32  ;;  %v2040_v28 = vld [vmem:[#allocation2 + $0x1e0] sm:$0xff] }
 0x184   :  { %6739 = vmatprep.mubr.msk.f32.mxu0 %vm7956_vm0, %v7955_v1  ;;  %6820 = vmatprep.subr.mxu1 %v7955_v1  ;;  %v9086_v57 = vand.u32 4294901760, %v2040_v28  ;;  %v9095_v38 = vsub.f32 %v2041_v24, %v9074_v40 }
 0x185   :  { %6740 = vmatmul.mubr.f32.vlgmr.msra.gmra.mxu0 %v8925_v7  ;;  %6777 = vmatprep.subr.mxu0 %v7955_v1 }
 0x186   :  { %6821 = vmatpush3.msra.mxu1 %v8716_v49  ;;  %6778 = vmatpush3.msra.mxu0 %v1473_v30  ;;  %v9072_v30 = vsub.f32 %v2043_v17, %v9057_v23  ;;  %v9187_v17 = vand.u32 4294901760, %v2033_v46 }
 0x187   :  { %6822 = vmatprep.subr.mxu1 %v7955_v1  ;;  %6779 = vmatprep.subr.mxu0 %v7955_v1 }
 0x188   :  { %6823 = vmatpush3.msra.mxu1 %v8727_v0  ;;  %6780 = vmatpush3.msra.mxu0 %v1480_v52  ;;  %v9084_v52 = vsub.f32 %v2042_v20, %v9064_v26  ;;  %v2039_v0 = vld [vmem:[#allocation2 + $0x1d8] sm:$0xff] }
 0x189   :  { %6824 = vmatprep.subr.mxu1 %v7955_v1  ;;  %6781 = vmatprep.subr.mxu0 %v7955_v1  ;;  %v2031_v20 = vld [vmem:[#allocation2 + $0x198] sm:$0xff] }
 0x18a   :  { %6825 = vmatpush3.msra.mxu1 %v8735_v8  ;;  %6782 = vmatpush3.msra.mxu0 %v1487_v41  ;;  %v2138_v41 = vand.u32 4294901760, %v9072_v30  ;;  %v2145_v11 = vand.u32 4294901760, %v9084_v52 }
 0x18b   :  { %6826 = vmatprep.subr.mxu1 %v7955_v1  ;;  %6783 = vmatprep.subr.mxu0 %v7955_v1 }
 0x18c   :  { %6827 = vmatpush3.msra.mxu1 %v8749_v55  ;;  %6784 = vmatpush3.msra.mxu0 %v1494_v48  ;;  %v2038_v48 = vld [vmem:[#allocation2 + $0x1d0] sm:$0xff]  ;;  %v9100_v55 = vand.u32 4294901760, %v2039_v0 }
 0x18d   :  { %6828 = vmatprep.subr.mxu1 %v7955_v1  ;;  %6785 = vmatprep.subr.mxu0 %v7955_v1 }
 0x18e   :  { %6829 = vmatpush3.msra.mxu1 %v8769_v27  ;;  %6786 = vmatpush3.msra.mxu0 %v1501_v9  ;;  %v9106_v9 = vsub.f32 %v2040_v28, %v9086_v57  ;;  %v9111_v27 = vand.u32 4294901760, %v2038_v48  ;;  %v9125_v34 = vsub.f32 %v2039_v0, %v9100_v55 }
 0x18f   :  { %6830 = vmatprep.subr.mxu1 %v7955_v1  ;;  %6787 = vmatprep.subr.mxu0 %v7955_v1 }
 0x190   :  { %6831 = vmatpush3.msra.mxu1 %v8786_v62  ;;  %6788 = vmatpush3.msra.mxu0 %v1508_v25  ;;  %v2139_v25 = vsub.f32 %v9072_v30, %v2138_v41  ;;  %v2152_v62 = vand.u32 4294901760, %v9095_v38  ;;  %v9139_v39 = vsub.f32 %v2038_v48, %v9111_v27  ;;  %v9211_v48 = vsub.f32 %v2033_v46, %v9187_v17 }
 0x191   :  { %6832 = vmatprep.subr.mxu1 %v7955_v1  ;;  %6789 = vmatprep.subr.mxu0 %v7955_v1  ;;  %v9081_v49 = vpop.f32.mrf.mxu1 }
 0x192   :  { %6833 = vmatpush3.msra.mxu1 %v8799_v35  ;;  %6790 = vmatpush3.msra.mxu0 %v1515_v33  ;;  %v9119_v33 = vand.u32 4294901760, %v2037_v13  ;;  %v2146_v35 = vsub.f32 %v9084_v52, %v2145_v11  ;;  %v2173_v44 = vand.u32 4294901760, %v9139_v39 }
 0x193   :  { %6834 = vmatprep.subr.mxu1 %v7955_v1  ;;  %6791 = vmatprep.subr.mxu0 %v7955_v1  ;;  %v6426_v8 = vpop.f32.mrf.mxu1 }
 0x194   :  { %6835 = vmatpush3.msra.mxu1 %v8812_v53  ;;  %6792 = vmatpush3.msra.mxu0 %v1522_v37  ;;  %v2159_v37 = vand.u32 4294901760, %v9106_v9  ;;  %v9133_v53 = vand.u32 4294901760, %v2036_v31  ;;  %v9147_v7 = vsub.f32 %v2037_v13, %v9119_v33  ;;  %v2147_v54 = vand.u32 4294901760, %v2146_v35 }
 0x195   :  { %6836 = vmatprep.subr.mxu1 %v7955_v1  ;;  %6793 = vmatprep.subr.mxu0 %v7955_v1  ;;  %v2174_v24 = vsub.f32 %v9139_v39, %v2173_v44  ;;  %v9213_v13 = vand.u32 4294901760, %v2031_v20 }
 0x196   :  { %6837 = vmatpush3.msra.mxu1 %v8825_v18  ;;  %6794 = vmatpush3.msra.mxu0 %v1529_v10  ;;  %v2035_v10 = vld [vmem:[#allocation2 + $0x1b8] sm:$0xff]  ;;  %v2140_v18 = vand.u32 4294901760, %v2139_v25  ;;  %v9166_v14 = vsub.f32 %v2036_v31, %v9133_v53  ;;  %v2180_v59 = vand.u32 4294901760, %v9147_v7 }
 0x197   :  { %6838 = vmatprep.subr.mxu1 %v7955_v1  ;;  %6795 = vmatprep.subr.mxu0 %v7955_v1  ;;  %v9154_v19 = vand.u32 4294901760, %v2035_v10  ;;  %v2175_v31 = vand.u32 4294901760, %v2174_v24 }
 0x198   :  { %6839 = vmatpush3.msra.mxu1 %v8839_v51  ;;  %6796 = vmatpush3.msra.mxu0 %v1536_v29  ;;  %v2153_v29 = vsub.f32 %v9095_v38, %v2152_v62  ;;  %v2181_v22 = vsub.f32 %v9147_v7, %v2180_v59 }
 0x199   :  { %6840 = vmatprep.subr.mxu1 %v7955_v1  ;;  %6797 = vmatprep.subr.mxu0 %v7955_v1 }
 0x19a   :  { %6841 = vmatpush3.msra.mxu1 %v8854_v45  ;;  %6798 = vmatpush3.msra.mxu0 %v1543_v12  ;;  %v2034_v45 = vld [vmem:[#allocation2 + $0x1b0] sm:$0xff]  ;;  %v2166_v12 = vand.u32 4294901760, %v9125_v34  ;;  %v2154_v16 = vand.u32 4294901760, %v2153_v29  ;;  %v2182_v32 = vand.u32 4294901760, %v2181_v22  ;;  %v2208_v29 = vand.u32 4294901760, %v9211_v48 }
 0x19b   :  { %6842 = vmatprep.subr.mxu1 %v7955_v1  ;;  %6799 = vmatprep.subr.mxu0 %v7955_v1  ;;  %v624_v51 = vpop.f32.mrf.mxu0 }
 0x19c   :  { %6843 = vmatpush3.msra.mxu1 %v8866_v36  ;;  %6844 = vmatprep.mubr.msk.f32.mxu1 %vm7956_vm0, %v7955_v1  ;;  %v625_v15 = vadd.f32 %v624_v51, %v9021_v21  ;;  %v2160_v36 = vsub.f32 %v9106_v9, %v2159_v37  ;;  %v2167_v3 = vsub.f32 %v9125_v34, %v2166_v12 }
 0x19d   :  { %6800 = vmatpush3.msra.mxu0 %v1550_v6  ;;  %6845 = vmatmul.mubr.msk.f32.vlgmr.msra.gmra.mxu1 %vm1360_vm3, %v7957_v5  ;;  %v6391_v63 = vpop.f32.mrf.mxu0  ;;  %v9171_v6 = vand.u32 4294901760, %v2034_v45  ;;  %v9185_v21 = vsub.f32 %v2035_v10, %v9154_v19  ;;  %v9240_v51 = vsub.f32 %v2031_v20, %v9213_v13 }
 0x19e   :  { %6882 = vmatprep.subr.mxu1 %v7955_v1  ;;  %6801 = vmatprep.subr.mxu0 %v7955_v1  ;;  %v9174_v56 = vadd.f32 %v9081_v49, %v625_v15  ;;  %v2161_v42 = vand.u32 4294901760, %v2160_v36  ;;  %v9200_v49 = vand.u32 4294901760, %v2032_v50  ;;  %v2168_v0 = vand.u32 4294901760, %v2167_v3 }
 0x19f   :  { %6883 = vmatpush3.msra.mxu1 %v2140_v18  ;;  %6802 = vmatpush3.msra.mxu0 %v1557_v4  ;;  %v2187_v4 = vand.u32 4294901760, %v9166_v14  ;;  %v9198_v28 = vsub.f32 %v2034_v45, %v9171_v6  ;;  %v2194_v8 = vand.u32 4294901760, %v9185_v21 }
 0x1a0   :  { %6884 = vmatprep.subr.mxu1 %v7955_v1  ;;  %6803 = vmatprep.subr.mxu0 %v7955_v1  ;;  %v9225_v35 = vsub.f32 %v2032_v50, %v9200_v49  ;;  %v2222_v50 = vand.u32 4294901760, %v9240_v51 }
 0x1a1   :  { %6885 = vmatpush3.msra.mxu1 %v2147_v54  ;;  %6804 = vmatpush3.msra.mxu0 %v1564_v47  ;;  %v2030_v47 = vld [vmem:[#allocation2 + $0x190] sm:$0xff]  ;;  %v2188_v61 = vsub.f32 %v9166_v14, %v2187_v4  ;;  %v2201_v25 = vand.u32 4294901760, %v9198_v28  ;;  %v2195_v18 = vsub.f32 %v9185_v21, %v2194_v8 }
 0x1a2   :  { %6886 = vmatprep.subr.mxu1 %v7955_v1  ;;  %6805 = vmatprep.subr.mxu0 %v7955_v1  ;;  %v9227_v10 = vand.u32 4294901760, %v2030_v47  ;;  %v2215_v54 = vand.u32 4294901760, %v9225_v35 }
 0x1a3   :  { %6887 = vmatpush3.msra.mxu1 %v2154_v16  ;;  %6806 = vmatpush3.msra.mxu0 %v1571_v60  ;;  %v2029_v60 = vld [vmem:[#allocation2 + $0x188] sm:$0xff]  ;;  %v2189_v43 = vand.u32 4294901760, %v2188_v61  ;;  %v2202_v15 = vsub.f32 %v9198_v28, %v2201_v25  ;;  %v2196_v46 = vand.u32 4294901760, %v2195_v18  ;;  %v2209_v16 = vsub.f32 %v9211_v48, %v2208_v29  ;;  %v9292_v18 = vpop.permute.xlu1 %2023 }
 0x1a4   :  { %6888 = vmatprep.subr.mxu1 %v7955_v1  ;;  %6807 = vmatprep.subr.mxu0 %v7955_v1  ;;  %v9242_v45 = vand.u32 4294901760, %v2029_v60  ;;  %v9252_v36 = vsub.f32 %v2030_v47, %v9227_v10  ;;  %v2216_v20 = vsub.f32 %v9225_v35, %v2215_v54  ;;  %vm2025_vm4 = vcmp.eq.s32.totalorder %v8188_v58, %v9292_v18 }
 0x1a5   :  { %6889 = vmatpush3.msra.mxu1 %v2161_v42  ;;  %6808 = vmatpush3.msra.mxu0 %v1578_v2  ;;  %v2028_v2 = vld [vmem:[#allocation2 + $0x180] sm:$0xff]  ;;  %v2203_v42 = vand.u32 4294901760, %v2202_v15  ;;  %v2210_v47 = vand.u32 4294901760, %v2209_v16 }
 0x1a6   :  { %6809 = vmatprep.mubr.msk.f32.mxu0 %vm7956_vm0, %v7955_v1  ;;  %6890 = vmatprep.subr.mxu1 %v7955_v1  ;;  %v9254_v63 = vand.u32 4294901760, %v2028_v2  ;;  %v9264_v3 = vsub.f32 %v2029_v60, %v9242_v45  ;;  %v2229_v24 = vand.u32 4294901760, %v9252_v36  ;;  %v2217_v60 = vand.u32 4294901760, %v2216_v20 }
 0x1a7   :  { %6810 = vmatmul.mubr.msk.f32.vlgmr.msra.gmra.mxu0 %vm1360_vm3, %v7957_v5  ;;  %6847 = vmatprep.subr.mxu0 %v7955_v1  ;;  %v5377_v20 = vsel %vm2025_vm4, 1.0, %v7955_v1 }
 0x1a8   :  { %6891 = vmatpush3.msra.mxu1 %v2168_v0  ;;  %6848 = vmatpush3.msra.mxu0 %v9057_v23  ;;  %v9274_v22 = vsub.f32 %v2028_v2, %v9254_v63  ;;  %v2223_v0 = vsub.f32 %v9240_v51, %v2222_v50  ;;  %v2236_v61 = vand.u32 4294901760, %v9264_v3 }
 0x1a9   :  { %6892 = vmatprep.subr.mxu1 %v7955_v1  ;;  %6849 = vmatprep.subr.mxu0 %v7955_v1 }
 0x1aa   :  { %6893 = vmatpush3.msra.mxu1 %v2175_v31  ;;  %6850 = vmatpush3.msra.mxu0 %v9064_v26  ;;  %v2230_v31 = vsub.f32 %v9252_v36, %v2229_v24  ;;  %v2237_v15 = vsub.f32 %v9264_v3, %v2236_v61 }
 0x1ab   :  { %6894 = vmatprep.subr.mxu1 %v7955_v1  ;;  %6851 = vmatprep.subr.mxu0 %v7955_v1 }
 0x1ac   :  { %6895 = vmatpush3.msra.mxu1 %v2182_v32  ;;  %6852 = vmatpush3.msra.mxu0 %v9074_v40  ;;  %v2243_v32 = vand.u32 4294901760, %v9274_v22  ;;  %v2231_v16 = vand.u32 4294901760, %v2230_v31 }
 0x1ad   :  { %6896 = vmatprep.subr.mxu1 %v7955_v1  ;;  %6853 = vmatprep.subr.mxu0 %v7955_v1 }
 0x1ae   :  { %6897 = vmatpush3.msra.mxu1 %v2189_v43  ;;  %6854 = vmatpush3.msra.mxu0 %v9086_v57  ;;  %v2224_v43 = vand.u32 4294901760, %v2223_v0 }
 0x1af   :  { %6898 = vmatprep.subr.mxu1 %v7955_v1  ;;  %6855 = vmatprep.subr.mxu0 %v7955_v1 }
 0x1b0   :  { %6899 = vmatpush3.msra.mxu1 %v2196_v46  ;;  %6856 = vmatpush3.msra.mxu0 %v9100_v55 }
 0x1b1   :  { %6900 = vmatprep.subr.mxu1 %v7955_v1  ;;  %6857 = vmatprep.subr.mxu0 %v7955_v1 }
 0x1b2   :  { %6901 = vmatpush3.msra.mxu1 %v2203_v42  ;;  %6858 = vmatpush3.msra.mxu0 %v9111_v27  ;;  %v2244_v42 = vsub.f32 %v9274_v22, %v2243_v32 }
 0x1b3   :  { %6902 = vmatprep.subr.mxu1 %v7955_v1  ;;  %6859 = vmatprep.subr.mxu0 %v7955_v1  ;;  %v953_v2 = vpop.f32.mrf.mxu1 }
 0x1b4   :  { %6903 = vmatpush3.msra.mxu1 %v2210_v47  ;;  %6860 = vmatpush3.msra.mxu0 %v9119_v33  ;;  %v2238_v47 = vand.u32 4294901760, %v2237_v15  ;;  %v2245_v0 = vand.u32 4294901760, %v2244_v42 }
 0x1b5   :  { %6904 = vmatprep.subr.mxu1 %v7955_v1  ;;  %6861 = vmatprep.subr.mxu0 %v7955_v1  ;;  %v6496_v46 = vpop.f32.mrf.mxu1 }
 0x1b6   :  { %6905 = vmatpush3.msra.mxu1 %v2217_v60  ;;  %6862 = vmatpush3.msra.mxu0 %v9133_v53  ;;  %v9316_v60 = vsub.f32 %v5377_v20, %v5377_v20 }
 0x1b7   :  { %6906 = vmatprep.subr.mxu1 %v7955_v1  ;;  %6863 = vmatprep.subr.mxu0 %v7955_v1 }
 0x1b8   :  { %6907 = vmatpush3.msra.mxu1 %v2224_v43  ;;  %6864 = vmatpush3.msra.mxu0 %v9154_v19  ;;  %v2127_v15 = vand.u32 4294901760, %v9316_v60 }
 0x1b9   :  { %6908 = vmatprep.subr.mxu1 %v7955_v1  ;;  %6865 = vmatprep.subr.mxu0 %v7955_v1 }
 0x1ba   :  { %6909 = vmatpush3.msra.mxu1 %v2231_v16  ;;  %6866 = vmatpush3.msra.mxu0 %v9171_v6 }
 0x1bb   :  { %6910 = vmatprep.subr.mxu1 %v7955_v1  ;;  %6867 = vmatprep.subr.mxu0 %v7955_v1 }
 0x1bc   :  { %6911 = vmatpush3.msra.mxu1 %v2238_v47  ;;  %6868 = vmatpush3.msra.mxu0 %v9187_v17 }
 0x1bd   :  { %6912 = vmatprep.subr.mxu1 %v7955_v1  ;;  %6869 = vmatprep.subr.mxu0 %v7955_v1  ;;  %v802_v31 = vpop.f32.mrf.mxu0 }
 0x1be   :  { %6913 = vmatpush3.msra.mxu1 %v2245_v0  ;;  %6914 = vmatprep.mubr.msk.f32.mxu1 %vm7956_vm0, %v7955_v1  ;;  %v803_v43 = vadd.f32 %v802_v31, %v9174_v56  ;;  %v2128_v56 = vsub.f32 %v9316_v60, %v2127_v15 }
 0x1bf   :  { %6870 = vmatpush3.msra.mxu0 %v9200_v49  ;;  %6915 = vmatmul.mubr.msk.f32.vlgmr.msra.gmra.mxu1 %vm2025_vm4, %v7957_v5  ;;  %v6461_v46 = vpop.f32.mrf.mxu0 }
 0x1c0   :  { %6952 = vmatprep.subr.mxu1 %v7955_v1  ;;  %6871 = vmatprep.subr.mxu0 %v7955_v1  ;;  %v9334_v16 = vadd.f32 %v953_v2, %v803_v43  ;;  %v2129_v2 = vand.u32 4294901760, %v2128_v56 }
 0x1c1   :  { %6953 = vmatpush3.msra.mxu1 %v9057_v23  ;;  %6872 = vmatpush3.msra.mxu0 %v9213_v13 }
 0x1c2   :  { %6954 = vmatprep.subr.mxu1 %v7955_v1  ;;  %6873 = vmatprep.subr.mxu0 %v7955_v1 }
 0x1c3   :  { %6955 = vmatpush3.msra.mxu1 %v9064_v26  ;;  %6874 = vmatpush3.msra.mxu0 %v9227_v10 }
 0x1c4   :  { %6956 = vmatprep.subr.mxu1 %v7955_v1  ;;  %6875 = vmatprep.subr.mxu0 %v7955_v1 }
 0x1c5   :  { %6957 = vmatpush3.msra.mxu1 %v9074_v40  ;;  %6876 = vmatpush3.msra.mxu0 %v9242_v45 }
 0x1c6   :  { %6958 = vmatprep.subr.mxu1 %v7955_v1  ;;  %6877 = vmatprep.subr.mxu0 %v7955_v1 }
 0x1c7   :  { %6959 = vmatpush3.msra.mxu1 %v9086_v57  ;;  %6878 = vmatpush3.msra.mxu0 %v9254_v63 }
 0x1c8   :  { %6879 = vmatprep.mubr.msk.f32.mxu0 %vm7956_vm0, %v7955_v1  ;;  %6960 = vmatprep.subr.mxu1 %v7955_v1 }
 0x1c9   :  { %6880 = vmatmul.mubr.f32.vlgmr.msra.gmra.mxu0 %v2129_v2  ;;  %6917 = vmatprep.subr.mxu0 %v7955_v1  ;;  %v2698_v2 = vld [vmem:[#allocation2 + $0x228] sm:$0xff] }
 0x1ca   :  { %6961 = vmatpush3.msra.mxu1 %v9100_v55  ;;  %6918 = vmatpush3.msra.mxu0 %v9072_v30 }
 0x1cb   :  { %6962 = vmatprep.subr.mxu1 %v7955_v1  ;;  %6919 = vmatprep.subr.mxu0 %v7955_v1 }
 0x1cc   :  { %6963 = vmatpush3.msra.mxu1 %v9111_v27  ;;  %6920 = vmatpush3.msra.mxu0 %v9084_v52 }
 0x1cd   :  { %6964 = vmatprep.subr.mxu1 %v7955_v1  ;;  %6921 = vmatprep.subr.mxu0 %v7955_v1 }
 0x1ce   :  { %6965 = vmatpush3.msra.mxu1 %v9119_v33  ;;  %6922 = vmatpush3.msra.mxu0 %v9095_v38 }
 0x1cf   :  { %6966 = vmatprep.subr.mxu1 %v7955_v1  ;;  %6923 = vmatprep.subr.mxu0 %v7955_v1 }
 0x1d0   :  { %6967 = vmatpush3.msra.mxu1 %v9133_v53  ;;  %6924 = vmatpush3.msra.mxu0 %v9106_v9 }
 0x1d1   :  { %6968 = vmatprep.subr.mxu1 %v7955_v1  ;;  %6925 = vmatprep.subr.mxu0 %v7955_v1 }
 0x1d2   :  { %6969 = vmatpush3.msra.mxu1 %v9154_v19  ;;  %6926 = vmatpush3.msra.mxu0 %v9125_v34 }
 0x1d3   :  { %6970 = vmatprep.subr.mxu1 %v7955_v1  ;;  %6927 = vmatprep.subr.mxu0 %v7955_v1 }
 0x1d4   :  { %6971 = vmatpush3.msra.mxu1 %v9171_v6  ;;  %6928 = vmatpush3.msra.mxu0 %v9139_v39  ;;  %v2702_v39 = vld [vmem:[#allocation2 + $0x248] sm:$0xff] }
 0x1d5   :  { %6972 = vmatprep.subr.mxu1 %v7955_v1  ;;  %6929 = vmatprep.subr.mxu0 %v7955_v1  ;;  %v1146_v42 = vpop.f32.mrf.mxu1 }
 0x1d6   :  { %6973 = vmatpush3.msra.mxu1 %v9187_v17  ;;  %6930 = vmatpush3.msra.mxu0 %v9147_v7 }
 0x1d7   :  { %6974 = vmatprep.subr.mxu1 %v7955_v1  ;;  %6931 = vmatprep.subr.mxu0 %v7955_v1  ;;  %v6566_v20 = vpop.f32.mrf.mxu1 }
 0x1d8   :  { %6975 = vmatpush3.msra.mxu1 %v9200_v49  ;;  %6932 = vmatpush3.msra.mxu0 %v9166_v14  ;;  %v2701_v14 = vld [vmem:[#allocation2 + $0x240] sm:$0xff] }
 0x1d9   :  { %6976 = vmatprep.subr.mxu1 %v7955_v1  ;;  %6933 = vmatprep.subr.mxu0 %v7955_v1 }
 0x1da   :  { %6977 = vmatpush3.msra.mxu1 %v9213_v13  ;;  %6934 = vmatpush3.msra.mxu0 %v9185_v21 }
 0x1db   :  { %6978 = vmatprep.subr.mxu1 %v7955_v1  ;;  %6935 = vmatprep.subr.mxu0 %v7955_v1 }
 0x1dc   :  { %6979 = vmatpush3.msra.mxu1 %v9227_v10  ;;  %6936 = vmatpush3.msra.mxu0 %v9198_v28 }
 0x1dd   :  { %6980 = vmatprep.subr.mxu1 %v7955_v1  ;;  %6937 = vmatprep.subr.mxu0 %v7955_v1 }
 0x1de   :  { %6981 = vmatpush3.msra.mxu1 %v9242_v45  ;;  %6938 = vmatpush3.msra.mxu0 %v9211_v48 }
 0x1df   :  { %6982 = vmatprep.subr.mxu1 %v7955_v1  ;;  %6939 = vmatprep.subr.mxu0 %v7955_v1  ;;  %v1057_v47 = vpop.f32.mrf.mxu0 }
 0x1e0   :  { %6983 = vmatpush3.msra.mxu1 %v9254_v63  ;;  %6984 = vmatprep.mubr.msk.f32.mxu1 %vm7956_vm0, %v7955_v1  ;;  %v1058_v0 = vadd.f32 %v1057_v47, %v9334_v16 }
 0x1e1   :  { %6940 = vmatpush3.msra.mxu0 %v9225_v35  ;;  %6985 = vmatmul.mubr.f32.vlgmr.msra.gmra.mxu1 %v2127_v15  ;;  %v6531_v31 = vpop.f32.mrf.mxu0 }
 0x1e2   :  { %7022 = vmatprep.subr.mxu1 %v7955_v1  ;;  %6941 = vmatprep.subr.mxu0 %v7955_v1  ;;  %v9410_v43 = vadd.f32 %v1146_v42, %v1058_v0  ;;  %v2697_v0 = vld [vmem:[#allocation2 + $0x220] sm:$0xff] }
 0x1e3   :  { %7023 = vmatpush3.msra.mxu1 %v9057_v23  ;;  %6942 = vmatpush3.msra.mxu0 %v9240_v51  ;;  %v2708_v23 = vld [vmem:[#allocation2 + $0x278] sm:$0xff] }
 0x1e4   :  { %7024 = vmatprep.subr.mxu1 %v7955_v1  ;;  %6943 = vmatprep.subr.mxu0 %v7955_v1  ;;  %v9446_v30 = vand.u32 4294901760, %v2708_v23 }
 0x1e5   :  { %7025 = vmatpush3.msra.mxu1 %v9064_v26  ;;  %6944 = vmatpush3.msra.mxu0 %v9252_v36  ;;  %v2707_v26 = vld [vmem:[#allocation2 + $0x270] sm:$0xff] }
 0x1e6   :  { %7026 = vmatprep.subr.mxu1 %v7955_v1  ;;  %6945 = vmatprep.subr.mxu0 %v7955_v1  ;;  %v9453_v52 = vand.u32 4294901760, %v2707_v26 }
 0x1e7   :  { %7027 = vmatpush3.msra.mxu1 %v9074_v40  ;;  %6946 = vmatpush3.msra.mxu0 %v9264_v3  ;;  %v2706_v40 = vld [vmem:[#allocation2 + $0x268] sm:$0xff] }
 0x1e8   :  { %7028 = vmatprep.subr.mxu1 %v7955_v1  ;;  %6947 = vmatprep.subr.mxu0 %v7955_v1  ;;  %v9463_v38 = vand.u32 4294901760, %v2706_v40 }
 0x1e9   :  { %7029 = vmatpush3.msra.mxu1 %v9086_v57  ;;  %6948 = vmatpush3.msra.mxu0 %v9274_v22  ;;  %v2705_v57 = vld [vmem:[#allocation2 + $0x260] sm:$0xff] }
 0x1ea   :  { %6949 = vmatprep.mubr.msk.f32.mxu0 %vm7956_vm0, %v7955_v1  ;;  %7030 = vmatprep.subr.mxu1 %v7955_v1  ;;  %v9473_v9 = vand.u32 4294901760, %v2705_v57  ;;  %v9482_v34 = vsub.f32 %v2706_v40, %v9463_v38 }
 0x1eb   :  { %6950 = vmatmul.mubr.f32.vlgmr.msra.gmra.mxu0 %v9316_v60  ;;  %6987 = vmatprep.subr.mxu0 %v7955_v1 }
 0x1ec   :  { %7031 = vmatpush3.msra.mxu1 %v9100_v55  ;;  %6988 = vmatpush3.msra.mxu0 %v2138_v41  ;;  %v9461_v41 = vsub.f32 %v2708_v23, %v9446_v30  ;;  %v9573_v23 = vand.u32 4294901760, %v2698_v2 }
 0x1ed   :  { %7032 = vmatprep.subr.mxu1 %v7955_v1  ;;  %6989 = vmatprep.subr.mxu0 %v7955_v1 }
 0x1ee   :  { %7033 = vmatpush3.msra.mxu1 %v9111_v27  ;;  %6990 = vmatpush3.msra.mxu0 %v2145_v11  ;;  %v9471_v11 = vsub.f32 %v2707_v26, %v9453_v52  ;;  %v2704_v27 = vld [vmem:[#allocation2 + $0x258] sm:$0xff] }
 0x1ef   :  { %7034 = vmatprep.subr.mxu1 %v7955_v1  ;;  %6991 = vmatprep.subr.mxu0 %v7955_v1  ;;  %v2696_v26 = vld [vmem:[#allocation2 + $0x218] sm:$0xff] }
 0x1f0   :  { %7035 = vmatpush3.msra.mxu1 %v9119_v33  ;;  %6992 = vmatpush3.msra.mxu0 %v2152_v62  ;;  %v2803_v62 = vand.u32 4294901760, %v9461_v41  ;;  %v2810_v7 = vand.u32 4294901760, %v9471_v11 }
 0x1f1   :  { %7036 = vmatprep.subr.mxu1 %v7955_v1  ;;  %6993 = vmatprep.subr.mxu0 %v7955_v1 }
 0x1f2   :  { %7037 = vmatpush3.msra.mxu1 %v9133_v53  ;;  %6994 = vmatpush3.msra.mxu0 %v2159_v37  ;;  %v2703_v37 = vld [vmem:[#allocation2 + $0x250] sm:$0xff]  ;;  %v9487_v53 = vand.u32 4294901760, %v2704_v27 }
 0x1f3   :  { %7038 = vmatprep.subr.mxu1 %v7955_v1  ;;  %6995 = vmatprep.subr.mxu0 %v7955_v1 }
 0x1f4   :  { %7039 = vmatpush3.msra.mxu1 %v9154_v19  ;;  %6996 = vmatpush3.msra.mxu0 %v2166_v12  ;;  %v9493_v12 = vsub.f32 %v2705_v57, %v9473_v9  ;;  %v9498_v19 = vand.u32 4294901760, %v2703_v37  ;;  %v9512_v21 = vsub.f32 %v2704_v27, %v9487_v53 }
 0x1f5   :  { %7040 = vmatprep.subr.mxu1 %v7955_v1  ;;  %6997 = vmatprep.subr.mxu0 %v7955_v1 }
 0x1f6   :  { %7041 = vmatpush3.msra.mxu1 %v9171_v6  ;;  %6998 = vmatpush3.msra.mxu0 %v2173_v44  ;;  %v2804_v44 = vsub.f32 %v9461_v41, %v2803_v62  ;;  %v2817_v6 = vand.u32 4294901760, %v9482_v34  ;;  %v9526_v28 = vsub.f32 %v2703_v37, %v9498_v19  ;;  %v9597_v37 = vsub.f32 %v2698_v2, %v9573_v23 }
 0x1f7   :  { %7042 = vmatprep.subr.mxu1 %v7955_v1  ;;  %6999 = vmatprep.subr.mxu0 %v7955_v1  ;;  %v1352_v55 = vpop.f32.mrf.mxu1 }
 0x1f8   :  { %7043 = vmatpush3.msra.mxu1 %v9187_v17  ;;  %7000 = vmatpush3.msra.mxu0 %v2180_v59  ;;  %v9506_v59 = vand.u32 4294901760, %v2702_v39  ;;  %v2811_v17 = vsub.f32 %v9471_v11, %v2810_v7 }
 0x1f9   :  { %7044 = vmatprep.subr.mxu1 %v7955_v1  ;;  %7001 = vmatprep.subr.mxu0 %v7955_v1  ;;  %v6636_v33 = vpop.f32.mrf.mxu1 }
 0x1fa   :  { %7045 = vmatpush3.msra.mxu1 %v9200_v49  ;;  %7002 = vmatpush3.msra.mxu0 %v2187_v4  ;;  %v2824_v4 = vand.u32 4294901760, %v9493_v12  ;;  %v9520_v49 = vand.u32 4294901760, %v2701_v14  ;;  %v9534_v60 = vsub.f32 %v2702_v39, %v9506_v59  ;;  %v2812_v46 = vand.u32 4294901760, %v2811_v17 }
 0x1fb   :  { %7046 = vmatprep.subr.mxu1 %v7955_v1  ;;  %7003 = vmatprep.subr.mxu0 %v7955_v1  ;;  %v9599_v39 = vand.u32 4294901760, %v2696_v26 }
 0x1fc   :  { %7047 = vmatpush3.msra.mxu1 %v9213_v13  ;;  %7004 = vmatpush3.msra.mxu0 %v2194_v8  ;;  %v2700_v8 = vld [vmem:[#allocation2 + $0x238] sm:$0xff]  ;;  %v2805_v13 = vand.u32 4294901760, %v2804_v44  ;;  %v9553_v56 = vsub.f32 %v2701_v14, %v9520_v49  ;;  %v2845_v47 = vand.u32 4294901760, %v9534_v60 }
 0x1fd   :  { %7048 = vmatprep.subr.mxu1 %v7955_v1  ;;  %7005 = vmatprep.subr.mxu0 %v7955_v1  ;;  %v9541_v15 = vand.u32 4294901760, %v2700_v8 }
 0x1fe   :  { %7049 = vmatpush3.msra.mxu1 %v9227_v10  ;;  %7006 = vmatpush3.msra.mxu0 %v2201_v25  ;;  %v2818_v25 = vsub.f32 %v9482_v34, %v2817_v6  ;;  %v2846_v36 = vsub.f32 %v9534_v60, %v2845_v47 }
 0x1ff   :  { %7050 = vmatprep.subr.mxu1 %v7955_v1  ;;  %7007 = vmatprep.subr.mxu0 %v7955_v1 }
 0x200   :  { %7051 = vmatpush3.msra.mxu1 %v9242_v45  ;;  %7008 = vmatpush3.msra.mxu0 %v2208_v29  ;;  %v2699_v45 = vld [vmem:[#allocation2 + $0x230] sm:$0xff]  ;;  %v2831_v29 = vand.u32 4294901760, %v9512_v21  ;;  %v2819_v20 = vand.u32 4294901760, %v2818_v25  ;;  %v2847_v22 = vand.u32 4294901760, %v2846_v36  ;;  %v2873_v25 = vand.u32 4294901760, %v9597_v37 }
 0x201   :  { %7052 = vmatprep.subr.mxu1 %v7955_v1  ;;  %7009 = vmatprep.subr.mxu0 %v7955_v1  ;;  %v1265_v10 = vpop.f32.mrf.mxu0  ;;  %v9560_v42 = vand.u32 4294901760, %v2699_v45 }
 0x202   :  { %7053 = vmatpush3.msra.mxu1 %v9254_v63  ;;  %7054 = vmatprep.mubr.msk.f32.mxu1 %vm7956_vm0, %v7955_v1  ;;  %v1266_v48 = vadd.f32 %v1265_v10, %v9410_v43  ;;  %v2825_v63 = vsub.f32 %v9493_v12, %v2824_v4  ;;  %v2832_v31 = vsub.f32 %v9512_v21, %v2831_v29 }
 0x203   :  { %7010 = vmatpush3.msra.mxu0 %v2215_v54  ;;  %7055 = vmatmul.mubr.msk.f32.vlgmr.msra.gmra.mxu1 %vm2025_vm4, %v7957_v5  ;;  %v6601_v16 = vpop.f32.mrf.mxu0  ;;  %v2838_v54 = vand.u32 4294901760, %v9526_v28  ;;  %v9571_v43 = vsub.f32 %v2700_v8, %v9541_v15  ;;  %v9584_v57 = vsub.f32 %v2699_v45, %v9560_v42  ;;  %v9626_v10 = vsub.f32 %v2696_v26, %v9599_v39 }
 0x204   :  { %7092 = vmatprep.subr.mxu1 %v7955_v1  ;;  %7011 = vmatprep.subr.mxu0 %v7955_v1  ;;  %v9557_v35 = vadd.f32 %v1352_v55, %v1266_v48  ;;  %v2826_v51 = vand.u32 4294901760, %v2825_v63  ;;  %v9586_v55 = vand.u32 4294901760, %v2697_v0  ;;  %v2833_v27 = vand.u32 4294901760, %v2832_v31 }
 0x205   :  { %7093 = vmatpush3.msra.mxu1 %v2805_v13  ;;  %7012 = vmatpush3.msra.mxu0 %v2222_v50  ;;  %v2852_v50 = vand.u32 4294901760, %v9553_v56  ;;  %v2839_v40 = vsub.f32 %v9526_v28, %v2838_v54  ;;  %v2859_v33 = vand.u32 4294901760, %v9571_v43  ;;  %v2866_v44 = vand.u32 4294901760, %v9584_v57 }
 0x206   :  { %7094 = vmatprep.subr.mxu1 %v7955_v1  ;;  %7013 = vmatprep.subr.mxu0 %v7955_v1  ;;  %v9611_v17 = vsub.f32 %v2697_v0, %v9586_v55  ;;  %v2887_v0 = vand.u32 4294901760, %v9626_v10 }
 0x207   :  { %7095 = vmatpush3.msra.mxu1 %v2812_v46  ;;  %7014 = vmatpush3.msra.mxu0 %v2229_v24  ;;  %v2695_v24 = vld [vmem:[#allocation2 + $0x210] sm:$0xff]  ;;  %v2853_v3 = vsub.f32 %v9553_v56, %v2852_v50  ;;  %v2840_v14 = vand.u32 4294901760, %v2839_v40  ;;  %v2860_v13 = vsub.f32 %v9571_v43, %v2859_v33  ;;  %v2867_v48 = vsub.f32 %v9584_v57, %v2866_v44 }
 0x208   :  { %7096 = vmatprep.subr.mxu1 %v7955_v1  ;;  %7015 = vmatprep.subr.mxu0 %v7955_v1  ;;  %v9613_v8 = vand.u32 4294901760, %v2695_v24  ;;  %v2880_v46 = vand.u32 4294901760, %v9611_v17 }
 0x209   :  { %7097 = vmatpush3.msra.mxu1 %v2819_v20  ;;  %7016 = vmatpush3.msra.mxu0 %v2236_v61  ;;  %v2694_v61 = vld [vmem:[#allocation2 + $0x208] sm:$0xff]  ;;  %v2854_v18 = vand.u32 4294901760, %v2853_v3  ;;  %v2861_v2 = vand.u32 4294901760, %v2860_v13  ;;  %v2874_v20 = vsub.f32 %v9597_v37, %v2873_v25 }
 0x20a   :  { %7098 = vmatprep.subr.mxu1 %v7955_v1  ;;  %7017 = vmatprep.subr.mxu0 %v7955_v1  ;;  %v9628_v45 = vand.u32 4294901760, %v2694_v61  ;;  %v9638_v63 = vsub.f32 %v2695_v24, %v9613_v8  ;;  %v2881_v26 = vsub.f32 %v9611_v17, %v2880_v46 }
 0x20b   :  { %7099 = vmatpush3.msra.mxu1 %v2826_v51  ;;  %7018 = vmatpush3.msra.mxu0 %v2243_v32  ;;  %v2693_v32 = vld [vmem:[#allocation2 + $0x200] sm:$0xff]  ;;  %v2868_v51 = vand.u32 4294901760, %v2867_v48  ;;  %v2875_v24 = vand.u32 4294901760, %v2874_v20 }
 0x20c   :  { %7019 = vmatprep.mubr.msk.f32.mxu0 %vm7956_vm0, %v7955_v1  ;;  %7100 = vmatprep.subr.mxu1 %v7955_v1  ;;  %v9640_v16 = vand.u32 4294901760, %v2693_v32  ;;  %v9650_v31 = vsub.f32 %v2694_v61, %v9628_v45  ;;  %v2894_v40 = vand.u32 4294901760, %v9638_v63  ;;  %v9671_v61 = vpop.permute.xlu0 %2688 }
 0x20d   :  { %7020 = vmatmul.mubr.msk.f32.vlgmr.msra.gmra.mxu0 %vm2025_vm4, %v7957_v5  ;;  %7057 = vmatprep.subr.mxu0 %v7955_v1  ;;  %vm2690_vm5 = vcmp.eq.s32.totalorder %v8188_v58, %v9671_v61 }
 0x20e   :  { %7101 = vmatpush3.msra.mxu1 %v2833_v27  ;;  %7058 = vmatpush3.msra.mxu0 %v9446_v30  ;;  %v9660_v36 = vsub.f32 %v2693_v32, %v9640_v16  ;;  %v2888_v27 = vsub.f32 %v9626_v10, %v2887_v0  ;;  %v2901_v3 = vand.u32 4294901760, %v9650_v31 }
 0x20f   :  { %7102 = vmatprep.subr.mxu1 %v7955_v1  ;;  %7059 = vmatprep.subr.mxu0 %v7955_v1 }
 0x210   :  { %7103 = vmatpush3.msra.mxu1 %v2840_v14  ;;  %7060 = vmatpush3.msra.mxu0 %v9453_v52  ;;  %v2882_v14 = vand.u32 4294901760, %v2881_v26  ;;  %v2908_v32 = vand.u32 4294901760, %v9660_v36  ;;  %v2902_v48 = vsub.f32 %v9650_v31, %v2901_v3  ;;  %v5382_v26 = vsel %vm2690_vm5, 1.0, %v7955_v1 }
 0x211   :  { %7104 = vmatprep.subr.mxu1 %v7955_v1  ;;  %7061 = vmatprep.subr.mxu0 %v7955_v1 }
 0x212   :  { %7105 = vmatpush3.msra.mxu1 %v2847_v22  ;;  %7062 = vmatpush3.msra.mxu0 %v9463_v38  ;;  %v2895_v22 = vsub.f32 %v9638_v63, %v2894_v40 }
 0x213   :  { %7106 = vmatprep.subr.mxu1 %v7955_v1  ;;  %7063 = vmatprep.subr.mxu0 %v7955_v1 }
 0x214   :  { %7107 = vmatpush3.msra.mxu1 %v2854_v18  ;;  %7064 = vmatpush3.msra.mxu0 %v9473_v9  ;;  %v2889_v18 = vand.u32 4294901760, %v2888_v27  ;;  %v2896_v20 = vand.u32 4294901760, %v2895_v22 }
 0x215   :  { %7108 = vmatprep.subr.mxu1 %v7955_v1  ;;  %7065 = vmatprep.subr.mxu0 %v7955_v1 }
 0x216   :  { %7109 = vmatpush3.msra.mxu1 %v2861_v2  ;;  %7066 = vmatpush3.msra.mxu0 %v9487_v53 }
 0x217   :  { %7110 = vmatprep.subr.mxu1 %v7955_v1  ;;  %7067 = vmatprep.subr.mxu0 %v7955_v1 }
 0x218   :  { %7111 = vmatpush3.msra.mxu1 %v2868_v51  ;;  %7068 = vmatpush3.msra.mxu0 %v9498_v19  ;;  %v2909_v51 = vsub.f32 %v9660_v36, %v2908_v32 }
 0x219   :  { %7112 = vmatprep.subr.mxu1 %v7955_v1  ;;  %7069 = vmatprep.subr.mxu0 %v7955_v1  ;;  %v1617_v13 = vpop.f32.mrf.mxu1 }
 0x21a   :  { %7113 = vmatpush3.msra.mxu1 %v2875_v24  ;;  %7070 = vmatpush3.msra.mxu0 %v9506_v59  ;;  %v2903_v24 = vand.u32 4294901760, %v2902_v48  ;;  %v2910_v27 = vand.u32 4294901760, %v2909_v51 }
 0x21b   :  { %7114 = vmatprep.subr.mxu1 %v7955_v1  ;;  %7071 = vmatprep.subr.mxu0 %v7955_v1  ;;  %v6706_v2 = vpop.f32.mrf.mxu1 }
 0x21c   :  { %7115 = vmatpush3.msra.mxu1 %v2882_v14  ;;  %7072 = vmatpush3.msra.mxu0 %v9520_v49  ;;  %v9702_v14 = vsub.f32 %v5382_v26, %v5382_v26 }
 0x21d   :  { %7116 = vmatprep.subr.mxu1 %v7955_v1  ;;  %7073 = vmatprep.subr.mxu0 %v7955_v1 }
 0x21e   :  { %7117 = vmatpush3.msra.mxu1 %v2889_v18  ;;  %7074 = vmatpush3.msra.mxu0 %v9541_v15  ;;  %v2792_v48 = vand.u32 4294901760, %v9702_v14 }
 0x21f   :  { %7118 = vmatprep.subr.mxu1 %v7955_v1  ;;  %7075 = vmatprep.subr.mxu0 %v7955_v1 }
 0x220   :  { %7119 = vmatpush3.msra.mxu1 %v2896_v20  ;;  %7076 = vmatpush3.msra.mxu0 %v9560_v42 }
 0x221   :  { %7120 = vmatprep.subr.mxu1 %v7955_v1  ;;  %7077 = vmatprep.subr.mxu0 %v7955_v1 }
 0x222   :  { %7121 = vmatpush3.msra.mxu1 %v2903_v24  ;;  %7078 = vmatpush3.msra.mxu0 %v9573_v23 }
 0x223   :  { %7122 = vmatprep.subr.mxu1 %v7955_v1  ;;  %7079 = vmatprep.subr.mxu0 %v7955_v1  ;;  %v1466_v22 = vpop.f32.mrf.mxu0 }
 0x224   :  { %7123 = vmatpush3.msra.mxu1 %v2910_v27  ;;  %7124 = vmatprep.mubr.msk.f32.mxu1 %vm7956_vm0, %v7955_v1  ;;  %v9711_v18 = vadd.f32 %v1617_v13, %v1466_v22  ;;  %v2793_v13 = vsub.f32 %v9702_v14, %v2792_v48 }
 0x225   :  { %7080 = vmatpush3.msra.mxu0 %v9586_v55  ;;  %7125 = vmatmul.mubr.msk.f32.vlgmr.msra.gmra.mxu1 %vm2690_vm5, %v7957_v5  ;;  %v6671_v2 = vpop.f32.mrf.mxu0 }
 0x226   :  { %7162 = vmatprep.subr.mxu1 %v7955_v1  ;;  %7081 = vmatprep.subr.mxu0 %v7955_v1  ;;  %v2794_v20 = vand.u32 4294901760, %v2793_v13 }
 0x227   :  { %7163 = vmatpush3.msra.mxu1 %v9446_v30  ;;  %7082 = vmatpush3.msra.mxu0 %v9599_v39 }
 0x228   :  { %7164 = vmatprep.subr.mxu1 %v7955_v1  ;;  %7083 = vmatprep.subr.mxu0 %v7955_v1 }
 0x229   :  { %7165 = vmatpush3.msra.mxu1 %v9453_v52  ;;  %7084 = vmatpush3.msra.mxu0 %v9613_v8 }
 0x22a   :  { %7166 = vmatprep.subr.mxu1 %v7955_v1  ;;  %7085 = vmatprep.subr.mxu0 %v7955_v1 }
 0x22b   :  { %7167 = vmatpush3.msra.mxu1 %v9463_v38  ;;  %7086 = vmatpush3.msra.mxu0 %v9628_v45 }
 0x22c   :  { %7168 = vmatprep.subr.mxu1 %v7955_v1  ;;  %7087 = vmatprep.subr.mxu0 %v7955_v1 }
 0x22d   :  { %7169 = vmatpush3.msra.mxu1 %v9473_v9  ;;  %7088 = vmatpush3.msra.mxu0 %v9640_v16 }
 0x22e   :  { %7089 = vmatprep.mubr.msk.f32.mxu0 %vm7956_vm0, %v7955_v1  ;;  %7170 = vmatprep.subr.mxu1 %v7955_v1 }
 0x22f   :  { %7090 = vmatmul.mubr.f32.vlgmr.msra.gmra.mxu0 %v2794_v20  ;;  %7127 = vmatprep.subr.mxu0 %v7955_v1 }
 0x230   :  { %7171 = vmatpush3.msra.mxu1 %v9487_v53  ;;  %7128 = vmatpush3.msra.mxu0 %v9461_v41 }
 0x231   :  { %7172 = vmatprep.subr.mxu1 %v7955_v1  ;;  %7129 = vmatprep.subr.mxu0 %v7955_v1 }
 0x232   :  { %7173 = vmatpush3.msra.mxu1 %v9498_v19  ;;  %7130 = vmatpush3.msra.mxu0 %v9471_v11 }
 0x233   :  { %7174 = vmatprep.subr.mxu1 %v7955_v1  ;;  %7131 = vmatprep.subr.mxu0 %v7955_v1 }
 0x234   :  { %7175 = vmatpush3.msra.mxu1 %v9506_v59  ;;  %7132 = vmatpush3.msra.mxu0 %v9482_v34 }
 0x235   :  { %7176 = vmatprep.subr.mxu1 %v7955_v1  ;;  %7133 = vmatprep.subr.mxu0 %v7955_v1 }
 0x236   :  { %7177 = vmatpush3.msra.mxu1 %v9520_v49  ;;  %7134 = vmatpush3.msra.mxu0 %v9493_v12 }
 0x237   :  { %7178 = vmatprep.subr.mxu1 %v7955_v1  ;;  %7135 = vmatprep.subr.mxu0 %v7955_v1 }
 0x238   :  { %7179 = vmatpush3.msra.mxu1 %v9541_v15  ;;  %7136 = vmatpush3.msra.mxu0 %v9512_v21 }
 0x239   :  { %7180 = vmatprep.subr.mxu1 %v7955_v1  ;;  %7137 = vmatprep.subr.mxu0 %v7955_v1 }
 0x23a   :  { %7181 = vmatpush3.msra.mxu1 %v9560_v42  ;;  %7138 = vmatpush3.msra.mxu0 %v9526_v28  ;;  %v3367_v28 = vld [vmem:[#allocation2 + $0x2c8] sm:$0xff] }
 0x23b   :  { %7182 = vmatprep.subr.mxu1 %v7955_v1  ;;  %7139 = vmatprep.subr.mxu0 %v7955_v1  ;;  %v1810_v51 = vpop.f32.mrf.mxu1 }
 0x23c   :  { %7183 = vmatpush3.msra.mxu1 %v9573_v23  ;;  %7140 = vmatpush3.msra.mxu0 %v9534_v60 }
 0x23d   :  { %7184 = vmatprep.subr.mxu1 %v7955_v1  ;;  %7141 = vmatprep.subr.mxu0 %v7955_v1  ;;  %v6776_v26 = vpop.f32.mrf.mxu1 }
 0x23e   :  { %7185 = vmatpush3.msra.mxu1 %v9586_v55  ;;  %7142 = vmatpush3.msra.mxu0 %v9553_v56  ;;  %v3366_v56 = vld [vmem:[#allocation2 + $0x2c0] sm:$0xff] }
 0x23f   :  { %7186 = vmatprep.subr.mxu1 %v7955_v1  ;;  %7143 = vmatprep.subr.mxu0 %v7955_v1 }
 0x240   :  { %7187 = vmatpush3.msra.mxu1 %v9599_v39  ;;  %7144 = vmatpush3.msra.mxu0 %v9571_v43 }
 0x241   :  { %7188 = vmatprep.subr.mxu1 %v7955_v1  ;;  %7145 = vmatprep.subr.mxu0 %v7955_v1 }
 0x242   :  { %7189 = vmatpush3.msra.mxu1 %v9613_v8  ;;  %7146 = vmatpush3.msra.mxu0 %v9584_v57 }
 0x243   :  { %7190 = vmatprep.subr.mxu1 %v7955_v1  ;;  %7147 = vmatprep.subr.mxu0 %v7955_v1 }
 0x244   :  { %7191 = vmatpush3.msra.mxu1 %v9628_v45  ;;  %7148 = vmatpush3.msra.mxu0 %v9597_v37 }
 0x245   :  { %7192 = vmatprep.subr.mxu1 %v7955_v1  ;;  %7149 = vmatprep.subr.mxu0 %v7955_v1  ;;  %v1721_v24 = vpop.f32.mrf.mxu0 }
 0x246   :  { %7193 = vmatpush3.msra.mxu1 %v9640_v16  ;;  %7194 = vmatprep.mubr.msk.f32.mxu1 %vm7956_vm0, %v7955_v1  ;;  %v1722_v27 = vadd.f32 %v1721_v24, %v9711_v18 }
 0x247   :  { %7150 = vmatpush3.msra.mxu0 %v9611_v17  ;;  %7195 = vmatmul.mubr.f32.vlgmr.msra.gmra.mxu1 %v2792_v48  ;;  %v6741_v22 = vpop.f32.mrf.mxu0 }
 0x248   :  { %7232 = vmatprep.subr.mxu1 %v7955_v1  ;;  %7151 = vmatprep.subr.mxu0 %v7955_v1  ;;  %v9795_v2 = vadd.f32 %v1810_v51, %v1722_v27  ;;  %v3363_v51 = vld [vmem:[#allocation2 + $0x2a8] sm:$0xff]  ;;  %v3362_v22 = vld [vmem:[#allocation2 + $0x2a0] sm:$0xff] }
 0x249   :  { %7233 = vmatpush3.msra.mxu1 %v9446_v30  ;;  %7152 = vmatpush3.msra.mxu0 %v9626_v10  ;;  %v3373_v30 = vld [vmem:[#allocation2 + $0x2f8] sm:$0xff]  ;;  %v9959_v10 = vand.u32 4294901760, %v3363_v51 }
 0x24a   :  { %7234 = vmatprep.subr.mxu1 %v7955_v1  ;;  %7153 = vmatprep.subr.mxu0 %v7955_v1  ;;  %v9831_v41 = vand.u32 4294901760, %v3373_v30 }
 0x24b   :  { %7235 = vmatpush3.msra.mxu1 %v9453_v52  ;;  %7154 = vmatpush3.msra.mxu0 %v9638_v63  ;;  %v3372_v52 = vld [vmem:[#allocation2 + $0x2f0] sm:$0xff] }
 0x24c   :  { %7236 = vmatprep.subr.mxu1 %v7955_v1  ;;  %7155 = vmatprep.subr.mxu0 %v7955_v1  ;;  %v9838_v11 = vand.u32 4294901760, %v3372_v52 }
 0x24d   :  { %7237 = vmatpush3.msra.mxu1 %v9463_v38  ;;  %7156 = vmatpush3.msra.mxu0 %v9650_v31  ;;  %v3371_v38 = vld [vmem:[#allocation2 + $0x2e8] sm:$0xff] }
 0x24e   :  { %7238 = vmatprep.subr.mxu1 %v7955_v1  ;;  %7157 = vmatprep.subr.mxu0 %v7955_v1  ;;  %v9848_v34 = vand.u32 4294901760, %v3371_v38 }
 0x24f   :  { %7239 = vmatpush3.msra.mxu1 %v9473_v9  ;;  %7158 = vmatpush3.msra.mxu0 %v9660_v36  ;;  %v3370_v9 = vld [vmem:[#allocation2 + $0x2e0] sm:$0xff] }
 0x250   :  { %7159 = vmatprep.mubr.msk.f32.mxu0 %vm7956_vm0, %v7955_v1  ;;  %7240 = vmatprep.subr.mxu1 %v7955_v1  ;;  %v9858_v12 = vand.u32 4294901760, %v3370_v9  ;;  %v9867_v21 = vsub.f32 %v3371_v38, %v9848_v34 }
 0x251   :  { %7160 = vmatmul.mubr.f32.vlgmr.msra.gmra.mxu0 %v9702_v14  ;;  %7197 = vmatprep.subr.mxu0 %v7955_v1 }
 0x252   :  { %7241 = vmatpush3.msra.mxu1 %v9487_v53  ;;  %7198 = vmatpush3.msra.mxu0 %v2803_v62  ;;  %v9846_v62 = vsub.f32 %v3373_v30, %v9831_v41 }
 0x253   :  { %7242 = vmatprep.subr.mxu1 %v7955_v1  ;;  %7199 = vmatprep.subr.mxu0 %v7955_v1 }
 0x254   :  { %7243 = vmatpush3.msra.mxu1 %v9498_v19  ;;  %7200 = vmatpush3.msra.mxu0 %v2810_v7  ;;  %v9856_v7 = vsub.f32 %v3372_v52, %v9838_v11  ;;  %v3369_v19 = vld [vmem:[#allocation2 + $0x2d8] sm:$0xff] }
 0x255   :  { %7244 = vmatprep.subr.mxu1 %v7955_v1  ;;  %7201 = vmatprep.subr.mxu0 %v7955_v1 }
 0x256   :  { %7245 = vmatpush3.msra.mxu1 %v9506_v59  ;;  %7202 = vmatpush3.msra.mxu0 %v2817_v6  ;;  %v3468_v6 = vand.u32 4294901760, %v9846_v62  ;;  %v3475_v60 = vand.u32 4294901760, %v9856_v7 }
 0x257   :  { %7246 = vmatprep.subr.mxu1 %v7955_v1  ;;  %7203 = vmatprep.subr.mxu0 %v7955_v1 }
 0x258   :  { %7247 = vmatpush3.msra.mxu1 %v9520_v49  ;;  %7204 = vmatpush3.msra.mxu0 %v2824_v4  ;;  %v3368_v4 = vld [vmem:[#allocation2 + $0x2d0] sm:$0xff]  ;;  %v9872_v49 = vand.u32 4294901760, %v3369_v19 }
 0x259   :  { %7248 = vmatprep.subr.mxu1 %v7955_v1  ;;  %7205 = vmatprep.subr.mxu0 %v7955_v1 }
 0x25a   :  { %7249 = vmatpush3.msra.mxu1 %v9541_v15  ;;  %7206 = vmatpush3.msra.mxu0 %v2831_v29  ;;  %v9878_v29 = vsub.f32 %v3370_v9, %v9858_v12  ;;  %v9883_v15 = vand.u32 4294901760, %v3368_v4  ;;  %v9897_v43 = vsub.f32 %v3369_v19, %v9872_v49  ;;  %v3361_v9 = vld [vmem:[#allocation2 + $0x298] sm:$0xff]  ;;  %v9972_v19 = vand.u32 4294901760, %v3362_v22 }
 0x25b   :  { %7250 = vmatprep.subr.mxu1 %v7955_v1  ;;  %7207 = vmatprep.subr.mxu0 %v7955_v1 }
 0x25c   :  { %7251 = vmatpush3.msra.mxu1 %v9560_v42  ;;  %7208 = vmatpush3.msra.mxu0 %v2838_v54  ;;  %v3469_v54 = vsub.f32 %v9846_v62, %v3468_v6  ;;  %v3482_v42 = vand.u32 4294901760, %v9867_v21  ;;  %v9911_v57 = vsub.f32 %v3368_v4, %v9883_v15 }
 0x25d   :  { %7252 = vmatprep.subr.mxu1 %v7955_v1  ;;  %7209 = vmatprep.subr.mxu0 %v7955_v1  ;;  %v2016_v53 = vpop.f32.mrf.mxu1 }
 0x25e   :  { %7253 = vmatpush3.msra.mxu1 %v9573_v23  ;;  %7210 = vmatpush3.msra.mxu0 %v2845_v47  ;;  %v9891_v47 = vand.u32 4294901760, %v3367_v28  ;;  %v3476_v23 = vsub.f32 %v9856_v7, %v3475_v60 }
 0x25f   :  { %7254 = vmatprep.subr.mxu1 %v7955_v1  ;;  %7211 = vmatprep.subr.mxu0 %v7955_v1  ;;  %v6846_v59 = vpop.f32.mrf.mxu1 }
 0x260   :  { %7255 = vmatpush3.msra.mxu1 %v9586_v55  ;;  %7212 = vmatpush3.msra.mxu0 %v2852_v50  ;;  %v3489_v50 = vand.u32 4294901760, %v9878_v29  ;;  %v9905_v55 = vand.u32 4294901760, %v3366_v56  ;;  %v9919_v14 = vsub.f32 %v3367_v28, %v9891_v47  ;;  %v3477_v48 = vand.u32 4294901760, %v3476_v23 }
 0x261   :  { %7256 = vmatprep.subr.mxu1 %v7955_v1  ;;  %7213 = vmatprep.subr.mxu0 %v7955_v1  ;;  %v9983_v28 = vsub.f32 %v3363_v51, %v9959_v10 }
 0x262   :  { %7257 = vmatpush3.msra.mxu1 %v9599_v39  ;;  %7214 = vmatpush3.msra.mxu0 %v2859_v33  ;;  %v3365_v33 = vld [vmem:[#allocation2 + $0x2b8] sm:$0xff]  ;;  %v3470_v39 = vand.u32 4294901760, %v3469_v54  ;;  %v9938_v20 = vsub.f32 %v3366_v56, %v9905_v55  ;;  %v3510_v27 = vand.u32 4294901760, %v9919_v14  ;;  %v9985_v56 = vand.u32 4294901760, %v3361_v9 }
 0x263   :  { %7258 = vmatprep.subr.mxu1 %v7955_v1  ;;  %7215 = vmatprep.subr.mxu0 %v7955_v1  ;;  %v9926_v18 = vand.u32 4294901760, %v3365_v33 }
 0x264   :  { %7259 = vmatpush3.msra.mxu1 %v9613_v8  ;;  %7216 = vmatpush3.msra.mxu0 %v2866_v44  ;;  %v3483_v44 = vsub.f32 %v9867_v21, %v3482_v42  ;;  %v3517_v38 = vand.u32 4294901760, %v9938_v20  ;;  %v3511_v63 = vsub.f32 %v9919_v14, %v3510_v27 }
 0x265   :  { %7260 = vmatprep.subr.mxu1 %v7955_v1  ;;  %7217 = vmatprep.subr.mxu0 %v7955_v1  ;;  %v9957_v52 = vsub.f32 %v3365_v33, %v9926_v18  ;;  %v9997_v33 = vsub.f32 %v3362_v22, %v9972_v19 }
 0x266   :  { %7261 = vmatpush3.msra.mxu1 %v9628_v45  ;;  %7218 = vmatpush3.msra.mxu0 %v2873_v25  ;;  %v3364_v45 = vld [vmem:[#allocation2 + $0x2b0] sm:$0xff]  ;;  %v3496_v25 = vand.u32 4294901760, %v9897_v43  ;;  %v3484_v24 = vand.u32 4294901760, %v3483_v44  ;;  %v3518_v31 = vsub.f32 %v9938_v20, %v3517_v38  ;;  %v3512_v36 = vand.u32 4294901760, %v3511_v63 }
 0x267   :  { %7262 = vmatprep.subr.mxu1 %v7955_v1  ;;  %7219 = vmatprep.subr.mxu0 %v7955_v1  ;;  %v1929_v8 = vpop.f32.mrf.mxu0  ;;  %v9943_v26 = vand.u32 4294901760, %v3364_v45  ;;  %v3524_v4 = vand.u32 4294901760, %v9957_v52 }
 0x268   :  { %7263 = vmatpush3.msra.mxu1 %v9640_v16  ;;  %7264 = vmatprep.mubr.msk.f32.mxu1 %vm7956_vm0, %v7955_v1  ;;  %v1930_v37 = vadd.f32 %v1929_v8, %v9795_v2  ;;  %v3490_v16 = vsub.f32 %v9878_v29, %v3489_v50  ;;  %v3497_v30 = vsub.f32 %v9897_v43, %v3496_v25  ;;  %v3538_v8 = vand.u32 4294901760, %v9983_v28 }
 0x269   :  { %7220 = vmatpush3.msra.mxu0 %v2880_v46  ;;  %7265 = vmatmul.mubr.msk.f32.vlgmr.msra.gmra.mxu1 %vm2690_vm5, %v7957_v5  ;;  %v6811_v13 = vpop.f32.mrf.mxu0  ;;  %v3503_v46 = vand.u32 4294901760, %v9911_v57  ;;  %v3525_v44 = vsub.f32 %v9957_v52, %v3524_v4  ;;  %v3519_v61 = vand.u32 4294901760, %v3518_v31 }
 0x26a   :  { %7302 = vmatprep.subr.mxu1 %v7955_v1  ;;  %7221 = vmatprep.subr.mxu0 %v7955_v1  ;;  %v2017_v17 = vadd.f32 %v2016_v53, %v1930_v37  ;;  %v9970_v53 = vsub.f32 %v3364_v45, %v9943_v26  ;;  %v3498_v59 = vand.u32 4294901760, %v3497_v30  ;;  %v10012_v45 = vsub.f32 %v3361_v9, %v9985_v56 }
 0x26b   :  { %7303 = vmatpush3.msra.mxu1 %v3470_v39  ;;  %7222 = vmatpush3.msra.mxu0 %v2887_v0  ;;  %v3491_v0 = vand.u32 4294901760, %v3490_v16  ;;  %v3545_v16 = vand.u32 4294901760, %v9997_v33 }
 0x26c   :  { %7304 = vmatprep.subr.mxu1 %v7955_v1  ;;  %7223 = vmatprep.subr.mxu0 %v7955_v1  ;;  %v9951_v2 = vadd.f32 %v2017_v17, %v9557_v35  ;;  %v3504_v35 = vsub.f32 %v9911_v57, %v3503_v46  ;;  %v3531_v23 = vand.u32 4294901760, %v9970_v53  ;;  %v3526_v17 = vand.u32 4294901760, %v3525_v44  ;;  %v10064_v44 = vpop.permute.xlu1 %3353 }
 0x26d   :  { %7305 = vmatpush3.msra.mxu1 %v3477_v48  ;;  %7224 = vmatpush3.msra.mxu0 %v2894_v40  ;;  %v3360_v40 = vld [vmem:[#allocation2 + $0x290] sm:$0xff]  ;;  %v3552_v22 = vand.u32 4294901760, %v10012_v45  ;;  %v3546_v9 = vsub.f32 %v9997_v33, %v3545_v16  ;;  %vm3355_vm6 = vcmp.eq.s32.totalorder %v8188_v58, %v10064_v44 }
 0x26e   :  { %7306 = vmatprep.subr.mxu1 %v7955_v1  ;;  %7225 = vmatprep.subr.mxu0 %v7955_v1  ;;  %v3505_v54 = vand.u32 4294901760, %v3504_v35  ;;  %v9999_v39 = vand.u32 4294901760, %v3360_v40  ;;  %v3532_v48 = vsub.f32 %v9970_v53, %v3531_v23 }
 0x26f   :  { %7307 = vmatpush3.msra.mxu1 %v3484_v24  ;;  %7226 = vmatpush3.msra.mxu0 %v2901_v3  ;;  %v3359_v3 = vld [vmem:[#allocation2 + $0x288] sm:$0xff]  ;;  %v3539_v24 = vsub.f32 %v9983_v28, %v3538_v8 }
 0x270   :  { %7308 = vmatprep.subr.mxu1 %v7955_v1  ;;  %7227 = vmatprep.subr.mxu0 %v7955_v1  ;;  %v10014_v37 = vand.u32 4294901760, %v3359_v3  ;;  %v10024_v13 = vsub.f32 %v3360_v40, %v9999_v39 }
 0x271   :  { %7309 = vmatpush3.msra.mxu1 %v3491_v0  ;;  %7228 = vmatpush3.msra.mxu0 %v2908_v32  ;;  %v3358_v32 = vld [vmem:[#allocation2 + $0x280] sm:$0xff]  ;;  %v3533_v0 = vand.u32 4294901760, %v3532_v48  ;;  %v3540_v40 = vand.u32 4294901760, %v3539_v24 }
 0x272   :  { %7229 = vmatprep.mubr.msk.f32.mxu0 %vm7956_vm0, %v7955_v1  ;;  %7310 = vmatprep.subr.mxu1 %v7955_v1  ;;  %v10026_v51 = vand.u32 4294901760, %v3358_v32  ;;  %v10036_v30 = vsub.f32 %v3359_v3, %v10014_v37  ;;  %v3559_v35 = vand.u32 4294901760, %v10024_v13  ;;  %v3547_v3 = vand.u32 4294901760, %v3546_v9 }
 0x273   :  { %7230 = vmatmul.mubr.msk.f32.vlgmr.msra.gmra.mxu0 %vm2690_vm5, %v7957_v5  ;;  %7267 = vmatprep.subr.mxu0 %v7955_v1  ;;  %v5387_v9 = vsel %vm3355_vm6, 1.0, %v7955_v1 }
 0x274   :  { %7311 = vmatpush3.msra.mxu1 %v3498_v59  ;;  %7268 = vmatpush3.msra.mxu0 %v9831_v41  ;;  %v10046_v63 = vsub.f32 %v3358_v32, %v10026_v51  ;;  %v3553_v59 = vsub.f32 %v10012_v45, %v3552_v22  ;;  %v3566_v31 = vand.u32 4294901760, %v10036_v30 }
 0x275   :  { %7312 = vmatprep.subr.mxu1 %v7955_v1  ;;  %7269 = vmatprep.subr.mxu0 %v7955_v1 }
 0x276   :  { %7313 = vmatpush3.msra.mxu1 %v3505_v54  ;;  %7270 = vmatpush3.msra.mxu0 %v9838_v11  ;;  %v3560_v54 = vsub.f32 %v10024_v13, %v3559_v35  ;;  %v3567_v48 = vsub.f32 %v10036_v30, %v3566_v31 }
 0x277   :  { %7314 = vmatprep.subr.mxu1 %v7955_v1  ;;  %7271 = vmatprep.subr.mxu0 %v7955_v1 }
 0x278   :  { %7315 = vmatpush3.msra.mxu1 %v3512_v36  ;;  %7272 = vmatpush3.msra.mxu0 %v9848_v34  ;;  %v3573_v36 = vand.u32 4294901760, %v10046_v63  ;;  %v3561_v24 = vand.u32 4294901760, %v3560_v54 }
 0x279   :  { %7316 = vmatprep.subr.mxu1 %v7955_v1  ;;  %7273 = vmatprep.subr.mxu0 %v7955_v1 }
 0x27a   :  { %7317 = vmatpush3.msra.mxu1 %v3519_v61  ;;  %7274 = vmatpush3.msra.mxu0 %v9858_v12  ;;  %v3554_v61 = vand.u32 4294901760, %v3553_v59 }
 0x27b   :  { %7318 = vmatprep.subr.mxu1 %v7955_v1  ;;  %7275 = vmatprep.subr.mxu0 %v7955_v1 }
 0x27c   :  { %7319 = vmatpush3.msra.mxu1 %v3526_v17  ;;  %7276 = vmatpush3.msra.mxu0 %v9872_v49 }
 0x27d   :  { %7320 = vmatprep.subr.mxu1 %v7955_v1  ;;  %7277 = vmatprep.subr.mxu0 %v7955_v1 }
 0x27e   :  { %7321 = vmatpush3.msra.mxu1 %v3533_v0  ;;  %7278 = vmatpush3.msra.mxu0 %v9883_v15  ;;  %v3574_v0 = vsub.f32 %v10046_v63, %v3573_v36 }
 0x27f   :  { %7322 = vmatprep.subr.mxu1 %v7955_v1  ;;  %7279 = vmatprep.subr.mxu0 %v7955_v1  ;;  %v2282_v32 = vpop.f32.mrf.mxu1 }
 0x280   :  { %7323 = vmatpush3.msra.mxu1 %v3540_v40  ;;  %7280 = vmatpush3.msra.mxu0 %v9891_v47  ;;  %v3568_v40 = vand.u32 4294901760, %v3567_v48  ;;  %v3575_v59 = vand.u32 4294901760, %v3574_v0 }
 0x281   :  { %7324 = vmatprep.subr.mxu1 %v7955_v1  ;;  %7281 = vmatprep.subr.mxu0 %v7955_v1  ;;  %v6916_v17 = vpop.f32.mrf.mxu1 }
 0x282   :  { %7325 = vmatpush3.msra.mxu1 %v3547_v3  ;;  %7282 = vmatpush3.msra.mxu0 %v9905_v55  ;;  %v10088_v3 = vsub.f32 %v5387_v9, %v5387_v9 }
 0x283   :  { %7326 = vmatprep.subr.mxu1 %v7955_v1  ;;  %7283 = vmatprep.subr.mxu0 %v7955_v1 }
 0x284   :  { %7327 = vmatpush3.msra.mxu1 %v3554_v61  ;;  %7284 = vmatpush3.msra.mxu0 %v9926_v18  ;;  %v3457_v48 = vand.u32 4294901760, %v10088_v3 }
 0x285   :  { %7328 = vmatprep.subr.mxu1 %v7955_v1  ;;  %7285 = vmatprep.subr.mxu0 %v7955_v1 }
 0x286   :  { %7329 = vmatpush3.msra.mxu1 %v3561_v24  ;;  %7286 = vmatpush3.msra.mxu0 %v9943_v26 }
 0x287   :  { %7330 = vmatprep.subr.mxu1 %v7955_v1  ;;  %7287 = vmatprep.subr.mxu0 %v7955_v1 }
 0x288   :  { %7331 = vmatpush3.msra.mxu1 %v3568_v40  ;;  %7288 = vmatpush3.msra.mxu0 %v9959_v10 }
 0x289   :  { %7332 = vmatprep.subr.mxu1 %v7955_v1  ;;  %7289 = vmatprep.subr.mxu0 %v7955_v1  ;;  %v2131_v54 = vpop.f32.mrf.mxu0 }
 0x28a   :  { %7333 = vmatpush3.msra.mxu1 %v3575_v59  ;;  %7334 = vmatprep.mubr.msk.f32.mxu1 %vm7956_vm0, %v7955_v1  ;;  %v10097_v61 = vadd.f32 %v2282_v32, %v2131_v54  ;;  %v3458_v32 = vsub.f32 %v10088_v3, %v3457_v48 }
 0x28b   :  { %7290 = vmatpush3.msra.mxu0 %v9972_v19  ;;  %7335 = vmatmul.mubr.msk.f32.vlgmr.msra.gmra.mxu1 %vm3355_vm6, %v7957_v5  ;;  %v6881_v17 = vpop.f32.mrf.mxu0 }
 0x28c   :  { %7372 = vmatprep.subr.mxu1 %v7955_v1  ;;  %7291 = vmatprep.subr.mxu0 %v7955_v1  ;;  %v3459_v24 = vand.u32 4294901760, %v3458_v32 }
 0x28d   :  { %7373 = vmatpush3.msra.mxu1 %v9831_v41  ;;  %7292 = vmatpush3.msra.mxu0 %v9985_v56 }
 0x28e   :  { %7374 = vmatprep.subr.mxu1 %v7955_v1  ;;  %7293 = vmatprep.subr.mxu0 %v7955_v1 }
 0x28f   :  { %7375 = vmatpush3.msra.mxu1 %v9838_v11  ;;  %7294 = vmatpush3.msra.mxu0 %v9999_v39 }
 0x290   :  { %7376 = vmatprep.subr.mxu1 %v7955_v1  ;;  %7295 = vmatprep.subr.mxu0 %v7955_v1 }
 0x291   :  { %7377 = vmatpush3.msra.mxu1 %v9848_v34  ;;  %7296 = vmatpush3.msra.mxu0 %v10014_v37 }
 0x292   :  { %7378 = vmatprep.subr.mxu1 %v7955_v1  ;;  %7297 = vmatprep.subr.mxu0 %v7955_v1 }
 0x293   :  { %7379 = vmatpush3.msra.mxu1 %v9858_v12  ;;  %7298 = vmatpush3.msra.mxu0 %v10026_v51 }
 0x294   :  { %7299 = vmatprep.mubr.msk.f32.mxu0 %vm7956_vm0, %v7955_v1  ;;  %7380 = vmatprep.subr.mxu1 %v7955_v1 }
 0x295   :  { %7300 = vmatmul.mubr.f32.vlgmr.msra.gmra.mxu0 %v3459_v24  ;;  %7337 = vmatprep.subr.mxu0 %v7955_v1 }
 0x296   :  { %7381 = vmatpush3.msra.mxu1 %v9872_v49  ;;  %7338 = vmatpush3.msra.mxu0 %v9846_v62 }
 0x297   :  { %7382 = vmatprep.subr.mxu1 %v7955_v1  ;;  %7339 = vmatprep.subr.mxu0 %v7955_v1 }
 0x298   :  { %7383 = vmatpush3.msra.mxu1 %v9883_v15  ;;  %7340 = vmatpush3.msra.mxu0 %v9856_v7 }
 0x299   :  { %7384 = vmatprep.subr.mxu1 %v7955_v1  ;;  %7341 = vmatprep.subr.mxu0 %v7955_v1 }
 0x29a   :  { %7385 = vmatpush3.msra.mxu1 %v9891_v47  ;;  %7342 = vmatpush3.msra.mxu0 %v9867_v21 }
 0x29b   :  { %7386 = vmatprep.subr.mxu1 %v7955_v1  ;;  %7343 = vmatprep.subr.mxu0 %v7955_v1 }
 0x29c   :  { %7387 = vmatpush3.msra.mxu1 %v9905_v55  ;;  %7344 = vmatpush3.msra.mxu0 %v9878_v29 }
 0x29d   :  { %7388 = vmatprep.subr.mxu1 %v7955_v1  ;;  %7345 = vmatprep.subr.mxu0 %v7955_v1 }
 0x29e   :  { %7389 = vmatpush3.msra.mxu1 %v9926_v18  ;;  %7346 = vmatpush3.msra.mxu0 %v9897_v43 }
 0x29f   :  { %7390 = vmatprep.subr.mxu1 %v7955_v1  ;;  %7347 = vmatprep.subr.mxu0 %v7955_v1 }
 0x2a0   :  { %7391 = vmatpush3.msra.mxu1 %v9943_v26  ;;  %7348 = vmatpush3.msra.mxu0 %v9911_v57  ;;  %v4032_v57 = vld [vmem:[#allocation2 + $0x348] sm:$0xff] }
 0x2a1   :  { %7392 = vmatprep.subr.mxu1 %v7955_v1  ;;  %7349 = vmatprep.subr.mxu0 %v7955_v1  ;;  %v2475_v0 = vpop.f32.mrf.mxu1 }
 0x2a2   :  { %7393 = vmatpush3.msra.mxu1 %v9959_v10  ;;  %7350 = vmatpush3.msra.mxu0 %v9919_v14 }
 0x2a3   :  { %7394 = vmatprep.subr.mxu1 %v7955_v1  ;;  %7351 = vmatprep.subr.mxu0 %v7955_v1  ;;  %v6986_v9 = vpop.f32.mrf.mxu1 }
 0x2a4   :  { %7395 = vmatpush3.msra.mxu1 %v9972_v19  ;;  %7352 = vmatpush3.msra.mxu0 %v9938_v20  ;;  %v4031_v20 = vld [vmem:[#allocation2 + $0x340] sm:$0xff] }
 0x2a5   :  { %7396 = vmatprep.subr.mxu1 %v7955_v1  ;;  %7353 = vmatprep.subr.mxu0 %v7955_v1 }
 0x2a6   :  { %7397 = vmatpush3.msra.mxu1 %v9985_v56  ;;  %7354 = vmatpush3.msra.mxu0 %v9957_v52 }
 0x2a7   :  { %7398 = vmatprep.subr.mxu1 %v7955_v1  ;;  %7355 = vmatprep.subr.mxu0 %v7955_v1 }
 0x2a8   :  { %7399 = vmatpush3.msra.mxu1 %v9999_v39  ;;  %7356 = vmatpush3.msra.mxu0 %v9970_v53 }
 0x2a9   :  { %7400 = vmatprep.subr.mxu1 %v7955_v1  ;;  %7357 = vmatprep.subr.mxu0 %v7955_v1 }
 0x2aa   :  { %7401 = vmatpush3.msra.mxu1 %v10014_v37  ;;  %7358 = vmatpush3.msra.mxu0 %v9983_v28 }
 0x2ab   :  { %7402 = vmatprep.subr.mxu1 %v7955_v1  ;;  %7359 = vmatprep.subr.mxu0 %v7955_v1  ;;  %v2386_v40 = vpop.f32.mrf.mxu0 }
 0x2ac   :  { %7403 = vmatpush3.msra.mxu1 %v10026_v51  ;;  %7404 = vmatprep.mubr.msk.f32.mxu1 %vm7956_vm0, %v7955_v1  ;;  %v2387_v59 = vadd.f32 %v2386_v40, %v10097_v61 }
 0x2ad   :  { %7360 = vmatpush3.msra.mxu0 %v9997_v33  ;;  %7405 = vmatmul.mubr.f32.vlgmr.msra.gmra.mxu1 %v3457_v48  ;;  %v6951_v54 = vpop.f32.mrf.mxu0 }
 0x2ae   :  { %7442 = vmatprep.subr.mxu1 %v7955_v1  ;;  %7361 = vmatprep.subr.mxu0 %v7955_v1  ;;  %v10181_v17 = vadd.f32 %v2475_v0, %v2387_v59  ;;  %v4028_v0 = vld [vmem:[#allocation2 + $0x328] sm:$0xff]  ;;  %v4027_v54 = vld [vmem:[#allocation2 + $0x320] sm:$0xff] }
 0x2af   :  { %7443 = vmatpush3.msra.mxu1 %v9831_v41  ;;  %7362 = vmatpush3.msra.mxu0 %v10012_v45  ;;  %v4038_v41 = vld [vmem:[#allocation2 + $0x378] sm:$0xff]  ;;  %v10345_v45 = vand.u32 4294901760, %v4028_v0 }
 0x2b0   :  { %7444 = vmatprep.subr.mxu1 %v7955_v1  ;;  %7363 = vmatprep.subr.mxu0 %v7955_v1  ;;  %v10217_v62 = vand.u32 4294901760, %v4038_v41 }
 0x2b1   :  { %7445 = vmatpush3.msra.mxu1 %v9838_v11  ;;  %7364 = vmatpush3.msra.mxu0 %v10024_v13  ;;  %v4037_v11 = vld [vmem:[#allocation2 + $0x370] sm:$0xff] }
 0x2b2   :  { %7446 = vmatprep.subr.mxu1 %v7955_v1  ;;  %7365 = vmatprep.subr.mxu0 %v7955_v1  ;;  %v10224_v7 = vand.u32 4294901760, %v4037_v11 }
 0x2b3   :  { %7447 = vmatpush3.msra.mxu1 %v9848_v34  ;;  %7366 = vmatpush3.msra.mxu0 %v10036_v30  ;;  %v4036_v34 = vld [vmem:[#allocation2 + $0x368] sm:$0xff] }
 0x2b4   :  { %7448 = vmatprep.subr.mxu1 %v7955_v1  ;;  %7367 = vmatprep.subr.mxu0 %v7955_v1  ;;  %v10234_v21 = vand.u32 4294901760, %v4036_v34 }
 0x2b5   :  { %7449 = vmatpush3.msra.mxu1 %v9858_v12  ;;  %7368 = vmatpush3.msra.mxu0 %v10046_v63  ;;  %v4035_v12 = vld [vmem:[#allocation2 + $0x360] sm:$0xff] }
 0x2b6   :  { %7369 = vmatprep.mubr.msk.f32.mxu0 %vm7956_vm0, %v7955_v1  ;;  %7450 = vmatprep.subr.mxu1 %v7955_v1  ;;  %v10244_v29 = vand.u32 4294901760, %v4035_v12  ;;  %v10253_v43 = vsub.f32 %v4036_v34, %v10234_v21 }
 0x2b7   :  { %7370 = vmatmul.mubr.f32.vlgmr.msra.gmra.mxu0 %v10088_v3  ;;  %7407 = vmatprep.subr.mxu0 %v7955_v1 }
 0x2b8   :  { %7451 = vmatpush3.msra.mxu1 %v9872_v49  ;;  %7408 = vmatpush3.msra.mxu0 %v3468_v6  ;;  %v10232_v6 = vsub.f32 %v4038_v41, %v10217_v62 }
 0x2b9   :  { %7452 = vmatprep.subr.mxu1 %v7955_v1  ;;  %7409 = vmatprep.subr.mxu0 %v7955_v1 }
 0x2ba   :  { %7453 = vmatpush3.msra.mxu1 %v9883_v15  ;;  %7410 = vmatpush3.msra.mxu0 %v3475_v60  ;;  %v10242_v60 = vsub.f32 %v4037_v11, %v10224_v7  ;;  %v4034_v15 = vld [vmem:[#allocation2 + $0x358] sm:$0xff] }
 0x2bb   :  { %7454 = vmatprep.subr.mxu1 %v7955_v1  ;;  %7411 = vmatprep.subr.mxu0 %v7955_v1 }
 0x2bc   :  { %7455 = vmatpush3.msra.mxu1 %v9891_v47  ;;  %7412 = vmatpush3.msra.mxu0 %v3482_v42  ;;  %v4133_v42 = vand.u32 4294901760, %v10232_v6  ;;  %v4140_v14 = vand.u32 4294901760, %v10242_v60 }
 0x2bd   :  { %7456 = vmatprep.subr.mxu1 %v7955_v1  ;;  %7413 = vmatprep.subr.mxu0 %v7955_v1 }
 0x2be   :  { %7457 = vmatpush3.msra.mxu1 %v9905_v55  ;;  %7414 = vmatpush3.msra.mxu0 %v3489_v50  ;;  %v4033_v50 = vld [vmem:[#allocation2 + $0x350] sm:$0xff]  ;;  %v10258_v55 = vand.u32 4294901760, %v4034_v15 }
 0x2bf   :  { %7458 = vmatprep.subr.mxu1 %v7955_v1  ;;  %7415 = vmatprep.subr.mxu0 %v7955_v1 }
 0x2c0   :  { %7459 = vmatpush3.msra.mxu1 %v9926_v18  ;;  %7416 = vmatpush3.msra.mxu0 %v3496_v25  ;;  %v10264_v25 = vsub.f32 %v4035_v12, %v10244_v29  ;;  %v10269_v18 = vand.u32 4294901760, %v4033_v50  ;;  %v10283_v52 = vsub.f32 %v4034_v15, %v10258_v55  ;;  %v4026_v12 = vld [vmem:[#allocation2 + $0x318] sm:$0xff]  ;;  %v10358_v15 = vand.u32 4294901760, %v4027_v54 }
 0x2c1   :  { %7460 = vmatprep.subr.mxu1 %v7955_v1  ;;  %7417 = vmatprep.subr.mxu0 %v7955_v1 }
 0x2c2   :  { %7461 = vmatpush3.msra.mxu1 %v9943_v26  ;;  %7418 = vmatpush3.msra.mxu0 %v3503_v46  ;;  %v4134_v46 = vsub.f32 %v10232_v6, %v4133_v42  ;;  %v4147_v26 = vand.u32 4294901760, %v10253_v43  ;;  %v10297_v53 = vsub.f32 %v4033_v50, %v10269_v18 }
 0x2c3   :  { %7462 = vmatprep.subr.mxu1 %v7955_v1  ;;  %7419 = vmatprep.subr.mxu0 %v7955_v1  ;;  %v2681_v49 = vpop.f32.mrf.mxu1 }
 0x2c4   :  { %7463 = vmatpush3.msra.mxu1 %v9959_v10  ;;  %7420 = vmatpush3.msra.mxu0 %v3510_v27  ;;  %v10277_v27 = vand.u32 4294901760, %v4032_v57  ;;  %v4141_v10 = vsub.f32 %v10242_v60, %v4140_v14 }
 0x2c5   :  { %7464 = vmatprep.subr.mxu1 %v7955_v1  ;;  %7421 = vmatprep.subr.mxu0 %v7955_v1  ;;  %v7056_v47 = vpop.f32.mrf.mxu1 }
 0x2c6   :  { %7465 = vmatpush3.msra.mxu1 %v9972_v19  ;;  %7422 = vmatpush3.msra.mxu0 %v3517_v38  ;;  %v4154_v38 = vand.u32 4294901760, %v10264_v25  ;;  %v10291_v19 = vand.u32 4294901760, %v4031_v20  ;;  %v10305_v3 = vsub.f32 %v4032_v57, %v10277_v27  ;;  %v4142_v48 = vand.u32 4294901760, %v4141_v10 }
 0x2c7   :  { %7466 = vmatprep.subr.mxu1 %v7955_v1  ;;  %7423 = vmatprep.subr.mxu0 %v7955_v1  ;;  %v10369_v57 = vsub.f32 %v4028_v0, %v10345_v45 }
 0x2c8   :  { %7467 = vmatpush3.msra.mxu1 %v9985_v56  ;;  %7424 = vmatpush3.msra.mxu0 %v3524_v4  ;;  %v4030_v4 = vld [vmem:[#allocation2 + $0x338] sm:$0xff]  ;;  %v4135_v56 = vand.u32 4294901760, %v4134_v46  ;;  %v10324_v24 = vsub.f32 %v4031_v20, %v10291_v19  ;;  %v4175_v59 = vand.u32 4294901760, %v10305_v3  ;;  %v10371_v20 = vand.u32 4294901760, %v4026_v12 }
 0x2c9   :  { %7468 = vmatprep.subr.mxu1 %v7955_v1  ;;  %7425 = vmatprep.subr.mxu0 %v7955_v1  ;;  %v10312_v61 = vand.u32 4294901760, %v4030_v4 }
 0x2ca   :  { %7469 = vmatpush3.msra.mxu1 %v9999_v39  ;;  %7426 = vmatpush3.msra.mxu0 %v3531_v23  ;;  %v4148_v23 = vsub.f32 %v10253_v43, %v4147_v26  ;;  %v4182_v34 = vand.u32 4294901760, %v10324_v24  ;;  %v4176_v13 = vsub.f32 %v10305_v3, %v4175_v59 }
 0x2cb   :  { %7470 = vmatprep.subr.mxu1 %v7955_v1  ;;  %7427 = vmatprep.subr.mxu0 %v7955_v1  ;;  %v10343_v11 = vsub.f32 %v4030_v4, %v10312_v61  ;;  %v10383_v4 = vsub.f32 %v4027_v54, %v10358_v15 }
 0x2cc   :  { %7471 = vmatpush3.msra.mxu1 %v10014_v37  ;;  %7428 = vmatpush3.msra.mxu0 %v3538_v8  ;;  %v4029_v37 = vld [vmem:[#allocation2 + $0x330] sm:$0xff]  ;;  %v4161_v8 = vand.u32 4294901760, %v10283_v52  ;;  %v4149_v40 = vand.u32 4294901760, %v4148_v23  ;;  %v4183_v30 = vsub.f32 %v10324_v24, %v4182_v34  ;;  %v4177_v63 = vand.u32 4294901760, %v4176_v13 }
 0x2cd   :  { %7472 = vmatprep.subr.mxu1 %v7955_v1  ;;  %7429 = vmatprep.subr.mxu0 %v7955_v1  ;;  %v2594_v39 = vpop.f32.mrf.mxu0  ;;  %v10329_v9 = vand.u32 4294901760, %v4029_v37  ;;  %v4189_v50 = vand.u32 4294901760, %v10343_v11 }
 0x2ce   :  { %7473 = vmatpush3.msra.mxu1 %v10026_v51  ;;  %7474 = vmatprep.mubr.msk.f32.mxu1 %vm7956_vm0, %v7955_v1  ;;  %v2595_v28 = vadd.f32 %v2594_v39, %v10181_v17  ;;  %v4155_v51 = vsub.f32 %v10264_v25, %v4154_v38  ;;  %v4162_v41 = vsub.f32 %v10283_v52, %v4161_v8  ;;  %v4203_v39 = vand.u32 4294901760, %v10369_v57 }
 0x2cf   :  { %7430 = vmatpush3.msra.mxu0 %v3545_v16  ;;  %7475 = vmatmul.mubr.msk.f32.vlgmr.msra.gmra.mxu1 %vm3355_vm6, %v7957_v5  ;;  %v7021_v32 = vpop.f32.mrf.mxu0  ;;  %v4168_v16 = vand.u32 4294901760, %v10297_v53  ;;  %v4190_v23 = vsub.f32 %v10343_v11, %v4189_v50  ;;  %v4184_v44 = vand.u32 4294901760, %v4183_v30 }
 0x2d0   :  { %7512 = vmatprep.subr.mxu1 %v7955_v1  ;;  %7431 = vmatprep.subr.mxu0 %v7955_v1  ;;  %v2682_v33 = vadd.f32 %v2681_v49, %v2595_v28  ;;  %v10356_v49 = vsub.f32 %v4029_v37, %v10329_v9  ;;  %v4163_v47 = vand.u32 4294901760, %v4162_v41  ;;  %v10398_v37 = vsub.f32 %v4026_v12, %v10371_v20 }
 0x2d1   :  { %7513 = vmatpush3.msra.mxu1 %v4135_v56  ;;  %7432 = vmatpush3.msra.mxu0 %v3552_v22  ;;  %v4156_v22 = vand.u32 4294901760, %v4155_v51  ;;  %v4210_v51 = vand.u32 4294901760, %v10383_v4 }
 0x2d2   :  { %7514 = vmatprep.subr.mxu1 %v7955_v1  ;;  %7433 = vmatprep.subr.mxu0 %v7955_v1  ;;  %v10337_v17 = vadd.f32 %v2682_v33, %v9951_v2  ;;  %v4169_v2 = vsub.f32 %v10297_v53, %v4168_v16  ;;  %v4196_v10 = vand.u32 4294901760, %v10356_v49  ;;  %v4191_v33 = vand.u32 4294901760, %v4190_v23 }
 0x2d3   :  { %7515 = vmatpush3.msra.mxu1 %v4142_v48  ;;  %7434 = vmatpush3.msra.mxu0 %v3559_v35  ;;  %v4025_v35 = vld [vmem:[#allocation2 + $0x310] sm:$0xff]  ;;  %v4217_v54 = vand.u32 4294901760, %v10398_v37  ;;  %v4211_v12 = vsub.f32 %v10383_v4, %v4210_v51 }
 0x2d4   :  { %7516 = vmatprep.subr.mxu1 %v7955_v1  ;;  %7435 = vmatprep.subr.mxu0 %v7955_v1  ;;  %v4170_v46 = vand.u32 4294901760, %v4169_v2  ;;  %v10385_v56 = vand.u32 4294901760, %v4025_v35  ;;  %v4197_v48 = vsub.f32 %v10356_v49, %v4196_v10 }
 0x2d5   :  { %7517 = vmatpush3.msra.mxu1 %v4149_v40  ;;  %7436 = vmatpush3.msra.mxu0 %v3566_v31  ;;  %v4024_v31 = vld [vmem:[#allocation2 + $0x308] sm:$0xff]  ;;  %v4204_v40 = vsub.f32 %v10369_v57, %v4203_v39 }
 0x2d6   :  { %7518 = vmatprep.subr.mxu1 %v7955_v1  ;;  %7437 = vmatprep.subr.mxu0 %v7955_v1  ;;  %v10400_v28 = vand.u32 4294901760, %v4024_v31  ;;  %v10410_v32 = vsub.f32 %v4025_v35, %v10385_v56 }
 0x2d7   :  { %7519 = vmatpush3.msra.mxu1 %v4156_v22  ;;  %7438 = vmatpush3.msra.mxu0 %v3573_v36  ;;  %v4023_v36 = vld [vmem:[#allocation2 + $0x300] sm:$0xff]  ;;  %v4198_v22 = vand.u32 4294901760, %v4197_v48  ;;  %v4205_v35 = vand.u32 4294901760, %v4204_v40 }
 0x2d8   :  { %7439 = vmatprep.mubr.msk.f32.mxu0 %vm7956_vm0, %v7955_v1  ;;  %7520 = vmatprep.subr.mxu1 %v7955_v1  ;;  %v10412_v0 = vand.u32 4294901760, %v4023_v36  ;;  %v10422_v41 = vsub.f32 %v4024_v31, %v10400_v28  ;;  %v4224_v2 = vand.u32 4294901760, %v10410_v32  ;;  %v10443_v31 = vpop.permute.xlu0 %4018 }
 0x2d9   :  { %7440 = vmatmul.mubr.msk.f32.vlgmr.msra.gmra.mxu0 %vm3355_vm6, %v7957_v5  ;;  %7477 = vmatprep.subr.mxu0 %v7955_v1  ;;  %vm4020_vm7 = vcmp.eq.s32.totalorder %v8188_v58, %v10443_v31 }
 0x2da   :  { %7521 = vmatpush3.msra.mxu1 %v4163_v47  ;;  %7478 = vmatpush3.msra.mxu0 %v10217_v62  ;;  %v10432_v13 = vsub.f32 %v4023_v36, %v10412_v0  ;;  %v4218_v47 = vsub.f32 %v10398_v37, %v4217_v54  ;;  %v4231_v30 = vand.u32 4294901760, %v10422_v41 }
 0x2db   :  { %7522 = vmatprep.subr.mxu1 %v7955_v1  ;;  %7479 = vmatprep.subr.mxu0 %v7955_v1 }
 0x2dc   :  { %7523 = vmatpush3.msra.mxu1 %v4170_v46  ;;  %7480 = vmatpush3.msra.mxu0 %v10224_v7  ;;  %v4212_v46 = vand.u32 4294901760, %v4211_v12  ;;  %v4238_v36 = vand.u32 4294901760, %v10432_v13  ;;  %v4232_v48 = vsub.f32 %v10422_v41, %v4231_v30  ;;  %v5392_v12 = vsel %vm4020_vm7, 1.0, %v7955_v1 }
 0x2dd   :  { %7524 = vmatprep.subr.mxu1 %v7955_v1  ;;  %7481 = vmatprep.subr.mxu0 %v7955_v1 }
 0x2de   :  { %7525 = vmatpush3.msra.mxu1 %v4177_v63  ;;  %7482 = vmatpush3.msra.mxu0 %v10234_v21  ;;  %v4225_v63 = vsub.f32 %v10410_v32, %v4224_v2 }
 0x2df   :  { %7526 = vmatprep.subr.mxu1 %v7955_v1  ;;  %7483 = vmatprep.subr.mxu0 %v7955_v1 }
 0x2e0   :  { %7527 = vmatpush3.msra.mxu1 %v4184_v44  ;;  %7484 = vmatpush3.msra.mxu0 %v10244_v29  ;;  %v4219_v44 = vand.u32 4294901760, %v4218_v47  ;;  %v4226_v40 = vand.u32 4294901760, %v4225_v63 }
 0x2e1   :  { %7528 = vmatprep.subr.mxu1 %v7955_v1  ;;  %7485 = vmatprep.subr.mxu0 %v7955_v1 }
 0x2e2   :  { %7529 = vmatpush3.msra.mxu1 %v4191_v33  ;;  %7486 = vmatpush3.msra.mxu0 %v10258_v55 }
 0x2e3   :  { %7530 = vmatprep.subr.mxu1 %v7955_v1  ;;  %7487 = vmatprep.subr.mxu0 %v7955_v1 }
 0x2e4   :  { %7531 = vmatpush3.msra.mxu1 %v4198_v22  ;;  %7488 = vmatpush3.msra.mxu0 %v10269_v18  ;;  %v4239_v22 = vsub.f32 %v10432_v13, %v4238_v36 }
 0x2e5   :  { %7532 = vmatprep.subr.mxu1 %v7955_v1  ;;  %7489 = vmatprep.subr.mxu0 %v7955_v1  ;;  %v2947_v23 = vpop.f32.mrf.mxu1 }
 0x2e6   :  { %7533 = vmatpush3.msra.mxu1 %v4205_v35  ;;  %7490 = vmatpush3.msra.mxu0 %v10277_v27  ;;  %v4233_v35 = vand.u32 4294901760, %v4232_v48  ;;  %v4240_v47 = vand.u32 4294901760, %v4239_v22 }
 0x2e7   :  { %7534 = vmatprep.subr.mxu1 %v7955_v1  ;;  %7491 = vmatprep.subr.mxu0 %v7955_v1  ;;  %v7126_v33 = vpop.f32.mrf.mxu1 }
 0x2e8   :  { %7535 = vmatpush3.msra.mxu1 %v4212_v46  ;;  %7492 = vmatpush3.msra.mxu0 %v10291_v19  ;;  %v10474_v46 = vsub.f32 %v5392_v12, %v5392_v12 }
 0x2e9   :  { %7536 = vmatprep.subr.mxu1 %v7955_v1  ;;  %7493 = vmatprep.subr.mxu0 %v7955_v1 }
 0x2ea   :  { %7537 = vmatpush3.msra.mxu1 %v4219_v44  ;;  %7494 = vmatpush3.msra.mxu0 %v10312_v61  ;;  %v4122_v48 = vand.u32 4294901760, %v10474_v46 }
 0x2eb   :  { %7538 = vmatprep.subr.mxu1 %v7955_v1  ;;  %7495 = vmatprep.subr.mxu0 %v7955_v1 }
 0x2ec   :  { %7539 = vmatpush3.msra.mxu1 %v4226_v40  ;;  %7496 = vmatpush3.msra.mxu0 %v10329_v9 }
 0x2ed   :  { %7540 = vmatprep.subr.mxu1 %v7955_v1  ;;  %7497 = vmatprep.subr.mxu0 %v7955_v1 }
 0x2ee   :  { %7541 = vmatpush3.msra.mxu1 %v4233_v35  ;;  %7498 = vmatpush3.msra.mxu0 %v10345_v45 }
 0x2ef   :  { %7542 = vmatprep.subr.mxu1 %v7955_v1  ;;  %7499 = vmatprep.subr.mxu0 %v7955_v1  ;;  %v2796_v63 = vpop.f32.mrf.mxu0 }
 0x2f0   :  { %7543 = vmatpush3.msra.mxu1 %v4240_v47  ;;  %7544 = vmatprep.mubr.msk.f32.mxu1 %vm7956_vm0, %v7955_v1  ;;  %v10483_v44 = vadd.f32 %v2947_v23, %v2796_v63  ;;  %v4123_v23 = vsub.f32 %v10474_v46, %v4122_v48 }
 0x2f1   :  { %7500 = vmatpush3.msra.mxu0 %v10358_v15  ;;  %7545 = vmatmul.mubr.msk.f32.vlgmr.msra.gmra.mxu1 %vm4020_vm7, %v7957_v5  ;;  %v7091_v33 = vpop.f32.mrf.mxu0 }
 0x2f2   :  { %7582 = vmatprep.subr.mxu1 %v7955_v1  ;;  %7501 = vmatprep.subr.mxu0 %v7955_v1  ;;  %v4124_v40 = vand.u32 4294901760, %v4123_v23 }
 0x2f3   :  { %7583 = vmatpush3.msra.mxu1 %v10217_v62  ;;  %7502 = vmatpush3.msra.mxu0 %v10371_v20 }
 0x2f4   :  { %7584 = vmatprep.subr.mxu1 %v7955_v1  ;;  %7503 = vmatprep.subr.mxu0 %v7955_v1 }
 0x2f5   :  { %7585 = vmatpush3.msra.mxu1 %v10224_v7  ;;  %7504 = vmatpush3.msra.mxu0 %v10385_v56 }
 0x2f6   :  { %7586 = vmatprep.subr.mxu1 %v7955_v1  ;;  %7505 = vmatprep.subr.mxu0 %v7955_v1 }
 0x2f7   :  { %7587 = vmatpush3.msra.mxu1 %v10234_v21  ;;  %7506 = vmatpush3.msra.mxu0 %v10400_v28 }
 0x2f8   :  { %7588 = vmatprep.subr.mxu1 %v7955_v1  ;;  %7507 = vmatprep.subr.mxu0 %v7955_v1 }
 0x2f9   :  { %7589 = vmatpush3.msra.mxu1 %v10244_v29  ;;  %7508 = vmatpush3.msra.mxu0 %v10412_v0 }
 0x2fa   :  { %7509 = vmatprep.mubr.msk.f32.mxu0 %vm7956_vm0, %v7955_v1  ;;  %7590 = vmatprep.subr.mxu1 %v7955_v1 }
 0x2fb   :  { %7510 = vmatmul.mubr.f32.vlgmr.msra.gmra.mxu0 %v4124_v40  ;;  %7547 = vmatprep.subr.mxu0 %v7955_v1 }
 0x2fc   :  { %7591 = vmatpush3.msra.mxu1 %v10258_v55  ;;  %7548 = vmatpush3.msra.mxu0 %v10232_v6 }
 0x2fd   :  { %7592 = vmatprep.subr.mxu1 %v7955_v1  ;;  %7549 = vmatprep.subr.mxu0 %v7955_v1 }
 0x2fe   :  { %7593 = vmatpush3.msra.mxu1 %v10269_v18  ;;  %7550 = vmatpush3.msra.mxu0 %v10242_v60 }
 0x2ff   :  { %7594 = vmatprep.subr.mxu1 %v7955_v1  ;;  %7551 = vmatprep.subr.mxu0 %v7955_v1 }
 0x300   :  { %7595 = vmatpush3.msra.mxu1 %v10277_v27  ;;  %7552 = vmatpush3.msra.mxu0 %v10253_v43 }
 0x301   :  { %7596 = vmatprep.subr.mxu1 %v7955_v1  ;;  %7553 = vmatprep.subr.mxu0 %v7955_v1 }
 0x302   :  { %7597 = vmatpush3.msra.mxu1 %v10291_v19  ;;  %7554 = vmatpush3.msra.mxu0 %v10264_v25 }
 0x303   :  { %7598 = vmatprep.subr.mxu1 %v7955_v1  ;;  %7555 = vmatprep.subr.mxu0 %v7955_v1 }
 0x304   :  { %7599 = vmatpush3.msra.mxu1 %v10312_v61  ;;  %7556 = vmatpush3.msra.mxu0 %v10283_v52 }
 0x305   :  { %7600 = vmatprep.subr.mxu1 %v7955_v1  ;;  %7557 = vmatprep.subr.mxu0 %v7955_v1 }
 0x306   :  { %7601 = vmatpush3.msra.mxu1 %v10329_v9  ;;  %7558 = vmatpush3.msra.mxu0 %v10297_v53  ;;  %v4697_v53 = vld [vmem:[#allocation2 + $0x3c8] sm:$0xff] }
 0x307   :  { %7602 = vmatprep.subr.mxu1 %v7955_v1  ;;  %7559 = vmatprep.subr.mxu0 %v7955_v1  ;;  %v3140_v22 = vpop.f32.mrf.mxu1 }
 0x308   :  { %7603 = vmatpush3.msra.mxu1 %v10345_v45  ;;  %7560 = vmatpush3.msra.mxu0 %v10305_v3 }
 0x309   :  { %7604 = vmatprep.subr.mxu1 %v7955_v1  ;;  %7561 = vmatprep.subr.mxu0 %v7955_v1  ;;  %v7196_v12 = vpop.f32.mrf.mxu1 }
 0x30a   :  { %7605 = vmatpush3.msra.mxu1 %v10358_v15  ;;  %7562 = vmatpush3.msra.mxu0 %v10324_v24  ;;  %v4696_v24 = vld [vmem:[#allocation2 + $0x3c0] sm:$0xff] }
 0x30b   :  { %7606 = vmatprep.subr.mxu1 %v7955_v1  ;;  %7563 = vmatprep.subr.mxu0 %v7955_v1 }
 0x30c   :  { %7607 = vmatpush3.msra.mxu1 %v10371_v20  ;;  %7564 = vmatpush3.msra.mxu0 %v10343_v11 }
 0x30d   :  { %7608 = vmatprep.subr.mxu1 %v7955_v1  ;;  %7565 = vmatprep.subr.mxu0 %v7955_v1 }
 0x30e   :  { %7609 = vmatpush3.msra.mxu1 %v10385_v56  ;;  %7566 = vmatpush3.msra.mxu0 %v10356_v49 }
 0x30f   :  { %7610 = vmatprep.subr.mxu1 %v7955_v1  ;;  %7567 = vmatprep.subr.mxu0 %v7955_v1 }
 0x310   :  { %7611 = vmatpush3.msra.mxu1 %v10400_v28  ;;  %7568 = vmatpush3.msra.mxu0 %v10369_v57 }
 0x311   :  { %7612 = vmatprep.subr.mxu1 %v7955_v1  ;;  %7569 = vmatprep.subr.mxu0 %v7955_v1  ;;  %v3051_v35 = vpop.f32.mrf.mxu0 }
 0x312   :  { %7613 = vmatpush3.msra.mxu1 %v10412_v0  ;;  %7614 = vmatprep.mubr.msk.f32.mxu1 %vm7956_vm0, %v7955_v1  ;;  %v3052_v47 = vadd.f32 %v3051_v35, %v10483_v44 }
 0x313   :  { %7570 = vmatpush3.msra.mxu0 %v10383_v4  ;;  %7615 = vmatmul.mubr.f32.vlgmr.msra.gmra.mxu1 %v4122_v48  ;;  %v7161_v63 = vpop.f32.mrf.mxu0 }
 0x314   :  { %7652 = vmatprep.subr.mxu1 %v7955_v1  ;;  %7571 = vmatprep.subr.mxu0 %v7955_v1  ;;  %v10567_v33 = vadd.f32 %v3140_v22, %v3052_v47  ;;  %v4693_v22 = vld [vmem:[#allocation2 + $0x3a8] sm:$0xff]  ;;  %v4692_v63 = vld [vmem:[#allocation2 + $0x3a0] sm:$0xff] }
 0x315   :  { %7653 = vmatpush3.msra.mxu1 %v10217_v62  ;;  %7572 = vmatpush3.msra.mxu0 %v10398_v37  ;;  %v4703_v62 = vld [vmem:[#allocation2 + $0x3f8] sm:$0xff]  ;;  %v10731_v37 = vand.u32 4294901760, %v4693_v22 }
 0x316   :  { %7654 = vmatprep.subr.mxu1 %v7955_v1  ;;  %7573 = vmatprep.subr.mxu0 %v7955_v1  ;;  %v10603_v6 = vand.u32 4294901760, %v4703_v62 }
 0x317   :  { %7655 = vmatpush3.msra.mxu1 %v10224_v7  ;;  %7574 = vmatpush3.msra.mxu0 %v10410_v32  ;;  %v4702_v7 = vld [vmem:[#allocation2 + $0x3f0] sm:$0xff] }
 0x318   :  { %7656 = vmatprep.subr.mxu1 %v7955_v1  ;;  %7575 = vmatprep.subr.mxu0 %v7955_v1  ;;  %v10610_v60 = vand.u32 4294901760, %v4702_v7 }
 0x319   :  { %7657 = vmatpush3.msra.mxu1 %v10234_v21  ;;  %7576 = vmatpush3.msra.mxu0 %v10422_v41  ;;  %v4701_v21 = vld [vmem:[#allocation2 + $0x3e8] sm:$0xff] }
 0x31a   :  { %7658 = vmatprep.subr.mxu1 %v7955_v1  ;;  %7577 = vmatprep.subr.mxu0 %v7955_v1  ;;  %v10620_v43 = vand.u32 4294901760, %v4701_v21 }
 0x31b   :  { %7659 = vmatpush3.msra.mxu1 %v10244_v29  ;;  %7578 = vmatpush3.msra.mxu0 %v10432_v13  ;;  %v4700_v29 = vld [vmem:[#allocation2 + $0x3e0] sm:$0xff] }
 0x31c   :  { %7579 = vmatprep.mubr.msk.f32.mxu0 %vm7956_vm0, %v7955_v1  ;;  %7660 = vmatprep.subr.mxu1 %v7955_v1  ;;  %v10630_v25 = vand.u32 4294901760, %v4700_v29  ;;  %v10639_v52 = vsub.f32 %v4701_v21, %v10620_v43 }
 0x31d   :  { %7580 = vmatmul.mubr.f32.vlgmr.msra.gmra.mxu0 %v10474_v46  ;;  %7617 = vmatprep.subr.mxu0 %v7955_v1 }
 0x31e   :  { %7661 = vmatpush3.msra.mxu1 %v10258_v55  ;;  %7618 = vmatpush3.msra.mxu0 %v4133_v42  ;;  %v10618_v42 = vsub.f32 %v4703_v62, %v10603_v6 }
 0x31f   :  { %7662 = vmatprep.subr.mxu1 %v7955_v1  ;;  %7619 = vmatprep.subr.mxu0 %v7955_v1 }
 0x320   :  { %7663 = vmatpush3.msra.mxu1 %v10269_v18  ;;  %7620 = vmatpush3.msra.mxu0 %v4140_v14  ;;  %v10628_v14 = vsub.f32 %v4702_v7, %v10610_v60  ;;  %v4699_v18 = vld [vmem:[#allocation2 + $0x3d8] sm:$0xff] }
 0x321   :  { %7664 = vmatprep.subr.mxu1 %v7955_v1  ;;  %7621 = vmatprep.subr.mxu0 %v7955_v1 }
 0x322   :  { %7665 = vmatpush3.msra.mxu1 %v10277_v27  ;;  %7622 = vmatpush3.msra.mxu0 %v4147_v26  ;;  %v4798_v26 = vand.u32 4294901760, %v10618_v42  ;;  %v4805_v3 = vand.u32 4294901760, %v10628_v14 }
 0x323   :  { %7666 = vmatprep.subr.mxu1 %v7955_v1  ;;  %7623 = vmatprep.subr.mxu0 %v7955_v1 }
 0x324   :  { %7667 = vmatpush3.msra.mxu1 %v10291_v19  ;;  %7624 = vmatpush3.msra.mxu0 %v4154_v38  ;;  %v4698_v38 = vld [vmem:[#allocation2 + $0x3d0] sm:$0xff]  ;;  %v10644_v19 = vand.u32 4294901760, %v4699_v18 }
 0x325   :  { %7668 = vmatprep.subr.mxu1 %v7955_v1  ;;  %7625 = vmatprep.subr.mxu0 %v7955_v1 }
 0x326   :  { %7669 = vmatpush3.msra.mxu1 %v10312_v61  ;;  %7626 = vmatpush3.msra.mxu0 %v4161_v8  ;;  %v10650_v8 = vsub.f32 %v4700_v29, %v10630_v25  ;;  %v10655_v61 = vand.u32 4294901760, %v4698_v38  ;;  %v10669_v11 = vsub.f32 %v4699_v18, %v10644_v19  ;;  %v4691_v29 = vld [vmem:[#allocation2 + $0x398] sm:$0xff]  ;;  %v10744_v18 = vand.u32 4294901760, %v4692_v63 }
 0x327   :  { %7670 = vmatprep.subr.mxu1 %v7955_v1  ;;  %7627 = vmatprep.subr.mxu0 %v7955_v1 }
 0x328   :  { %7671 = vmatpush3.msra.mxu1 %v10329_v9  ;;  %7628 = vmatpush3.msra.mxu0 %v4168_v16  ;;  %v4799_v16 = vsub.f32 %v10618_v42, %v4798_v26  ;;  %v4812_v9 = vand.u32 4294901760, %v10639_v52  ;;  %v10683_v49 = vsub.f32 %v4698_v38, %v10655_v61 }
 0x329   :  { %7672 = vmatprep.subr.mxu1 %v7955_v1  ;;  %7629 = vmatprep.subr.mxu0 %v7955_v1  ;;  %v3346_v55 = vpop.f32.mrf.mxu1 }
 0x32a   :  { %7673 = vmatpush3.msra.mxu1 %v10345_v45  ;;  %7630 = vmatpush3.msra.mxu0 %v4175_v59  ;;  %v10663_v59 = vand.u32 4294901760, %v4697_v53  ;;  %v4806_v45 = vsub.f32 %v10628_v14, %v4805_v3 }
 0x32b   :  { %7674 = vmatprep.subr.mxu1 %v7955_v1  ;;  %7631 = vmatprep.subr.mxu0 %v7955_v1  ;;  %v7266_v27 = vpop.f32.mrf.mxu1 }
 0x32c   :  { %7675 = vmatpush3.msra.mxu1 %v10358_v15  ;;  %7632 = vmatpush3.msra.mxu0 %v4182_v34  ;;  %v4819_v34 = vand.u32 4294901760, %v10650_v8  ;;  %v10677_v15 = vand.u32 4294901760, %v4696_v24  ;;  %v10691_v46 = vsub.f32 %v4697_v53, %v10663_v59  ;;  %v4807_v48 = vand.u32 4294901760, %v4806_v45 }
 0x32d   :  { %7676 = vmatprep.subr.mxu1 %v7955_v1  ;;  %7633 = vmatprep.subr.mxu0 %v7955_v1  ;;  %v10755_v53 = vsub.f32 %v4693_v22, %v10731_v37 }
 0x32e   :  { %7677 = vmatpush3.msra.mxu1 %v10371_v20  ;;  %7634 = vmatpush3.msra.mxu0 %v4189_v50  ;;  %v4695_v50 = vld [vmem:[#allocation2 + $0x3b8] sm:$0xff]  ;;  %v4800_v20 = vand.u32 4294901760, %v4799_v16  ;;  %v10710_v40 = vsub.f32 %v4696_v24, %v10677_v15  ;;  %v4840_v47 = vand.u32 4294901760, %v10691_v46  ;;  %v10757_v24 = vand.u32 4294901760, %v4691_v29 }
 0x32f   :  { %7678 = vmatprep.subr.mxu1 %v7955_v1  ;;  %7635 = vmatprep.subr.mxu0 %v7955_v1  ;;  %v10698_v44 = vand.u32 4294901760, %v4695_v50 }
 0x330   :  { %7679 = vmatpush3.msra.mxu1 %v10385_v56  ;;  %7636 = vmatpush3.msra.mxu0 %v4196_v10  ;;  %v4813_v10 = vsub.f32 %v10639_v52, %v4812_v9  ;;  %v4847_v21 = vand.u32 4294901760, %v10710_v40  ;;  %v4841_v32 = vsub.f32 %v10691_v46, %v4840_v47 }
 0x331   :  { %7680 = vmatprep.subr.mxu1 %v7955_v1  ;;  %7637 = vmatprep.subr.mxu0 %v7955_v1  ;;  %v10729_v7 = vsub.f32 %v4695_v50, %v10698_v44  ;;  %v10769_v50 = vsub.f32 %v4692_v63, %v10744_v18 }
 0x332   :  { %7681 = vmatpush3.msra.mxu1 %v10400_v28  ;;  %7638 = vmatpush3.msra.mxu0 %v4203_v39  ;;  %v4694_v28 = vld [vmem:[#allocation2 + $0x3b0] sm:$0xff]  ;;  %v4826_v39 = vand.u32 4294901760, %v10669_v11  ;;  %v4814_v35 = vand.u32 4294901760, %v4813_v10  ;;  %v4848_v41 = vsub.f32 %v10710_v40, %v4847_v21  ;;  %v4842_v13 = vand.u32 4294901760, %v4841_v32 }
 0x333   :  { %7682 = vmatprep.subr.mxu1 %v7955_v1  ;;  %7639 = vmatprep.subr.mxu0 %v7955_v1  ;;  %v3259_v56 = vpop.f32.mrf.mxu0  ;;  %v10715_v12 = vand.u32 4294901760, %v4694_v28  ;;  %v4854_v38 = vand.u32 4294901760, %v10729_v7 }
 0x334   :  { %7683 = vmatpush3.msra.mxu1 %v10412_v0  ;;  %7684 = vmatprep.mubr.msk.f32.mxu1 %vm7956_vm0, %v7955_v1  ;;  %v3260_v57 = vadd.f32 %v3259_v56, %v10567_v33  ;;  %v4820_v0 = vsub.f32 %v10650_v8, %v4819_v34  ;;  %v4827_v62 = vsub.f32 %v10669_v11, %v4826_v39  ;;  %v4868_v56 = vand.u32 4294901760, %v10755_v53 }
 0x335   :  { %7640 = vmatpush3.msra.mxu0 %v4210_v51  ;;  %7685 = vmatmul.mubr.msk.f32.vlgmr.msra.gmra.mxu1 %vm4020_vm7, %v7957_v5  ;;  %v7231_v23 = vpop.f32.mrf.mxu0  ;;  %v4833_v51 = vand.u32 4294901760, %v10683_v49  ;;  %v4855_v10 = vsub.f32 %v10729_v7, %v4854_v38  ;;  %v4849_v31 = vand.u32 4294901760, %v4848_v41 }
 0x336   :  { %7722 = vmatprep.subr.mxu1 %v7955_v1  ;;  %7641 = vmatprep.subr.mxu0 %v7955_v1  ;;  %v3347_v4 = vadd.f32 %v3346_v55, %v3260_v57  ;;  %v10742_v55 = vsub.f32 %v4694_v28, %v10715_v12  ;;  %v4828_v27 = vand.u32 4294901760, %v4827_v62  ;;  %v10784_v28 = vsub.f32 %v4691_v29, %v10757_v24 }
 0x337   :  { %7723 = vmatpush3.msra.mxu1 %v4800_v20  ;;  %7642 = vmatpush3.msra.mxu0 %v4217_v54  ;;  %v4821_v54 = vand.u32 4294901760, %v4820_v0  ;;  %v4875_v0 = vand.u32 4294901760, %v10769_v50 }
 0x338   :  { %7724 = vmatprep.subr.mxu1 %v7955_v1  ;;  %7643 = vmatprep.subr.mxu0 %v7955_v1  ;;  %v10723_v33 = vadd.f32 %v3347_v4, %v10337_v17  ;;  %v4834_v17 = vsub.f32 %v10683_v49, %v4833_v51  ;;  %v4861_v45 = vand.u32 4294901760, %v10742_v55  ;;  %v4856_v4 = vand.u32 4294901760, %v4855_v10 }
 0x339   :  { %7725 = vmatpush3.msra.mxu1 %v4807_v48  ;;  %7644 = vmatpush3.msra.mxu0 %v4224_v2  ;;  %v4690_v2 = vld [vmem:[#allocation2 + $0x390] sm:$0xff]  ;;  %v4882_v63 = vand.u32 4294901760, %v10784_v28  ;;  %v4876_v29 = vsub.f32 %v10769_v50, %v4875_v0 }
 0x33a   :  { %7726 = vmatprep.subr.mxu1 %v7955_v1  ;;  %7645 = vmatprep.subr.mxu0 %v7955_v1  ;;  %v4835_v16 = vand.u32 4294901760, %v4834_v17  ;;  %v10771_v20 = vand.u32 4294901760, %v4690_v2  ;;  %v4862_v48 = vsub.f32 %v10742_v55, %v4861_v45 }
 0x33b   :  { %7727 = vmatpush3.msra.mxu1 %v4814_v35  ;;  %7646 = vmatpush3.msra.mxu0 %v4231_v30  ;;  %v4689_v30 = vld [vmem:[#allocation2 + $0x388] sm:$0xff]  ;;  %v4869_v35 = vsub.f32 %v10755_v53, %v4868_v56 }
 0x33c   :  { %7728 = vmatprep.subr.mxu1 %v7955_v1  ;;  %7647 = vmatprep.subr.mxu0 %v7955_v1  ;;  %v10786_v57 = vand.u32 4294901760, %v4689_v30  ;;  %v10796_v23 = vsub.f32 %v4690_v2, %v10771_v20 }
 0x33d   :  { %7729 = vmatpush3.msra.mxu1 %v4821_v54  ;;  %7648 = vmatpush3.msra.mxu0 %v4238_v36  ;;  %v4688_v36 = vld [vmem:[#allocation2 + $0x380] sm:$0xff]  ;;  %v4863_v54 = vand.u32 4294901760, %v4862_v48  ;;  %v4870_v2 = vand.u32 4294901760, %v4869_v35 }
 0x33e   :  { %7649 = vmatprep.mubr.msk.f32.mxu0 %vm7956_vm0, %v7955_v1  ;;  %7730 = vmatprep.subr.mxu1 %v7955_v1  ;;  %v10798_v22 = vand.u32 4294901760, %v4688_v36  ;;  %v10808_v62 = vsub.f32 %v4689_v30, %v10786_v57  ;;  %v4889_v17 = vand.u32 4294901760, %v10796_v23  ;;  %v10829_v30 = vpop.permute.xlu1 %4683 }
 0x33f   :  { %7650 = vmatmul.mubr.msk.f32.vlgmr.msra.gmra.mxu0 %vm4020_vm7, %v7957_v5  ;;  %7687 = vmatprep.subr.mxu0 %v7955_v1  ;;  %vm4685_vm8 = vcmp.eq.s32.totalorder %v8188_v58, %v10829_v30 }
 0x340   :  { %7731 = vmatpush3.msra.mxu1 %v4828_v27  ;;  %7688 = vmatpush3.msra.mxu0 %v10603_v6  ;;  %v10818_v32 = vsub.f32 %v4688_v36, %v10798_v22  ;;  %v4883_v27 = vsub.f32 %v10784_v28, %v4882_v63  ;;  %v4896_v41 = vand.u32 4294901760, %v10808_v62 }
 0x341   :  { %7732 = vmatprep.subr.mxu1 %v7955_v1  ;;  %7689 = vmatprep.subr.mxu0 %v7955_v1 }
 0x342   :  { %7733 = vmatpush3.msra.mxu1 %v4835_v16  ;;  %7690 = vmatpush3.msra.mxu0 %v10610_v60  ;;  %v4877_v16 = vand.u32 4294901760, %v4876_v29  ;;  %v4903_v36 = vand.u32 4294901760, %v10818_v32  ;;  %v4897_v48 = vsub.f32 %v10808_v62, %v4896_v41  ;;  %v5397_v29 = vsel %vm4685_vm8, 1.0, %v7955_v1 }
 0x343   :  { %7734 = vmatprep.subr.mxu1 %v7955_v1  ;;  %7691 = vmatprep.subr.mxu0 %v7955_v1 }
 0x344   :  { %7735 = vmatpush3.msra.mxu1 %v4842_v13  ;;  %7692 = vmatpush3.msra.mxu0 %v10620_v43  ;;  %v4890_v13 = vsub.f32 %v10796_v23, %v4889_v17 }
 0x345   :  { %7736 = vmatprep.subr.mxu1 %v7955_v1  ;;  %7693 = vmatprep.subr.mxu0 %v7955_v1 }
 0x346   :  { %7737 = vmatpush3.msra.mxu1 %v4849_v31  ;;  %7694 = vmatpush3.msra.mxu0 %v10630_v25  ;;  %v4884_v31 = vand.u32 4294901760, %v4883_v27  ;;  %v4891_v35 = vand.u32 4294901760, %v4890_v13 }
 0x347   :  { %7738 = vmatprep.subr.mxu1 %v7955_v1  ;;  %7695 = vmatprep.subr.mxu0 %v7955_v1 }
 0x348   :  { %7739 = vmatpush3.msra.mxu1 %v4856_v4  ;;  %7696 = vmatpush3.msra.mxu0 %v10644_v19 }
 0x349   :  { %7740 = vmatprep.subr.mxu1 %v7955_v1  ;;  %7697 = vmatprep.subr.mxu0 %v7955_v1 }
 0x34a   :  { %7741 = vmatpush3.msra.mxu1 %v4863_v54  ;;  %7698 = vmatpush3.msra.mxu0 %v10655_v61  ;;  %v4904_v54 = vsub.f32 %v10818_v32, %v4903_v36 }
 0x34b   :  { %7742 = vmatprep.subr.mxu1 %v7955_v1  ;;  %7699 = vmatprep.subr.mxu0 %v7955_v1  ;;  %v3612_v10 = vpop.f32.mrf.mxu1 }
 0x34c   :  { %7743 = vmatpush3.msra.mxu1 %v4870_v2  ;;  %7700 = vmatpush3.msra.mxu0 %v10663_v59  ;;  %v4898_v2 = vand.u32 4294901760, %v4897_v48  ;;  %v4905_v27 = vand.u32 4294901760, %v4904_v54 }
 0x34d   :  { %7744 = vmatprep.subr.mxu1 %v7955_v1  ;;  %7701 = vmatprep.subr.mxu0 %v7955_v1  ;;  %v7336_v4 = vpop.f32.mrf.mxu1 }
 0x34e   :  { %7745 = vmatpush3.msra.mxu1 %v4877_v16  ;;  %7702 = vmatpush3.msra.mxu0 %v10677_v15  ;;  %v10860_v16 = vsub.f32 %v5397_v29, %v5397_v29 }
 0x34f   :  { %7746 = vmatprep.subr.mxu1 %v7955_v1  ;;  %7703 = vmatprep.subr.mxu0 %v7955_v1 }
 0x350   :  { %7747 = vmatpush3.msra.mxu1 %v4884_v31  ;;  %7704 = vmatpush3.msra.mxu0 %v10698_v44  ;;  %v4787_v48 = vand.u32 4294901760, %v10860_v16 }
 0x351   :  { %7748 = vmatprep.subr.mxu1 %v7955_v1  ;;  %7705 = vmatprep.subr.mxu0 %v7955_v1 }
 0x352   :  { %7749 = vmatpush3.msra.mxu1 %v4891_v35  ;;  %7706 = vmatpush3.msra.mxu0 %v10715_v12 }
 0x353   :  { %7750 = vmatprep.subr.mxu1 %v7955_v1  ;;  %7707 = vmatprep.subr.mxu0 %v7955_v1 }
 0x354   :  { %7751 = vmatpush3.msra.mxu1 %v4898_v2  ;;  %7708 = vmatpush3.msra.mxu0 %v10731_v37 }
 0x355   :  { %7752 = vmatprep.subr.mxu1 %v7955_v1  ;;  %7709 = vmatprep.subr.mxu0 %v7955_v1  ;;  %v3461_v13 = vpop.f32.mrf.mxu0 }
 0x356   :  { %7753 = vmatpush3.msra.mxu1 %v4905_v27  ;;  %7754 = vmatprep.mubr.msk.f32.mxu1 %vm7956_vm0, %v7955_v1  ;;  %v10869_v31 = vadd.f32 %v3612_v10, %v3461_v13  ;;  %v4788_v10 = vsub.f32 %v10860_v16, %v4787_v48 }
 0x357   :  { %7710 = vmatpush3.msra.mxu0 %v10744_v18  ;;  %7755 = vmatmul.mubr.msk.f32.vlgmr.msra.gmra.mxu1 %vm4685_vm8, %v7957_v5  ;;  %v7301_v4 = vpop.f32.mrf.mxu0 }
 0x358   :  { %7792 = vmatprep.subr.mxu1 %v7955_v1  ;;  %7711 = vmatprep.subr.mxu0 %v7955_v1  ;;  %v4789_v35 = vand.u32 4294901760, %v4788_v10 }
 0x359   :  { %7793 = vmatpush3.msra.mxu1 %v10603_v6  ;;  %7712 = vmatpush3.msra.mxu0 %v10757_v24 }
 0x35a   :  { %7794 = vmatprep.subr.mxu1 %v7955_v1  ;;  %7713 = vmatprep.subr.mxu0 %v7955_v1 }
 0x35b   :  { %7795 = vmatpush3.msra.mxu1 %v10610_v60  ;;  %7714 = vmatpush3.msra.mxu0 %v10771_v20 }
 0x35c   :  { %7796 = vmatprep.subr.mxu1 %v7955_v1  ;;  %7715 = vmatprep.subr.mxu0 %v7955_v1 }
 0x35d   :  { %7797 = vmatpush3.msra.mxu1 %v10620_v43  ;;  %7716 = vmatpush3.msra.mxu0 %v10786_v57 }
 0x35e   :  { %7798 = vmatprep.subr.mxu1 %v7955_v1  ;;  %7717 = vmatprep.subr.mxu0 %v7955_v1 }
 0x35f   :  { %7799 = vmatpush3.msra.mxu1 %v10630_v25  ;;  %7718 = vmatpush3.msra.mxu0 %v10798_v22 }
 0x360   :  { %7719 = vmatprep.mubr.msk.f32.mxu0 %vm7956_vm0, %v7955_v1  ;;  %7800 = vmatprep.subr.mxu1 %v7955_v1 }
 0x361   :  { %7720 = vmatmul.mubr.f32.vlgmr.msra.gmra.mxu0 %v4789_v35  ;;  %7757 = vmatprep.subr.mxu0 %v7955_v1 }
 0x362   :  { %7801 = vmatpush3.msra.mxu1 %v10644_v19  ;;  %7758 = vmatpush3.msra.mxu0 %v10618_v42 }
 0x363   :  { %7802 = vmatprep.subr.mxu1 %v7955_v1  ;;  %7759 = vmatprep.subr.mxu0 %v7955_v1 }
 0x364   :  { %7803 = vmatpush3.msra.mxu1 %v10655_v61  ;;  %7760 = vmatpush3.msra.mxu0 %v10628_v14 }
 0x365   :  { %7804 = vmatprep.subr.mxu1 %v7955_v1  ;;  %7761 = vmatprep.subr.mxu0 %v7955_v1 }
 0x366   :  { %7805 = vmatpush3.msra.mxu1 %v10663_v59  ;;  %7762 = vmatpush3.msra.mxu0 %v10639_v52 }
 0x367   :  { %7806 = vmatprep.subr.mxu1 %v7955_v1  ;;  %7763 = vmatprep.subr.mxu0 %v7955_v1 }
 0x368   :  { %7807 = vmatpush3.msra.mxu1 %v10677_v15  ;;  %7764 = vmatpush3.msra.mxu0 %v10650_v8 }
 0x369   :  { %7808 = vmatprep.subr.mxu1 %v7955_v1  ;;  %7765 = vmatprep.subr.mxu0 %v7955_v1 }
 0x36a   :  { %7809 = vmatpush3.msra.mxu1 %v10698_v44  ;;  %7766 = vmatpush3.msra.mxu0 %v10669_v11 }
 0x36b   :  { %7810 = vmatprep.subr.mxu1 %v7955_v1  ;;  %7767 = vmatprep.subr.mxu0 %v7955_v1 }
 0x36c   :  { %7811 = vmatpush3.msra.mxu1 %v10715_v12  ;;  %7768 = vmatpush3.msra.mxu0 %v10683_v49 }
 0x36d   :  { %7812 = vmatprep.subr.mxu1 %v7955_v1  ;;  %7769 = vmatprep.subr.mxu0 %v7955_v1  ;;  %v3805_v54 = vpop.f32.mrf.mxu1 }
 0x36e   :  { %7813 = vmatpush3.msra.mxu1 %v10731_v37  ;;  %7770 = vmatpush3.msra.mxu0 %v10691_v46 }
 0x36f   :  { %7814 = vmatprep.subr.mxu1 %v7955_v1  ;;  %7771 = vmatprep.subr.mxu0 %v7955_v1  ;;  %v7406_v29 = vpop.f32.mrf.mxu1 }
 0x370   :  { %7815 = vmatpush3.msra.mxu1 %v10744_v18  ;;  %7772 = vmatpush3.msra.mxu0 %v10710_v40 }
 0x371   :  { %7816 = vmatprep.subr.mxu1 %v7955_v1  ;;  %7773 = vmatprep.subr.mxu0 %v7955_v1 }
 0x372   :  { %7817 = vmatpush3.msra.mxu1 %v10757_v24  ;;  %7774 = vmatpush3.msra.mxu0 %v10729_v7 }
 0x373   :  { %7818 = vmatprep.subr.mxu1 %v7955_v1  ;;  %7775 = vmatprep.subr.mxu0 %v7955_v1 }
 0x374   :  { %7819 = vmatpush3.msra.mxu1 %v10771_v20  ;;  %7776 = vmatpush3.msra.mxu0 %v10742_v55 }
 0x375   :  { %7820 = vmatprep.subr.mxu1 %v7955_v1  ;;  %7777 = vmatprep.subr.mxu0 %v7955_v1 }
 0x376   :  { %7821 = vmatpush3.msra.mxu1 %v10786_v57  ;;  %7778 = vmatpush3.msra.mxu0 %v10755_v53 }
 0x377   :  { %7822 = vmatprep.subr.mxu1 %v7955_v1  ;;  %7779 = vmatprep.subr.mxu0 %v7955_v1  ;;  %v3716_v2 = vpop.f32.mrf.mxu0 }
 0x378   :  { %7823 = vmatpush3.msra.mxu1 %v10798_v22  ;;  %7824 = vmatprep.mubr.msk.f32.mxu1 %vm7956_vm0, %v7955_v1  ;;  %v3717_v27 = vadd.f32 %v3716_v2, %v10869_v31 }
 0x379   :  { %7780 = vmatpush3.msra.mxu0 %v10769_v50  ;;  %7825 = vmatmul.mubr.f32.vlgmr.msra.gmra.mxu1 %v4787_v48  ;;  %v7371_v13 = vpop.f32.mrf.mxu0 }
 0x37a   :  { %7862 = vmatprep.subr.mxu1 %v7955_v1  ;;  %7781 = vmatprep.subr.mxu0 %v7955_v1  ;;  %v10953_v4 = vadd.f32 %v3805_v54, %v3717_v27 }
 0x37b   :  { %7863 = vmatpush3.msra.mxu1 %v10603_v6  ;;  %7782 = vmatpush3.msra.mxu0 %v10784_v28 }
 0x37c   :  { %7864 = vmatprep.subr.mxu1 %v7955_v1  ;;  %7783 = vmatprep.subr.mxu0 %v7955_v1 }
 0x37d   :  { %7865 = vmatpush3.msra.mxu1 %v10610_v60  ;;  %7784 = vmatpush3.msra.mxu0 %v10796_v23 }
 0x37e   :  { %7866 = vmatprep.subr.mxu1 %v7955_v1  ;;  %7785 = vmatprep.subr.mxu0 %v7955_v1 }
 0x37f   :  { %7867 = vmatpush3.msra.mxu1 %v10620_v43  ;;  %7786 = vmatpush3.msra.mxu0 %v10808_v62 }
 0x380   :  { %7868 = vmatprep.subr.mxu1 %v7955_v1  ;;  %7787 = vmatprep.subr.mxu0 %v7955_v1 }
 0x381   :  { %7869 = vmatpush3.msra.mxu1 %v10630_v25  ;;  %7788 = vmatpush3.msra.mxu0 %v10818_v32 }
 0x382   :  { %7789 = vmatprep.mubr.msk.f32.mxu0 %vm7956_vm0, %v7955_v1  ;;  %7870 = vmatprep.subr.mxu1 %v7955_v1 }
 0x383   :  { %7790 = vmatmul.mubr.f32.vlgmr.msra.gmra.mxu0 %v10860_v16  ;;  %7827 = vmatprep.subr.mxu0 %v7955_v1 }
 0x384   :  { %7871 = vmatpush3.msra.mxu1 %v10644_v19  ;;  %7828 = vmatpush3.msra.mxu0 %v4798_v26 }
 0x385   :  { %7872 = vmatprep.subr.mxu1 %v7955_v1  ;;  %7829 = vmatprep.subr.mxu0 %v7955_v1 }
 0x386   :  { %7873 = vmatpush3.msra.mxu1 %v10655_v61  ;;  %7830 = vmatpush3.msra.mxu0 %v4805_v3 }
 0x387   :  { %7874 = vmatprep.subr.mxu1 %v7955_v1  ;;  %7831 = vmatprep.subr.mxu0 %v7955_v1 }
 0x388   :  { %7875 = vmatpush3.msra.mxu1 %v10663_v59  ;;  %7832 = vmatpush3.msra.mxu0 %v4812_v9 }
 0x389   :  { %7876 = vmatprep.subr.mxu1 %v7955_v1  ;;  %7833 = vmatprep.subr.mxu0 %v7955_v1 }
 0x38a   :  { %7877 = vmatpush3.msra.mxu1 %v10677_v15  ;;  %7834 = vmatpush3.msra.mxu0 %v4819_v34 }
 0x38b   :  { %7878 = vmatprep.subr.mxu1 %v7955_v1  ;;  %7835 = vmatprep.subr.mxu0 %v7955_v1 }
 0x38c   :  { %7879 = vmatpush3.msra.mxu1 %v10698_v44  ;;  %7836 = vmatpush3.msra.mxu0 %v4826_v39 }
 0x38d   :  { %7880 = vmatprep.subr.mxu1 %v7955_v1  ;;  %7837 = vmatprep.subr.mxu0 %v7955_v1 }
 0x38e   :  { %7881 = vmatpush3.msra.mxu1 %v10715_v12  ;;  %7838 = vmatpush3.msra.mxu0 %v4833_v51 }
 0x38f   :  { %7882 = vmatprep.subr.mxu1 %v7955_v1  ;;  %7839 = vmatprep.subr.mxu0 %v7955_v1  ;;  %v4011_v6 = vpop.f32.mrf.mxu1 }
 0x390   :  { %7883 = vmatpush3.msra.mxu1 %v10731_v37  ;;  %7840 = vmatpush3.msra.mxu0 %v4840_v47 }
 0x391   :  { %7884 = vmatprep.subr.mxu1 %v7955_v1  ;;  %7841 = vmatprep.subr.mxu0 %v7955_v1  ;;  %v7476_v60 = vpop.f32.mrf.mxu1 }
 0x392   :  { %7885 = vmatpush3.msra.mxu1 %v10744_v18  ;;  %7842 = vmatpush3.msra.mxu0 %v4847_v21 }
 0x393   :  { %7886 = vmatprep.subr.mxu1 %v7955_v1  ;;  %7843 = vmatprep.subr.mxu0 %v7955_v1 }
 0x394   :  { %7887 = vmatpush3.msra.mxu1 %v10757_v24  ;;  %7844 = vmatpush3.msra.mxu0 %v4854_v38 }
 0x395   :  { %7888 = vmatprep.subr.mxu1 %v7955_v1  ;;  %7845 = vmatprep.subr.mxu0 %v7955_v1 }
 0x396   :  { %7889 = vmatpush3.msra.mxu1 %v10771_v20  ;;  %7846 = vmatpush3.msra.mxu0 %v4861_v45 }
 0x397   :  { %7890 = vmatprep.subr.mxu1 %v7955_v1  ;;  %7847 = vmatprep.subr.mxu0 %v7955_v1 }
 0x398   :  { %7891 = vmatpush3.msra.mxu1 %v10786_v57  ;;  %7848 = vmatpush3.msra.mxu0 %v4868_v56 }
 0x399   :  { %7892 = vmatprep.subr.mxu1 %v7955_v1  ;;  %7849 = vmatprep.subr.mxu0 %v7955_v1  ;;  %v3924_v42 = vpop.f32.mrf.mxu0 }
 0x39a   :  { %7893 = vmatpush3.msra.mxu1 %v10798_v22  ;;  %7894 = vmatprep.mubr.msk.f32.mxu1 %vm7956_vm0, %v7955_v1  ;;  %v3925_v43 = vadd.f32 %v3924_v42, %v10953_v4 }
 0x39b   :  { %7850 = vmatpush3.msra.mxu0 %v4875_v0  ;;  %7895 = vmatmul.mubr.msk.f32.vlgmr.msra.gmra.mxu1 %vm4685_vm8, %v7957_v5  ;;  %v7441_v14 = vpop.f32.mrf.mxu0 }
 0x39c   :  { %7851 = vmatprep.subr.mxu0 %v7955_v1  ;;  %7859 = vmatprep.mubr.msk.f32.mxu0 %vm7956_vm0, %v7955_v1  ;;  %v4012_v25 = vadd.f32 %v4011_v6, %v3925_v43 }
 0x39d   :  { %7852 = vmatpush3.msra.mxu0 %v4882_v63 }
 0x39e   :  { %7853 = vmatprep.subr.mxu0 %v7955_v1  ;;  %v4015_v26 = vadd.f32 %v4012_v25, %v10723_v33 }
 0x39f   :  { %7854 = vmatpush3.msra.mxu0 %v4889_v17 }
 0x3a0   :  { %7855 = vmatprep.subr.mxu0 %v7955_v1 }
 0x3a1   :  { %7856 = vmatpush3.msra.mxu0 %v4896_v41 }
 0x3a2   :  { %7857 = vmatprep.subr.mxu0 %v7955_v1 }
 0x3a3   :  { %7858 = vmatpush3.msra.mxu0 %v4903_v36 }
 0x3a4   :  { %7860 = vmatmul.mubr.msk.f32.vlgmr.msra.gmra.mxu0 %vm4685_vm8, %v7957_v5 }
 0x3b1   :  { %v4277_v52 = vpop.f32.mrf.mxu1 }
 0x3b3   :  { %v7546_v19 = vpop.f32.mrf.mxu1 }
 0x3bb   :  { %v4126_v3 = vpop.f32.mrf.mxu0 }
 0x3bc   :  { %v4278_v8 = vadd.f32 %v4277_v52, %v4126_v3 }
 0x3bd   :  { %v7511_v61 = vpop.f32.mrf.mxu0 }
 0x3d3   :  { %v4470_v9 = vpop.f32.mrf.mxu1 }
 0x3d5   :  { %v7616_v59 = vpop.f32.mrf.mxu1 }
 0x3dd   :  { %v4381_v11 = vpop.f32.mrf.mxu0 }
 0x3de   :  { %v4382_v34 = vadd.f32 %v4381_v11, %v4278_v8 }
 0x3df   :  { %v7581_v15 = vpop.f32.mrf.mxu0 }
 0x3e0   :  { %v4471_v49 = vadd.f32 %v4470_v9, %v4382_v34 }
 0x3f5   :  { %v4676_v1 = vpop.f32.mrf.mxu1 }
 0x3f7   :  { %v7686_v46 = vpop.f32.mrf.mxu1 }
 0x3ff   :  { %v4589_v39 = vpop.f32.mrf.mxu0 }
 0x400   :  { %v4590_v44 = vadd.f32 %v4589_v39, %v4471_v49 }
 0x401   :  { %v7651_v40 = vpop.f32.mrf.mxu0 }
 0x402   :  { %v4677_v51 = vadd.f32 %v4676_v1, %v4590_v44 }
 0x404   :  { %v4680_v12 = vadd.f32 %v4677_v51, %v4015_v26 }
 0x417   :  { %v4942_v58 = vpop.f32.mrf.mxu1 }
 0x419   :  { %v7756_v5 = vpop.f32.mrf.mxu1 }
 0x421   :  { %v4791_v47 = vpop.f32.mrf.mxu0 }
 0x422   :  { %v4943_v38 = vadd.f32 %v4942_v58, %v4791_v47 }
 0x423   :  { %v7721_v33 = vpop.f32.mrf.mxu0 }
 0x439   :  { %v5135_v7 = vpop.f32.mrf.mxu1 }
 0x43b   :  { %v7826_v37 = vpop.f32.mrf.mxu1 }
 0x443   :  { %v5046_v21 = vpop.f32.mrf.mxu0 }
 0x444   :  { %v5047_v24 = vadd.f32 %v5046_v21, %v4943_v38 }
 0x445   :  { %v7791_v55 = vpop.f32.mrf.mxu0 }
 0x446   :  { %v5136_v45 = vadd.f32 %v5135_v7, %v5047_v24 }
 0x45b   :  { %v5341_v18 = vpop.f32.mrf.mxu1 }
 0x45d   :  { %v7896_v53 = vpop.f32.mrf.mxu1 }
 0x464   :  { %v5254_v50 = vpop.f32.mrf.mxu0 }
 0x465   :  { %v5255_v20 = vadd.f32 %v5254_v50, %v5136_v45 }
 0x466   :  { %v7861_v56 = vpop.f32.mrf.mxu0 }
 0x467   :  { %v5342_v28 = vadd.f32 %v5341_v18, %v5255_v20 }
 0x469   :  { %v5345_v57 = vadd.f32 %v5342_v28, %v4680_v12 }
 0x46b   :  { %5346 = vst [vmem:[#allocation5] sm:$0xff] %v5345_v57 }
 0x46c   :  { %7938 = shalt.err (!%p7935_p9)
}
 0x46d   :  { %5356 = dma.vmem_to_hbm [thread:$0]  %s5354_s1, 128, %s11063_s2, [#allocation4]  }
 0x46e   :  { %7949 = dma.done.wait [#allocation4], 128  }
 0x46f   :  { %7950 = vsyncadd [#allocation4], 4294967168 }
 0x470   :  { %5360 = vsyncpa [#allocation3], 1 }
 0x471   :  { %5361 = vsyncpa [#allocation4], 1 }

</bundles_post_ra>
